<compile_context>
chip_gen: v7x
topology: tpu7x:2x2x1
jax: 0.10.0
libtpu: 0.0.40
codegen_flags: <defaults>
</compile_context>

<pallas_src>
import math

import jax
import jax.numpy as jnp
from jax.experimental import pallas as pl
from jax.experimental.pallas import tpu as pltpu


def _build_kernel(num_layers, seq_len, batch_pad, h_pad):
    """Whole forward (stacked LSTM over time + final linear) in one kernel."""
    T, B, H = seq_len, batch_pad, h_pad

    def cell(gates, c_prev):
        # gates: (B, 4H) in reordered gate layout [i, f, o, g]; every gate block
        # is a full 128-lane tile, so one sigmoid covers 3 gates and one tanh the 4th.
        sig = jax.nn.sigmoid(gates[:, : 3 * H])
        g = jnp.tanh(gates[:, 3 * H :])
        i = sig[:, 0:H]
        f = sig[:, H : 2 * H]
        o = sig[:, 2 * H : 3 * H]
        c_new = f * c_prev + i * g
        h_new = o * jnp.tanh(c_new)
        return h_new, c_new

    def kernel(*args):
        x_ref = args[0]                                    # (T*B, in_dim), time-major
        w_ih0_ref, w_hh0_ref, b0_ref = args[1:4]           # layer 0
        deep_refs = args[4 : 4 + 2 * (num_layers - 1)]     # (w_cat_l, b_l) per deep layer
        w_out_ref = args[4 + 2 * (num_layers - 1)]
        b_out_ref = args[5 + 2 * (num_layers - 1)]
        out_ref = args[6 + 2 * (num_layers - 1)]

        # Hoisted input projection for layer 0: one big matmul instead of T tiny
        # matmuls sitting on the recurrence critical path.
        x_proj = (
            jnp.dot(x_ref[...], w_ih0_ref[...], preferred_element_type=jnp.float32)
            + b0_ref[...]
        )
        w_hh0 = w_hh0_ref[...]
        deep_w = [
            (deep_refs[2 * i][...], deep_refs[2 * i + 1][...])
            for i in range(num_layers - 1)
        ]

        zeros = jnp.zeros((B, H), jnp.float32)
        h = [zeros] * num_layers
        c = [zeros] * num_layers

        # Statically unrolled wavefront over time; h/c live in vregs.
        # TODO(synk): for long look_back / large batch, switch the time axis to a
        # BlockSpec-pipelined HBM stream (and a batch grid) instead of full unroll.
        for t in range(T):
            gates0 = x_proj[t * B : (t + 1) * B, :] + jnp.dot(
                h[0], w_hh0, preferred_element_type=jnp.float32
            )
            h[0], c[0] = cell(gates0, c[0])
            for l in range(1, num_layers):
                w_cat, b_l = deep_w[l - 1]
                inp = jnp.concatenate([h[l - 1], h[l]], axis=1)        # (B, 2H)
                gates = jnp.dot(inp, w_cat, preferred_element_type=jnp.float32) + b_l
                h[l], c[l] = cell(gates, c[l])

        # Final Linear(H, 1): VPU multiply + lane reduce (padded cols are zero).
        out_ref[...] = (
            jnp.sum(h[num_layers - 1] * w_out_ref[...], axis=-1, keepdims=True)
            + b_out_ref[...]
        )

    return kernel


def _prep_inputs(x, params, hidden_size, num_layers, h_pad, batch_pad):
    """Host-side weight staging: transpose to (in, 4H), reorder PyTorch gate order
    [i,f,g,o] -> kernel order [i,f,o,g], zero-pad each gate block / hidden dim to
    h_pad lanes, stack deep-layer W_ih/W_hh, pad batch, flatten x time-major."""
    H, Hp = hidden_size, h_pad
    batch, seq_len, in_dim = x.shape

    def reorder_and_pad_cols(w_t):
        # w_t: (rows, 4H) in [i, f, g, o] -> (rows, 4*Hp) in [i, f, o, g].
        rows = w_t.shape[0]
        blocks = (w_t[:, 0:H], w_t[:, H:2 * H], w_t[:, 3 * H:4 * H], w_t[:, 2 * H:3 * H])
        out = jnp.zeros((rows, 4 * Hp), jnp.float32)
        for k, blk in enumerate(blocks):
            out = out.at[:, k * Hp : k * Hp + H].set(blk)
        return out

    def pad_rows(w, new_rows):
        return jnp.zeros((new_rows, w.shape[1]), jnp.float32).at[: w.shape[0], :].set(w)

    flat = []
    # x: pad batch to batch_pad, go time-major, flatten to (T*Bp, in_dim).
    x_p = jnp.zeros((batch_pad, seq_len, in_dim), jnp.float32).at[:batch].set(x)
    flat.append(jnp.transpose(x_p, (1, 0, 2)).reshape(seq_len * batch_pad, in_dim))

    # Layer 0.
    w_ih0 = reorder_and_pad_cols(params["w_ih_0"].T)                    # (in_dim, 4Hp)
    w_hh0 = pad_rows(reorder_and_pad_cols(params["w_hh_0"].T), Hp)      # (Hp, 4Hp)
    b0 = reorder_and_pad_cols((params["b_ih_0"] + params["b_hh_0"])[None, :])
    flat += [w_ih0, w_hh0, b0]

    # Deeper layers: stack W_ih^T over W_hh^T -> one matmul per step on
    # concat([h_below, h_self]).
    for l in range(1, num_layers):
        w_ih = pad_rows(reorder_and_pad_cols(params[f"w_ih_{l}"].T), Hp)
        w_hh = pad_rows(reorder_and_pad_cols(params[f"w_hh_{l}"].T), Hp)
        b = reorder_and_pad_cols((params[f"b_ih_{l}"] + params[f"b_hh_{l}"])[None, :])
        flat += [jnp.concatenate([w_ih, w_hh], axis=0), b]              # (2Hp, 4Hp)

    w_out = jnp.zeros((1, Hp), jnp.float32).at[:, :H].set(params["w_out"])
    b_out = params["b_out"].reshape(1, 1).astype(jnp.float32)
    flat += [w_out, b_out]
    return flat


def hasel_nn_forward(x, params, hidden_size, num_layers):
    batch, seq_len, _ = x.shape
    h_pad = ((hidden_size + 127) // 128) * 128     # lane-align the hidden/gate dim
    batch_pad = ((batch + 7) // 8) * 8             # fill f32 sublanes
    flat_inputs = _prep_inputs(x, params, hidden_size, num_layers, h_pad, batch_pad)

    kernel = _build_kernel(num_layers, seq_len, batch_pad, h_pad)
    vmem = pltpu.MemorySpace.VMEM
    out = pl.pallas_call(
        kernel,
        out_shape=jax.ShapeDtypeStruct((batch_pad, 1), jnp.float32),
        in_specs=[pl.BlockSpec(memory_space=vmem) for _ in flat_inputs],
        out_specs=pl.BlockSpec(memory_space=vmem),
    )(*flat_inputs)
    return out[:batch]


def init_params(key, hidden_size, num_layers, input_size=2):
    """Raw PyTorch-layout params: uniform(-1/sqrt(H), 1/sqrt(H)), gate order [i,f,g,o]."""
    k = 1.0 / math.sqrt(hidden_size)
    params = {}
    for l in range(num_layers):
        in_dim = input_size if l == 0 else hidden_size
        key, k1, k2, k3, k4 = jax.random.split(key, 5)
        params[f"w_ih_{l}"] = jax.random.uniform(k1, (4 * hidden_size, in_dim), jnp.float32, -k, k)
        params[f"w_hh_{l}"] = jax.random.uniform(k2, (4 * hidden_size, hidden_size), jnp.float32, -k, k)
        params[f"b_ih_{l}"] = jax.random.uniform(k3, (4 * hidden_size,), jnp.float32, -k, k)
        params[f"b_hh_{l}"] = jax.random.uniform(k4, (4 * hidden_size,), jnp.float32, -k, k)
    key, k1, k2 = jax.random.split(key, 3)
    params["w_out"] = jax.random.uniform(k1, (1, hidden_size), jnp.float32, -k, k)
    params["b_out"] = jax.random.uniform(k2, (1,), jnp.float32, -k, k)
    return params


def reference_forward(x, params, hidden_size, num_layers):
    """Pure-JAX reference mirroring the PyTorch module exactly."""
    batch, seq_len, _ = x.shape
    H = hidden_size
    inp = x
    h = None
    for l in range(num_layers):
        w_ih, w_hh = params[f"w_ih_{l}"], params[f"w_hh_{l}"]
        b = params[f"b_ih_{l}"] + params[f"b_hh_{l}"]
        h = jnp.zeros((batch, H), jnp.float32)
        c = jnp.zeros((batch, H), jnp.float32)
        outs = []
        for t in range(seq_len):
            gates = inp[:, t, :] @ w_ih.T + h @ w_hh.T + b
            i = jax.nn.sigmoid(gates[:, 0:H])
            f = jax.nn.sigmoid(gates[:, H:2 * H])
            g = jnp.tanh(gates[:, 2 * H:3 * H])
            o = jax.nn.sigmoid(gates[:, 3 * H:4 * H])
            c = f * c + i * g
            h = o * jnp.tanh(c)
            outs.append(h)
        inp = jnp.stack(outs, axis=1)
    return h @ params["w_out"].T + params["b_out"][None, :]


if __name__ == "__main__":
    look_back = 8      # sequence length
    hidden_size = 32
    num_layers = 2
    batch = 2

    key = jax.random.PRNGKey(0)
    key, xk, pk = jax.random.split(key, 3)
    x = jax.random.normal(xk, (batch, look_back, 2), jnp.float32)
    params = init_params(pk, hidden_size, num_layers)

    out = jax.block_until_ready(hasel_nn_forward(x, params, hidden_size, num_layers))
    ref = reference_forward(x, params, hidden_size, num_layers)
    assert out.shape == (batch, 1), out.shape
    assert jnp.allclose(out, ref, atol=1e-3, rtol=1e-3), (out, ref)
    print("KERNEL_OK")
</pallas_src>

<mosaic_0001>
module attributes {stable_mosaic.version = 11 : i64} {
  func.func @kernel(%arg0: memref<64x2xf32, #tpu.memory_space<vmem>>, %arg1: memref<2x512xf32, #tpu.memory_space<vmem>>, %arg2: memref<128x512xf32, #tpu.memory_space<vmem>>, %arg3: memref<1x512xf32, #tpu.memory_space<vmem>>, %arg4: memref<256x512xf32, #tpu.memory_space<vmem>>, %arg5: memref<1x512xf32, #tpu.memory_space<vmem>>, %arg6: memref<1x128xf32, #tpu.memory_space<vmem>>, %arg7: memref<1x1xf32, #tpu.memory_space<vmem>>, %arg8: memref<8x1xf32, #tpu.memory_space<vmem>>) attributes {dimension_semantics = [], scalar_prefetch = 0 : i64, scratch_operands = 0 : i64, tpu.core_type = #tpu.core_type<tc>} {
    %c0 = arith.constant 0 : index
    %c0_0 = arith.constant 0 : index
    %0 = vector.load %arg0[%c0, %c0_0] : memref<64x2xf32, #tpu.memory_space<vmem>>, vector<64x2xf32>
    %c0_1 = arith.constant 0 : index
    %c0_2 = arith.constant 0 : index
    %1 = vector.load %arg1[%c0_1, %c0_2] : memref<2x512xf32, #tpu.memory_space<vmem>>, vector<2x512xf32>
    %cst = arith.constant dense<0.000000e+00> : vector<64x512xf32>
    %2 = tpu.matmul %0, %1, %cst {dimension_numbers = #tpu.dot_dimension_numbers<[1], [0], [0], [1], [0, 0, 1, 1], [], []>} : vector<64x2xf32>, vector<2x512xf32>, vector<64x512xf32> -> vector<64x512xf32>
    %c0_3 = arith.constant 0 : index
    %c0_4 = arith.constant 0 : index
    %3 = vector.load %arg3[%c0_3, %c0_4] : memref<1x512xf32, #tpu.memory_space<vmem>>, vector<1x512xf32>
    %4 = vector.broadcast %3 : vector<1x512xf32> to vector<64x512xf32>
    %5 = arith.addf %2, %4 : vector<64x512xf32>
    %c0_5 = arith.constant 0 : index
    %c0_6 = arith.constant 0 : index
    %6 = vector.load %arg2[%c0_5, %c0_6] : memref<128x512xf32, #tpu.memory_space<vmem>>, vector<128x512xf32>
    %c0_7 = arith.constant 0 : index
    %c0_8 = arith.constant 0 : index
    %7 = vector.load %arg4[%c0_7, %c0_8] : memref<256x512xf32, #tpu.memory_space<vmem>>, vector<256x512xf32>
    %c0_9 = arith.constant 0 : index
    %c0_10 = arith.constant 0 : index
    %8 = vector.load %arg5[%c0_9, %c0_10] : memref<1x512xf32, #tpu.memory_space<vmem>>, vector<1x512xf32>
    %cst_11 = arith.constant 0.000000e+00 : f32
    %9 = vector.broadcast %cst_11 : f32 to vector<8x128xf32>
    %10 = vector.extract_strided_slice %5 {offsets = [0, 0], sizes = [8, 512], strides = [1, 1]} : vector<64x512xf32> to vector<8x512xf32>
    %cst_12 = arith.constant dense<0.000000e+00> : vector<8x512xf32>
    %11 = tpu.matmul %9, %6, %cst_12 {dimension_numbers = #tpu.dot_dimension_numbers<[1], [0], [0], [1], [0, 0, 1, 1], [], []>} : vector<8x128xf32>, vector<128x512xf32>, vector<8x512xf32> -> vector<8x512xf32>
    %12 = arith.addf %10, %11 : vector<8x512xf32>
    %13 = vector.extract_strided_slice %12 {offsets = [0, 0], sizes = [8, 384], strides = [1, 1]} : vector<8x512xf32> to vector<8x384xf32>
    %14 = arith.negf %13 : vector<8x384xf32>
    %15 = math.exp %14 : vector<8x384xf32>
    %cst_13 = arith.constant 1.000000e+00 : f32
    %16 = vector.broadcast %cst_13 : f32 to vector<8x384xf32>
    %17 = arith.addf %16, %15 : vector<8x384xf32>
    %18 = arith.divf %16, %17 : vector<8x384xf32>
    %19 = vector.extract_strided_slice %12 {offsets = [0, 384], sizes = [8, 128], strides = [1, 1]} : vector<8x512xf32> to vector<8x128xf32>
    %20 = math.tanh %19 : vector<8x128xf32>
    %21 = vector.extract_strided_slice %18 {offsets = [0, 0], sizes = [8, 128], strides = [1, 1]} : vector<8x384xf32> to vector<8x128xf32>
    %22 = vector.extract_strided_slice %18 {offsets = [0, 128], sizes = [8, 128], strides = [1, 1]} : vector<8x384xf32> to vector<8x128xf32>
    %23 = vector.extract_strided_slice %18 {offsets = [0, 256], sizes = [8, 128], strides = [1, 1]} : vector<8x384xf32> to vector<8x128xf32>
    %24 = arith.mulf %22, %9 : vector<8x128xf32>
    %25 = arith.mulf %21, %20 : vector<8x128xf32>
    %26 = arith.addf %24, %25 : vector<8x128xf32>
    %27 = math.tanh %26 : vector<8x128xf32>
    %28 = arith.mulf %23, %27 : vector<8x128xf32>
    %29 = tpu.concatenate %28, %9 in 1 : vector<8x128xf32>, vector<8x128xf32> -> vector<8x256xf32>
    %cst_14 = arith.constant dense<0.000000e+00> : vector<8x512xf32>
    %30 = tpu.matmul %29, %7, %cst_14 {dimension_numbers = #tpu.dot_dimension_numbers<[1], [0], [0], [1], [0, 0, 1, 1], [], []>} : vector<8x256xf32>, vector<256x512xf32>, vector<8x512xf32> -> vector<8x512xf32>
    %31 = vector.broadcast %8 : vector<1x512xf32> to vector<8x512xf32>
    %32 = arith.addf %30, %31 : vector<8x512xf32>
    %33 = vector.extract_strided_slice %32 {offsets = [0, 0], sizes = [8, 384], strides = [1, 1]} : vector<8x512xf32> to vector<8x384xf32>
    %34 = arith.negf %33 : vector<8x384xf32>
    %35 = math.exp %34 : vector<8x384xf32>
    %cst_15 = arith.constant 1.000000e+00 : f32
    %36 = vector.broadcast %cst_15 : f32 to vector<8x384xf32>
    %37 = arith.addf %36, %35 : vector<8x384xf32>
    %38 = arith.divf %36, %37 : vector<8x384xf32>
    %39 = vector.extract_strided_slice %32 {offsets = [0, 384], sizes = [8, 128], strides = [1, 1]} : vector<8x512xf32> to vector<8x128xf32>
    %40 = math.tanh %39 : vector<8x128xf32>
    %41 = vector.extract_strided_slice %38 {offsets = [0, 0], sizes = [8, 128], strides = [1, 1]} : vector<8x384xf32> to vector<8x128xf32>
    %42 = vector.extract_strided_slice %38 {offsets = [0, 128], sizes = [8, 128], strides = [1, 1]} : vector<8x384xf32> to vector<8x128xf32>
    %43 = vector.extract_strided_slice %38 {offsets = [0, 256], sizes = [8, 128], strides = [1, 1]} : vector<8x384xf32> to vector<8x128xf32>
    %44 = arith.mulf %42, %9 : vector<8x128xf32>
    %45 = arith.mulf %41, %40 : vector<8x128xf32>
    %46 = arith.addf %44, %45 : vector<8x128xf32>
    %47 = math.tanh %46 : vector<8x128xf32>
    %48 = arith.mulf %43, %47 : vector<8x128xf32>
    %49 = vector.extract_strided_slice %5 {offsets = [8, 0], sizes = [8, 512], strides = [1, 1]} : vector<64x512xf32> to vector<8x512xf32>
    %cst_16 = arith.constant dense<0.000000e+00> : vector<8x512xf32>
    %50 = tpu.matmul %28, %6, %cst_16 {dimension_numbers = #tpu.dot_dimension_numbers<[1], [0], [0], [1], [0, 0, 1, 1], [], []>} : vector<8x128xf32>, vector<128x512xf32>, vector<8x512xf32> -> vector<8x512xf32>
    %51 = arith.addf %49, %50 : vector<8x512xf32>
    %52 = vector.extract_strided_slice %51 {offsets = [0, 0], sizes = [8, 384], strides = [1, 1]} : vector<8x512xf32> to vector<8x384xf32>
    %53 = arith.negf %52 : vector<8x384xf32>
    %54 = math.exp %53 : vector<8x384xf32>
    %cst_17 = arith.constant 1.000000e+00 : f32
    %55 = vector.broadcast %cst_17 : f32 to vector<8x384xf32>
    %56 = arith.addf %55, %54 : vector<8x384xf32>
    %57 = arith.divf %55, %56 : vector<8x384xf32>
    %58 = vector.extract_strided_slice %51 {offsets = [0, 384], sizes = [8, 128], strides = [1, 1]} : vector<8x512xf32> to vector<8x128xf32>
    %59 = math.tanh %58 : vector<8x128xf32>
    %60 = vector.extract_strided_slice %57 {offsets = [0, 0], sizes = [8, 128], strides = [1, 1]} : vector<8x384xf32> to vector<8x128xf32>
    %61 = vector.extract_strided_slice %57 {offsets = [0, 128], sizes = [8, 128], strides = [1, 1]} : vector<8x384xf32> to vector<8x128xf32>
    %62 = vector.extract_strided_slice %57 {offsets = [0, 256], sizes = [8, 128], strides = [1, 1]} : vector<8x384xf32> to vector<8x128xf32>
    %63 = arith.mulf %61, %26 : vector<8x128xf32>
    %64 = arith.mulf %60, %59 : vector<8x128xf32>
    %65 = arith.addf %63, %64 : vector<8x128xf32>
    %66 = math.tanh %65 : vector<8x128xf32>
    %67 = arith.mulf %62, %66 : vector<8x128xf32>
    %68 = tpu.concatenate %67, %48 in 1 : vector<8x128xf32>, vector<8x128xf32> -> vector<8x256xf32>
    %cst_18 = arith.constant dense<0.000000e+00> : vector<8x512xf32>
    %69 = tpu.matmul %68, %7, %cst_18 {dimension_numbers = #tpu.dot_dimension_numbers<[1], [0], [0], [1], [0, 0, 1, 1], [], []>} : vector<8x256xf32>, vector<256x512xf32>, vector<8x512xf32> -> vector<8x512xf32>
    %70 = vector.broadcast %8 : vector<1x512xf32> to vector<8x512xf32>
    %71 = arith.addf %69, %70 : vector<8x512xf32>
    %72 = vector.extract_strided_slice %71 {offsets = [0, 0], sizes = [8, 384], strides = [1, 1]} : vector<8x512xf32> to vector<8x384xf32>
    %73 = arith.negf %72 : vector<8x384xf32>
    %74 = math.exp %73 : vector<8x384xf32>
    %cst_19 = arith.constant 1.000000e+00 : f32
    %75 = vector.broadcast %cst_19 : f32 to vector<8x384xf32>
    %76 = arith.addf %75, %74 : vector<8x384xf32>
    %77 = arith.divf %75, %76 : vector<8x384xf32>
    %78 = vector.extract_strided_slice %71 {offsets = [0, 384], sizes = [8, 128], strides = [1, 1]} : vector<8x512xf32> to vector<8x128xf32>
    %79 = math.tanh %78 : vector<8x128xf32>
    %80 = vector.extract_strided_slice %77 {offsets = [0, 0], sizes = [8, 128], strides = [1, 1]} : vector<8x384xf32> to vector<8x128xf32>
    %81 = vector.extract_strided_slice %77 {offsets = [0, 128], sizes = [8, 128], strides = [1, 1]} : vector<8x384xf32> to vector<8x128xf32>
    %82 = vector.extract_strided_slice %77 {offsets = [0, 256], sizes = [8, 128], strides = [1, 1]} : vector<8x384xf32> to vector<8x128xf32>
    %83 = arith.mulf %81, %46 : vector<8x128xf32>
    %84 = arith.mulf %80, %79 : vector<8x128xf32>
    %85 = arith.addf %83, %84 : vector<8x128xf32>
    %86 = math.tanh %85 : vector<8x128xf32>
    %87 = arith.mulf %82, %86 : vector<8x128xf32>
    %88 = vector.extract_strided_slice %5 {offsets = [16, 0], sizes = [8, 512], strides = [1, 1]} : vector<64x512xf32> to vector<8x512xf32>
    %cst_20 = arith.constant dense<0.000000e+00> : vector<8x512xf32>
    %89 = tpu.matmul %67, %6, %cst_20 {dimension_numbers = #tpu.dot_dimension_numbers<[1], [0], [0], [1], [0, 0, 1, 1], [], []>} : vector<8x128xf32>, vector<128x512xf32>, vector<8x512xf32> -> vector<8x512xf32>
    %90 = arith.addf %88, %89 : vector<8x512xf32>
    %91 = vector.extract_strided_slice %90 {offsets = [0, 0], sizes = [8, 384], strides = [1, 1]} : vector<8x512xf32> to vector<8x384xf32>
    %92 = arith.negf %91 : vector<8x384xf32>
    %93 = math.exp %92 : vector<8x384xf32>
    %cst_21 = arith.constant 1.000000e+00 : f32
    %94 = vector.broadcast %cst_21 : f32 to vector<8x384xf32>
    %95 = arith.addf %94, %93 : vector<8x384xf32>
    %96 = arith.divf %94, %95 : vector<8x384xf32>
    %97 = vector.extract_strided_slice %90 {offsets = [0, 384], sizes = [8, 128], strides = [1, 1]} : vector<8x512xf32> to vector<8x128xf32>
    %98 = math.tanh %97 : vector<8x128xf32>
    %99 = vector.extract_strided_slice %96 {offsets = [0, 0], sizes = [8, 128], strides = [1, 1]} : vector<8x384xf32> to vector<8x128xf32>
    %100 = vector.extract_strided_slice %96 {offsets = [0, 128], sizes = [8, 128], strides = [1, 1]} : vector<8x384xf32> to vector<8x128xf32>
    %101 = vector.extract_strided_slice %96 {offsets = [0, 256], sizes = [8, 128], strides = [1, 1]} : vector<8x384xf32> to vector<8x128xf32>
    %102 = arith.mulf %100, %65 : vector<8x128xf32>
    %103 = arith.mulf %99, %98 : vector<8x128xf32>
    %104 = arith.addf %102, %103 : vector<8x128xf32>
    %105 = math.tanh %104 : vector<8x128xf32>
    %106 = arith.mulf %101, %105 : vector<8x128xf32>
    %107 = tpu.concatenate %106, %87 in 1 : vector<8x128xf32>, vector<8x128xf32> -> vector<8x256xf32>
    %cst_22 = arith.constant dense<0.000000e+00> : vector<8x512xf32>
    %108 = tpu.matmul %107, %7, %cst_22 {dimension_numbers = #tpu.dot_dimension_numbers<[1], [0], [0], [1], [0, 0, 1, 1], [], []>} : vector<8x256xf32>, vector<256x512xf32>, vector<8x512xf32> -> vector<8x512xf32>
    %109 = vector.broadcast %8 : vector<1x512xf32> to vector<8x512xf32>
    %110 = arith.addf %108, %109 : vector<8x512xf32>
    %111 = vector.extract_strided_slice %110 {offsets = [0, 0], sizes = [8, 384], strides = [1, 1]} : vector<8x512xf32> to vector<8x384xf32>
    %112 = arith.negf %111 : vector<8x384xf32>
    %113 = math.exp %112 : vector<8x384xf32>
    %cst_23 = arith.constant 1.000000e+00 : f32
    %114 = vector.broadcast %cst_23 : f32 to vector<8x384xf32>
    %115 = arith.addf %114, %113 : vector<8x384xf32>
    %116 = arith.divf %114, %115 : vector<8x384xf32>
    %117 = vector.extract_strided_slice %110 {offsets = [0, 384], sizes = [8, 128], strides = [1, 1]} : vector<8x512xf32> to vector<8x128xf32>
    %118 = math.tanh %117 : vector<8x128xf32>
    %119 = vector.extract_strided_slice %116 {offsets = [0, 0], sizes = [8, 128], strides = [1, 1]} : vector<8x384xf32> to vector<8x128xf32>
    %120 = vector.extract_strided_slice %116 {offsets = [0, 128], sizes = [8, 128], strides = [1, 1]} : vector<8x384xf32> to vector<8x128xf32>
    %121 = vector.extract_strided_slice %116 {offsets = [0, 256], sizes = [8, 128], strides = [1, 1]} : vector<8x384xf32> to vector<8x128xf32>
    %122 = arith.mulf %120, %85 : vector<8x128xf32>
    %123 = arith.mulf %119, %118 : vector<8x128xf32>
    %124 = arith.addf %122, %123 : vector<8x128xf32>
    %125 = math.tanh %124 : vector<8x128xf32>
    %126 = arith.mulf %121, %125 : vector<8x128xf32>
    %127 = vector.extract_strided_slice %5 {offsets = [24, 0], sizes = [8, 512], strides = [1, 1]} : vector<64x512xf32> to vector<8x512xf32>
    %cst_24 = arith.constant dense<0.000000e+00> : vector<8x512xf32>
    %128 = tpu.matmul %106, %6, %cst_24 {dimension_numbers = #tpu.dot_dimension_numbers<[1], [0], [0], [1], [0, 0, 1, 1], [], []>} : vector<8x128xf32>, vector<128x512xf32>, vector<8x512xf32> -> vector<8x512xf32>
    %129 = arith.addf %127, %128 : vector<8x512xf32>
    %130 = vector.extract_strided_slice %129 {offsets = [0, 0], sizes = [8, 384], strides = [1, 1]} : vector<8x512xf32> to vector<8x384xf32>
    %131 = arith.negf %130 : vector<8x384xf32>
    %132 = math.exp %131 : vector<8x384xf32>
    %cst_25 = arith.constant 1.000000e+00 : f32
    %133 = vector.broadcast %cst_25 : f32 to vector<8x384xf32>
    %134 = arith.addf %133, %132 : vector<8x384xf32>
    %135 = arith.divf %133, %134 : vector<8x384xf32>
    %136 = vector.extract_strided_slice %129 {offsets = [0, 384], sizes = [8, 128], strides = [1, 1]} : vector<8x512xf32> to vector<8x128xf32>
    %137 = math.tanh %136 : vector<8x128xf32>
    %138 = vector.extract_strided_slice %135 {offsets = [0, 0], sizes = [8, 128], strides = [1, 1]} : vector<8x384xf32> to vector<8x128xf32>
    %139 = vector.extract_strided_slice %135 {offsets = [0, 128], sizes = [8, 128], strides = [1, 1]} : vector<8x384xf32> to vector<8x128xf32>
    %140 = vector.extract_strided_slice %135 {offsets = [0, 256], sizes = [8, 128], strides = [1, 1]} : vector<8x384xf32> to vector<8x128xf32>
    %141 = arith.mulf %139, %104 : vector<8x128xf32>
    %142 = arith.mulf %138, %137 : vector<8x128xf32>
    %143 = arith.addf %141, %142 : vector<8x128xf32>
    %144 = math.tanh %143 : vector<8x128xf32>
    %145 = arith.mulf %140, %144 : vector<8x128xf32>
    %146 = tpu.concatenate %145, %126 in 1 : vector<8x128xf32>, vector<8x128xf32> -> vector<8x256xf32>
    %cst_26 = arith.constant dense<0.000000e+00> : vector<8x512xf32>
    %147 = tpu.matmul %146, %7, %cst_26 {dimension_numbers = #tpu.dot_dimension_numbers<[1], [0], [0], [1], [0, 0, 1, 1], [], []>} : vector<8x256xf32>, vector<256x512xf32>, vector<8x512xf32> -> vector<8x512xf32>
    %148 = vector.broadcast %8 : vector<1x512xf32> to vector<8x512xf32>
    %149 = arith.addf %147, %148 : vector<8x512xf32>
    %150 = vector.extract_strided_slice %149 {offsets = [0, 0], sizes = [8, 384], strides = [1, 1]} : vector<8x512xf32> to vector<8x384xf32>
    %151 = arith.negf %150 : vector<8x384xf32>
    %152 = math.exp %151 : vector<8x384xf32>
    %cst_27 = arith.constant 1.000000e+00 : f32
    %153 = vector.broadcast %cst_27 : f32 to vector<8x384xf32>
    %154 = arith.addf %153, %152 : vector<8x384xf32>
    %155 = arith.divf %153, %154 : vector<8x384xf32>
    %156 = vector.extract_strided_slice %149 {offsets = [0, 384], sizes = [8, 128], strides = [1, 1]} : vector<8x512xf32> to vector<8x128xf32>
    %157 = math.tanh %156 : vector<8x128xf32>
    %158 = vector.extract_strided_slice %155 {offsets = [0, 0], sizes = [8, 128], strides = [1, 1]} : vector<8x384xf32> to vector<8x128xf32>
    %159 = vector.extract_strided_slice %155 {offsets = [0, 128], sizes = [8, 128], strides = [1, 1]} : vector<8x384xf32> to vector<8x128xf32>
    %160 = vector.extract_strided_slice %155 {offsets = [0, 256], sizes = [8, 128], strides = [1, 1]} : vector<8x384xf32> to vector<8x128xf32>
    %161 = arith.mulf %159, %124 : vector<8x128xf32>
    %162 = arith.mulf %158, %157 : vector<8x128xf32>
    %163 = arith.addf %161, %162 : vector<8x128xf32>
    %164 = math.tanh %163 : vector<8x128xf32>
    %165 = arith.mulf %160, %164 : vector<8x128xf32>
    %166 = vector.extract_strided_slice %5 {offsets = [32, 0], sizes = [8, 512], strides = [1, 1]} : vector<64x512xf32> to vector<8x512xf32>
    %cst_28 = arith.constant dense<0.000000e+00> : vector<8x512xf32>
    %167 = tpu.matmul %145, %6, %cst_28 {dimension_numbers = #tpu.dot_dimension_numbers<[1], [0], [0], [1], [0, 0, 1, 1], [], []>} : vector<8x128xf32>, vector<128x512xf32>, vector<8x512xf32> -> vector<8x512xf32>
    %168 = arith.addf %166, %167 : vector<8x512xf32>
    %169 = vector.extract_strided_slice %168 {offsets = [0, 0], sizes = [8, 384], strides = [1, 1]} : vector<8x512xf32> to vector<8x384xf32>
    %170 = arith.negf %169 : vector<8x384xf32>
    %171 = math.exp %170 : vector<8x384xf32>
    %cst_29 = arith.constant 1.000000e+00 : f32
    %172 = vector.broadcast %cst_29 : f32 to vector<8x384xf32>
    %173 = arith.addf %172, %171 : vector<8x384xf32>
    %174 = arith.divf %172, %173 : vector<8x384xf32>
    %175 = vector.extract_strided_slice %168 {offsets = [0, 384], sizes = [8, 128], strides = [1, 1]} : vector<8x512xf32> to vector<8x128xf32>
    %176 = math.tanh %175 : vector<8x128xf32>
    %177 = vector.extract_strided_slice %174 {offsets = [0, 0], sizes = [8, 128], strides = [1, 1]} : vector<8x384xf32> to vector<8x128xf32>
    %178 = vector.extract_strided_slice %174 {offsets = [0, 128], sizes = [8, 128], strides = [1, 1]} : vector<8x384xf32> to vector<8x128xf32>
    %179 = vector.extract_strided_slice %174 {offsets = [0, 256], sizes = [8, 128], strides = [1, 1]} : vector<8x384xf32> to vector<8x128xf32>
    %180 = arith.mulf %178, %143 : vector<8x128xf32>
    %181 = arith.mulf %177, %176 : vector<8x128xf32>
    %182 = arith.addf %180, %181 : vector<8x128xf32>
    %183 = math.tanh %182 : vector<8x128xf32>
    %184 = arith.mulf %179, %183 : vector<8x128xf32>
    %185 = tpu.concatenate %184, %165 in 1 : vector<8x128xf32>, vector<8x128xf32> -> vector<8x256xf32>
    %cst_30 = arith.constant dense<0.000000e+00> : vector<8x512xf32>
    %186 = tpu.matmul %185, %7, %cst_30 {dimension_numbers = #tpu.dot_dimension_numbers<[1], [0], [0], [1], [0, 0, 1, 1], [], []>} : vector<8x256xf32>, vector<256x512xf32>, vector<8x512xf32> -> vector<8x512xf32>
    %187 = vector.broadcast %8 : vector<1x512xf32> to vector<8x512xf32>
    %188 = arith.addf %186, %187 : vector<8x512xf32>
    %189 = vector.extract_strided_slice %188 {offsets = [0, 0], sizes = [8, 384], strides = [1, 1]} : vector<8x512xf32> to vector<8x384xf32>
    %190 = arith.negf %189 : vector<8x384xf32>
    %191 = math.exp %190 : vector<8x384xf32>
    %cst_31 = arith.constant 1.000000e+00 : f32
    %192 = vector.broadcast %cst_31 : f32 to vector<8x384xf32>
    %193 = arith.addf %192, %191 : vector<8x384xf32>
    %194 = arith.divf %192, %193 : vector<8x384xf32>
    %195 = vector.extract_strided_slice %188 {offsets = [0, 384], sizes = [8, 128], strides = [1, 1]} : vector<8x512xf32> to vector<8x128xf32>
    %196 = math.tanh %195 : vector<8x128xf32>
    %197 = vector.extract_strided_slice %194 {offsets = [0, 0], sizes = [8, 128], strides = [1, 1]} : vector<8x384xf32> to vector<8x128xf32>
    %198 = vector.extract_strided_slice %194 {offsets = [0, 128], sizes = [8, 128], strides = [1, 1]} : vector<8x384xf32> to vector<8x128xf32>
    %199 = vector.extract_strided_slice %194 {offsets = [0, 256], sizes = [8, 128], strides = [1, 1]} : vector<8x384xf32> to vector<8x128xf32>
    %200 = arith.mulf %198, %163 : vector<8x128xf32>
    %201 = arith.mulf %197, %196 : vector<8x128xf32>
    %202 = arith.addf %200, %201 : vector<8x128xf32>
    %203 = math.tanh %202 : vector<8x128xf32>
    %204 = arith.mulf %199, %203 : vector<8x128xf32>
    %205 = vector.extract_strided_slice %5 {offsets = [40, 0], sizes = [8, 512], strides = [1, 1]} : vector<64x512xf32> to vector<8x512xf32>
    %cst_32 = arith.constant dense<0.000000e+00> : vector<8x512xf32>
    %206 = tpu.matmul %184, %6, %cst_32 {dimension_numbers = #tpu.dot_dimension_numbers<[1], [0], [0], [1], [0, 0, 1, 1], [], []>} : vector<8x128xf32>, vector<128x512xf32>, vector<8x512xf32> -> vector<8x512xf32>
    %207 = arith.addf %205, %206 : vector<8x512xf32>
    %208 = vector.extract_strided_slice %207 {offsets = [0, 0], sizes = [8, 384], strides = [1, 1]} : vector<8x512xf32> to vector<8x384xf32>
    %209 = arith.negf %208 : vector<8x384xf32>
    %210 = math.exp %209 : vector<8x384xf32>
    %cst_33 = arith.constant 1.000000e+00 : f32
    %211 = vector.broadcast %cst_33 : f32 to vector<8x384xf32>
    %212 = arith.addf %211, %210 : vector<8x384xf32>
    %213 = arith.divf %211, %212 : vector<8x384xf32>
    %214 = vector.extract_strided_slice %207 {offsets = [0, 384], sizes = [8, 128], strides = [1, 1]} : vector<8x512xf32> to vector<8x128xf32>
    %215 = math.tanh %214 : vector<8x128xf32>
    %216 = vector.extract_strided_slice %213 {offsets = [0, 0], sizes = [8, 128], strides = [1, 1]} : vector<8x384xf32> to vector<8x128xf32>
    %217 = vector.extract_strided_slice %213 {offsets = [0, 128], sizes = [8, 128], strides = [1, 1]} : vector<8x384xf32> to vector<8x128xf32>
    %218 = vector.extract_strided_slice %213 {offsets = [0, 256], sizes = [8, 128], strides = [1, 1]} : vector<8x384xf32> to vector<8x128xf32>
    %219 = arith.mulf %217, %182 : vector<8x128xf32>
    %220 = arith.mulf %216, %215 : vector<8x128xf32>
    %221 = arith.addf %219, %220 : vector<8x128xf32>
    %222 = math.tanh %221 : vector<8x128xf32>
    %223 = arith.mulf %218, %222 : vector<8x128xf32>
    %224 = tpu.concatenate %223, %204 in 1 : vector<8x128xf32>, vector<8x128xf32> -> vector<8x256xf32>
    %cst_34 = arith.constant dense<0.000000e+00> : vector<8x512xf32>
    %225 = tpu.matmul %224, %7, %cst_34 {dimension_numbers = #tpu.dot_dimension_numbers<[1], [0], [0], [1], [0, 0, 1, 1], [], []>} : vector<8x256xf32>, vector<256x512xf32>, vector<8x512xf32> -> vector<8x512xf32>
    %226 = vector.broadcast %8 : vector<1x512xf32> to vector<8x512xf32>
    %227 = arith.addf %225, %226 : vector<8x512xf32>
    %228 = vector.extract_strided_slice %227 {offsets = [0, 0], sizes = [8, 384], strides = [1, 1]} : vector<8x512xf32> to vector<8x384xf32>
    %229 = arith.negf %228 : vector<8x384xf32>
    %230 = math.exp %229 : vector<8x384xf32>
    %cst_35 = arith.constant 1.000000e+00 : f32
    %231 = vector.broadcast %cst_35 : f32 to vector<8x384xf32>
    %232 = arith.addf %231, %230 : vector<8x384xf32>
    %233 = arith.divf %231, %232 : vector<8x384xf32>
    %234 = vector.extract_strided_slice %227 {offsets = [0, 384], sizes = [8, 128], strides = [1, 1]} : vector<8x512xf32> to vector<8x128xf32>
    %235 = math.tanh %234 : vector<8x128xf32>
    %236 = vector.extract_strided_slice %233 {offsets = [0, 0], sizes = [8, 128], strides = [1, 1]} : vector<8x384xf32> to vector<8x128xf32>
    %237 = vector.extract_strided_slice %233 {offsets = [0, 128], sizes = [8, 128], strides = [1, 1]} : vector<8x384xf32> to vector<8x128xf32>
    %238 = vector.extract_strided_slice %233 {offsets = [0, 256], sizes = [8, 128], strides = [1, 1]} : vector<8x384xf32> to vector<8x128xf32>
    %239 = arith.mulf %237, %202 : vector<8x128xf32>
    %240 = arith.mulf %236, %235 : vector<8x128xf32>
    %241 = arith.addf %239, %240 : vector<8x128xf32>
    %242 = math.tanh %241 : vector<8x128xf32>
    %243 = arith.mulf %238, %242 : vector<8x128xf32>
    %244 = vector.extract_strided_slice %5 {offsets = [48, 0], sizes = [8, 512], strides = [1, 1]} : vector<64x512xf32> to vector<8x512xf32>
    %cst_36 = arith.constant dense<0.000000e+00> : vector<8x512xf32>
    %245 = tpu.matmul %223, %6, %cst_36 {dimension_numbers = #tpu.dot_dimension_numbers<[1], [0], [0], [1], [0, 0, 1, 1], [], []>} : vector<8x128xf32>, vector<128x512xf32>, vector<8x512xf32> -> vector<8x512xf32>
    %246 = arith.addf %244, %245 : vector<8x512xf32>
    %247 = vector.extract_strided_slice %246 {offsets = [0, 0], sizes = [8, 384], strides = [1, 1]} : vector<8x512xf32> to vector<8x384xf32>
    %248 = arith.negf %247 : vector<8x384xf32>
    %249 = math.exp %248 : vector<8x384xf32>
    %cst_37 = arith.constant 1.000000e+00 : f32
    %250 = vector.broadcast %cst_37 : f32 to vector<8x384xf32>
    %251 = arith.addf %250, %249 : vector<8x384xf32>
    %252 = arith.divf %250, %251 : vector<8x384xf32>
    %253 = vector.extract_strided_slice %246 {offsets = [0, 384], sizes = [8, 128], strides = [1, 1]} : vector<8x512xf32> to vector<8x128xf32>
    %254 = math.tanh %253 : vector<8x128xf32>
    %255 = vector.extract_strided_slice %252 {offsets = [0, 0], sizes = [8, 128], strides = [1, 1]} : vector<8x384xf32> to vector<8x128xf32>
    %256 = vector.extract_strided_slice %252 {offsets = [0, 128], sizes = [8, 128], strides = [1, 1]} : vector<8x384xf32> to vector<8x128xf32>
    %257 = vector.extract_strided_slice %252 {offsets = [0, 256], sizes = [8, 128], strides = [1, 1]} : vector<8x384xf32> to vector<8x128xf32>
    %258 = arith.mulf %256, %221 : vector<8x128xf32>
    %259 = arith.mulf %255, %254 : vector<8x128xf32>
    %260 = arith.addf %258, %259 : vector<8x128xf32>
    %261 = math.tanh %260 : vector<8x128xf32>
    %262 = arith.mulf %257, %261 : vector<8x128xf32>
    %263 = tpu.concatenate %262, %243 in 1 : vector<8x128xf32>, vector<8x128xf32> -> vector<8x256xf32>
    %cst_38 = arith.constant dense<0.000000e+00> : vector<8x512xf32>
    %264 = tpu.matmul %263, %7, %cst_38 {dimension_numbers = #tpu.dot_dimension_numbers<[1], [0], [0], [1], [0, 0, 1, 1], [], []>} : vector<8x256xf32>, vector<256x512xf32>, vector<8x512xf32> -> vector<8x512xf32>
    %265 = vector.broadcast %8 : vector<1x512xf32> to vector<8x512xf32>
    %266 = arith.addf %264, %265 : vector<8x512xf32>
    %267 = vector.extract_strided_slice %266 {offsets = [0, 0], sizes = [8, 384], strides = [1, 1]} : vector<8x512xf32> to vector<8x384xf32>
    %268 = arith.negf %267 : vector<8x384xf32>
    %269 = math.exp %268 : vector<8x384xf32>
    %cst_39 = arith.constant 1.000000e+00 : f32
    %270 = vector.broadcast %cst_39 : f32 to vector<8x384xf32>
    %271 = arith.addf %270, %269 : vector<8x384xf32>
    %272 = arith.divf %270, %271 : vector<8x384xf32>
    %273 = vector.extract_strided_slice %266 {offsets = [0, 384], sizes = [8, 128], strides = [1, 1]} : vector<8x512xf32> to vector<8x128xf32>
    %274 = math.tanh %273 : vector<8x128xf32>
    %275 = vector.extract_strided_slice %272 {offsets = [0, 0], sizes = [8, 128], strides = [1, 1]} : vector<8x384xf32> to vector<8x128xf32>
    %276 = vector.extract_strided_slice %272 {offsets = [0, 128], sizes = [8, 128], strides = [1, 1]} : vector<8x384xf32> to vector<8x128xf32>
    %277 = vector.extract_strided_slice %272 {offsets = [0, 256], sizes = [8, 128], strides = [1, 1]} : vector<8x384xf32> to vector<8x128xf32>
    %278 = arith.mulf %276, %241 : vector<8x128xf32>
    %279 = arith.mulf %275, %274 : vector<8x128xf32>
    %280 = arith.addf %278, %279 : vector<8x128xf32>
    %281 = math.tanh %280 : vector<8x128xf32>
    %282 = arith.mulf %277, %281 : vector<8x128xf32>
    %283 = vector.extract_strided_slice %5 {offsets = [56, 0], sizes = [8, 512], strides = [1, 1]} : vector<64x512xf32> to vector<8x512xf32>
    %cst_40 = arith.constant dense<0.000000e+00> : vector<8x512xf32>
    %284 = tpu.matmul %262, %6, %cst_40 {dimension_numbers = #tpu.dot_dimension_numbers<[1], [0], [0], [1], [0, 0, 1, 1], [], []>} : vector<8x128xf32>, vector<128x512xf32>, vector<8x512xf32> -> vector<8x512xf32>
    %285 = arith.addf %283, %284 : vector<8x512xf32>
    %286 = vector.extract_strided_slice %285 {offsets = [0, 0], sizes = [8, 384], strides = [1, 1]} : vector<8x512xf32> to vector<8x384xf32>
    %287 = arith.negf %286 : vector<8x384xf32>
    %288 = math.exp %287 : vector<8x384xf32>
    %cst_41 = arith.constant 1.000000e+00 : f32
    %289 = vector.broadcast %cst_41 : f32 to vector<8x384xf32>
    %290 = arith.addf %289, %288 : vector<8x384xf32>
    %291 = arith.divf %289, %290 : vector<8x384xf32>
    %292 = vector.extract_strided_slice %285 {offsets = [0, 384], sizes = [8, 128], strides = [1, 1]} : vector<8x512xf32> to vector<8x128xf32>
    %293 = math.tanh %292 : vector<8x128xf32>
    %294 = vector.extract_strided_slice %291 {offsets = [0, 0], sizes = [8, 128], strides = [1, 1]} : vector<8x384xf32> to vector<8x128xf32>
    %295 = vector.extract_strided_slice %291 {offsets = [0, 128], sizes = [8, 128], strides = [1, 1]} : vector<8x384xf32> to vector<8x128xf32>
    %296 = vector.extract_strided_slice %291 {offsets = [0, 256], sizes = [8, 128], strides = [1, 1]} : vector<8x384xf32> to vector<8x128xf32>
    %297 = arith.mulf %295, %260 : vector<8x128xf32>
    %298 = arith.mulf %294, %293 : vector<8x128xf32>
    %299 = arith.addf %297, %298 : vector<8x128xf32>
    %300 = math.tanh %299 : vector<8x128xf32>
    %301 = arith.mulf %296, %300 : vector<8x128xf32>
    %302 = tpu.concatenate %301, %282 in 1 : vector<8x128xf32>, vector<8x128xf32> -> vector<8x256xf32>
    %cst_42 = arith.constant dense<0.000000e+00> : vector<8x512xf32>
    %303 = tpu.matmul %302, %7, %cst_42 {dimension_numbers = #tpu.dot_dimension_numbers<[1], [0], [0], [1], [0, 0, 1, 1], [], []>} : vector<8x256xf32>, vector<256x512xf32>, vector<8x512xf32> -> vector<8x512xf32>
    %304 = vector.broadcast %8 : vector<1x512xf32> to vector<8x512xf32>
    %305 = arith.addf %303, %304 : vector<8x512xf32>
    %306 = vector.extract_strided_slice %305 {offsets = [0, 0], sizes = [8, 384], strides = [1, 1]} : vector<8x512xf32> to vector<8x384xf32>
    %307 = arith.negf %306 : vector<8x384xf32>
    %308 = math.exp %307 : vector<8x384xf32>
    %cst_43 = arith.constant 1.000000e+00 : f32
    %309 = vector.broadcast %cst_43 : f32 to vector<8x384xf32>
    %310 = arith.addf %309, %308 : vector<8x384xf32>
    %311 = arith.divf %309, %310 : vector<8x384xf32>
    %312 = vector.extract_strided_slice %305 {offsets = [0, 384], sizes = [8, 128], strides = [1, 1]} : vector<8x512xf32> to vector<8x128xf32>
    %313 = math.tanh %312 : vector<8x128xf32>
    %314 = vector.extract_strided_slice %311 {offsets = [0, 0], sizes = [8, 128], strides = [1, 1]} : vector<8x384xf32> to vector<8x128xf32>
    %315 = vector.extract_strided_slice %311 {offsets = [0, 128], sizes = [8, 128], strides = [1, 1]} : vector<8x384xf32> to vector<8x128xf32>
    %316 = vector.extract_strided_slice %311 {offsets = [0, 256], sizes = [8, 128], strides = [1, 1]} : vector<8x384xf32> to vector<8x128xf32>
    %317 = arith.mulf %315, %280 : vector<8x128xf32>
    %318 = arith.mulf %314, %313 : vector<8x128xf32>
    %319 = arith.addf %317, %318 : vector<8x128xf32>
    %320 = math.tanh %319 : vector<8x128xf32>
    %321 = arith.mulf %316, %320 : vector<8x128xf32>
    %c0_44 = arith.constant 0 : index
    %c0_45 = arith.constant 0 : index
    %322 = vector.load %arg6[%c0_44, %c0_45] : memref<1x128xf32, #tpu.memory_space<vmem>>, vector<1x128xf32>
    %323 = vector.broadcast %322 : vector<1x128xf32> to vector<8x128xf32>
    %324 = arith.mulf %321, %323 : vector<8x128xf32>
    %cst_46 = arith.constant dense<0.000000e+00> : vector<8xf32>
    %325 = vector.multi_reduction <add>, %324, %cst_46 [1] : vector<8x128xf32> to vector<8xf32>
    %326 = vector.shape_cast %325 : vector<8xf32> to vector<8x1xf32>
    %c0_47 = arith.constant 0 : index
    %c0_48 = arith.constant 0 : index
    %327 = vector.load %arg7[%c0_47, %c0_48] : memref<1x1xf32, #tpu.memory_space<vmem>>, vector<1x1xf32>
    %328 = vector.broadcast %327 : vector<1x1xf32> to vector<8x1xf32>
    %329 = arith.addf %326, %328 : vector<8x1xf32>
    %c0_49 = arith.constant 0 : index
    %c0_50 = arith.constant 0 : index
    %330 = vector.load %arg8[%c0_49, %c0_50] : memref<8x1xf32, #tpu.memory_space<vmem>>, vector<8x1xf32>
    tpu.vector_store %arg8[%c0_49, %c0_50], %329 {strides = array<i32>} : memref<8x1xf32, #tpu.memory_space<vmem>>, vector<8x1xf32>,
    return
  }
}

</mosaic_0001>

<bundles_post_ra>
// kernel: tpu_custom_call.1
= control target key start
LH: loop header
LB: loop body
LE: loop exit
PB: predicated region body
PF: predicated region fallthrough
CT: control target
= control target key end

     0   :  { %s6569_s0 = inlined_call_operand.vmem [shape: f32[64,2], index: 0, kind: input, shape index: {}]   ;;  %s6570_s1 = inlined_call_operand.vmem [shape: f32[2,512], index: 1, kind: input, shape index: {}]   ;;  %s6571_s2 = inlined_call_operand.hbm [shape: f32[128,512], index: 2, kind: input, shape index: {}]   ;;  %s6572_s3 = inlined_call_operand.vmem [shape: f32[1,512], index: 3, kind: input, shape index: {}]   ;;  %s6573_s4 = inlined_call_operand.hbm [shape: f32[256,512], index: 4, kind: input, shape index: {}]   ;;  %s6574_s5 = inlined_call_operand.vmem [shape: f32[1,512], index: 5, kind: input, shape index: {}]   ;;  %s6575_s6 = inlined_call_operand.vmem [shape: f32[1,128], index: 6, kind: input, shape index: {}]   ;;  %s6576_s7 = inlined_call_operand.<no memory space> [shape: f32[1,1], index: 7, kind: input, shape index: {}]   ;;  %s6577_s8 = inlined_call_operand.vmem [shape: f32[8,1], index: 8, kind: output, shape index: {}]  }
   0x1   :  { %v13_v0 = vstv %s6576_s7 }
   0x2   :  { %14 = vst [vmem:[#allocation2] sm:$0x1] %v13_v0 }
   0x3   :  { %15 = vsyncpa [#allocation4], 0 }
   0x4   :  { %16 = vsyncpa [#allocation6], 0  ;;  %s5277_s29 = smov [#allocation3]   ;;  %s5229_s11 = scalar_lea.hbm %s6571_s2, 8192 }
   0x5   :  { %s26_s30 = sshll.u32 %s5277_s29, 4  ;;  %p5230_p0 = scmp.ne.s32.totalorder %s6571_s2, %s5229_s11  ;;  %s27_s30 = int_to_ptr.vmem [resolvable:$true] %s26_s30 }
   0x6   :  { %p5233_p1 = scmp.lt.u32.totalorder %s5229_s11, %s6571_s2 }
   0x8   :  { %p5235_p2 = pnand %p5233_p1, %p5230_p0 }
   0xa   :  { %5238 = shalt.err (!%p5235_p2)
}
   0xb   :  { %s5239_s7 = scalar_lea.vmem %s27_s30, 8192  ;;  %p5244_p4 = scmp.lt.s32.totalorder %s27_s30, %s27_s30 }
   0xc   :  { %p5240_p3 = scmp.ne.s32.totalorder %s27_s30, %s5239_s7  ;;  %p5245_p5 = scmp.lt.s32.totalorder %s5239_s7, %s5239_s7 }
   0xe   :  { %p5246_p6 = por %p5245_p5, %p5244_p4 }
  0x10   :  { %p5247_p7 = pnand %p5246_p6, %p5240_p3 }
  0x12   :  { %5250 = shalt.err (!%p5247_p7)
}
  0x13   :  { %s5278_s16 = smov 512   ;;  %s5279_s17 = smov 32  }
  0x14   :  { %32 = dma.hbm_to_vmem [thread:$0]  %s6571_s2, 8192, %s27_s30, [#allocation4], %s5278_s16, %s5278_s16, %s5279_s17  }
  0x15   :  { %s5280_s20 = smov [#allocation5]   ;;  %s5251_s24 = scalar_lea.hbm %s6573_s4, 16384 }
  0x16   :  { %s40_s21 = sshll.u32 %s5280_s20, 4  ;;  %p5252_p8 = scmp.ne.s32.totalorder %s6573_s4, %s5251_s24  ;;  %s41_s21 = int_to_ptr.vmem [resolvable:$true] %s40_s21 }
  0x17   :  { %p5255_p9 = scmp.lt.u32.totalorder %s5251_s24, %s6573_s4 }
  0x19   :  { %p5257_p10 = pnand %p5255_p9, %p5252_p8 }
  0x1b   :  { %5260 = shalt.err (!%p5257_p10)
}
  0x1c   :  { %s5261_s29 = scalar_lea.vmem %s41_s21, 16384  ;;  %p5266_p12 = scmp.lt.s32.totalorder %s41_s21, %s41_s21 }
  0x1d   :  { %p5262_p11 = scmp.ne.s32.totalorder %s41_s21, %s5261_s29  ;;  %p5267_p13 = scmp.lt.s32.totalorder %s5261_s29, %s5261_s29 }
  0x1f   :  { %p5268_p0 = por %p5267_p13, %p5266_p12 }
  0x21   :  { %p5269_p1 = pnand %p5268_p0, %p5262_p11 }
  0x23   :  { %5272 = shalt.err (!%p5269_p1)
}
  0x24   :  { %46 = dma.hbm_to_vmem [thread:$0]  %s6573_s4, 16384, %s41_s21, [#allocation6], %s5278_s16, %s5278_s16, %s5279_s17  }
  0x25   :  { %5273 = dma.done.wait [#allocation4], 8192  }
  0x26   :  { %5274 = vsyncadd [#allocation4], 4294959104 }
  0x27   :  { %5275 = dma.done.wait [#allocation6], 16384  }
  0x28   :  { %5276 = vsyncadd [#allocation6], 4294950912  ;;  %v70_v1 = vlaneseq  ;;  %v5281_v2 = vmov 1983009808   ;;  %v6578_v4 = vmov 0.0   ;;  %v67_v8 = vld [vmem:[%s6570_s1] sm:$0xff] }
  0x29   :  { %v93_v3 = vunpack.c.l.s4 %v5281_v2  ;;  %206 = vmatprep.mubr.f32.mxu0 %v6578_v4  ;;  %319 = vmatprep.mubr.f32.mxu1 %v6578_v4  ;;  %v91_v10 = vcombine.high %v67_v8, %v67_v8  ;;  %v369_v11 = vld [vmem:[#allocation3 + $0x8] sm:$0xff]  ;;  %vm133_vm0 = vcmask 1041408   ;;  %v368_v13 = vld [vmem:[#allocation3] sm:$0xff]  ;;  %v371_v17 = vld [vmem:[#allocation3 + $0x18] sm:$0xff]  ;;  %vm108_vm1 = vcmask 15360  }
  0x2a   :  { %v5357_v5 = vshrl.u32 %v70_v1, 7  ;;  %v373_v12 = vld [vmem:[#allocation3 + $0x28] sm:$0xff]  ;;  %v372_v14 = vld [vmem:[#allocation3 + $0x20] sm:$0xff]  ;;  %v375_v18 = vld [vmem:[#allocation3 + $0x38] sm:$0xff]  ;;  %vm3288_vm2 = vcmask 7168  }
  0x2b   :  { %v94_v6 = vunpack.c.0.s8 %v93_v3  ;;  %v59_v19 = vld [vmem:[%s6569_s0] sm:$0xff]  ;;  %v5366_v20 = vpack.c.bf16 %v373_v12, %v369_v11  ;;  %v370_v21 = vld [vmem:[#allocation3 + $0x10] sm:$0xff]  ;;  %v5369_v24 = vpack.c.bf16 %v372_v14, %v368_v13  ;;  %v377_v25 = vld [vmem:[#allocation3 + $0x48] sm:$0xff]  ;;  %v5372_v27 = vpack.c.bf16 %v375_v18, %v371_v17 }
  0x2c   :  { %6714 = vst [vmem:[#allocation9_spill] sm:$0xff] %v5357_v5  ;;  %v374_v22 = vld [vmem:[#allocation3 + $0x30] sm:$0xff]  ;;  %v381_v26 = vld [vmem:[#allocation3 + $0x68] sm:$0xff]  ;;  %v376_v28 = vld [vmem:[#allocation3 + $0x40] sm:$0xff] }
  0x2d   :  { %v97_v7 = vsub.s32 %v94_v6, %v5357_v5  ;;  %6715 = vst [vmem:[#allocation10_spill] sm:$0xff] %v5366_v20  ;;  %6716 = vst [vmem:[#allocation11_spill] sm:$0xff] %v5372_v27  ;;  %v380_v29 = vld [vmem:[#allocation3 + $0x60] sm:$0xff]  ;;  %v5376_v30 = vpack.c.bf16 %v374_v22, %v370_v21  ;;  %v379_v31 = vld [vmem:[#allocation3 + $0x58] sm:$0xff]  ;;  %v5383_v34 = vpack.c.bf16 %v381_v26, %v377_v25 }
  0x2e   :  { %v383_v32 = vld [vmem:[#allocation3 + $0x78] sm:$0xff]  ;;  %v60_v33 = vld [vmem:[%s6569_s0 + $0x8] sm:$0xff]  ;;  %v378_v35 = vld [vmem:[#allocation3 + $0x50] sm:$0xff]  ;;  %v5387_v37 = vpack.c.bf16 %v380_v29, %v376_v28 }
  0x2f   :  { %v98_v9 = vrot.slane %v67_v8, %v97_v7  ;;  %v105_v16 = vrot.slane %v91_v10, %v97_v7  ;;  %v382_v36 = vld [vmem:[#allocation3 + $0x70] sm:$0xff]  ;;  %v385_v38 = vld [vmem:[#allocation3 + $0x88] sm:$0xff]  ;;  %v5391_v40 = vpack.c.bf16 %v383_v32, %v379_v31  ;;  %v384_v41 = vld [vmem:[#allocation3 + $0x80] sm:$0xff] }
  0x30   :  { %v389_v39 = vld [vmem:[#allocation3 + $0xa8] sm:$0xff]  ;;  %v388_v42 = vld [vmem:[#allocation3 + $0xa0] sm:$0xff]  ;;  %v5395_v43 = vpack.c.bf16 %v382_v36, %v378_v35  ;;  %v387_v44 = vld [vmem:[#allocation3 + $0x98] sm:$0xff] }
  0x31   :  { %v106_v15 = vcombine.high %v98_v9, %v98_v9  ;;  %v107_v23 = vcombine.high %v105_v16, %v105_v16  ;;  %v391_v45 = vld [vmem:[#allocation3 + $0xb8] sm:$0xff]  ;;  %v61_v46 = vld [vmem:[%s6569_s0 + $0x10] sm:$0xff]  ;;  %v5402_v47 = vpack.c.bf16 %v389_v39, %v385_v38  ;;  %v5406_v50 = vpack.c.bf16 %v388_v42, %v384_v41  ;;  %v392_v54 = vld [vmem:[#allocation3 + $0xc0] sm:$0xff] }
  0x32   :  { %v386_v48 = vld [vmem:[#allocation3 + $0x90] sm:$0xff]  ;;  %v393_v51 = vld [vmem:[#allocation3 + $0xc8] sm:$0xff]  ;;  %v5410_v53 = vpack.c.bf16 %v391_v45, %v387_v44  ;;  %v396_v55 = vld [vmem:[#allocation3 + $0xe0] sm:$0xff] }
  0x33   :  { %3296 = vmatprep.subr.msk.mxu0 %vm133_vm0, %v106_v15  ;;  %3306 = vmatprep.subr.msk.mxu1 %vm133_vm0, %v107_v23  ;;  %v390_v49 = vld [vmem:[#allocation3 + $0xb0] sm:$0xff]  ;;  %v397_v52 = vld [vmem:[#allocation3 + $0xe8] sm:$0xff]  ;;  %v395_v57 = vld [vmem:[#allocation3 + $0xd8] sm:$0xff]  ;;  %v5425_v63 = vpack.c.bf16 %v396_v55, %v392_v54 }
  0x34   :  { %3297 = vmatpush1.msk.msra.mxu0 %vm133_vm0, %v98_v9  ;;  %3307 = vmatpush1.msk.msra.mxu1 %vm133_vm0, %v105_v16  ;;  %v5414_v56 = vpack.c.bf16 %v390_v49, %v386_v48  ;;  %v399_v58 = vld [vmem:[#allocation3 + $0xf8] sm:$0xff]  ;;  %v5421_v60 = vpack.c.bf16 %v397_v52, %v393_v51  ;;  %v394_v61 = vld [vmem:[#allocation3 + $0xd0] sm:$0xff]  ;;  %v401_v0 = vld [vmem:[#allocation3 + $0x108] sm:$0xff] }
  0x35   :  { %3298 = vmatmul.mubr.msk.f32.vlgmr.msra.gmra.mrb[0].mxu0 %vm108_vm1, %v59_v19  ;;  %3367 = vmatprep.subr.bf16.mxu0 %v5366_v20  ;;  %v62_v59 = vld [vmem:[%s6569_s0 + $0x18] sm:$0xff]  ;;  %v405_v1 = vld [vmem:[#allocation3 + $0x128] sm:$0xff]  ;;  %v5429_v2 = vpack.c.bf16 %v399_v58, %v395_v57  ;;  %v400_v3 = vld [vmem:[#allocation3 + $0x100] sm:$0xff] }
  0x36   :  { %3369 = vmatpush1.bf16.msra.mxu0 %v5369_v24  ;;  %3308 = vmatmul.mubr.msk.f32.vlgmr.msra.gmra.mrb[0].mxu1 %vm108_vm1, %v59_v19  ;;  %v398_v62 = vld [vmem:[#allocation3 + $0xf0] sm:$0xff]  ;;  %v404_v6 = vld [vmem:[#allocation3 + $0x120] sm:$0xff]  ;;  %v403_v8 = vld [vmem:[#allocation3 + $0x118] sm:$0xff]  ;;  %v5440_v11 = vpack.c.bf16 %v405_v1, %v401_v0 }
  0x37   :  { %3399 = vmatprep.subr.bf16.mxu1 %v5372_v27  ;;  %212 = vmatprep.mubr.f32.mxu0 %v6578_v4  ;;  %v5433_v7 = vpack.c.bf16 %v398_v62, %v394_v61  ;;  %v407_v9 = vld [vmem:[#allocation3 + $0x138] sm:$0xff]  ;;  %v402_v12 = vld [vmem:[#allocation3 + $0x110] sm:$0xff]  ;;  %v5444_v14 = vpack.c.bf16 %v404_v6, %v400_v3  ;;  %v409_v15 = vld [vmem:[#allocation3 + $0x148] sm:$0xff] }
  0x38   :  { %3401 = vmatpush1.bf16.msra.mxu1 %v5376_v30  ;;  %3371 = vmatprep.subr.bf16.mxu0 %v5383_v34  ;;  %v63_v10 = vld [vmem:[%s6569_s0 + $0x20] sm:$0xff]  ;;  %v406_v13 = vld [vmem:[#allocation3 + $0x130] sm:$0xff]  ;;  %v413_v16 = vld [vmem:[#allocation3 + $0x168] sm:$0xff]  ;;  %v5448_v17 = vpack.c.bf16 %v407_v9, %v403_v8 }
  0x39   :  { %3299 = vmatmul.mubr.msk.f32.gmra.mrb[2].mxu0 %vm108_vm1, %v60_v33  ;;  %325 = vmatprep.mubr.f32.mxu1 %v6578_v4  ;;  %v408_v18 = vld [vmem:[#allocation3 + $0x140] sm:$0xff]  ;;  %v5452_v21 = vpack.c.bf16 %v406_v13, %v402_v12  ;;  %v411_v22 = vld [vmem:[#allocation3 + $0x158] sm:$0xff]  ;;  %v5459_v26 = vpack.c.bf16 %v413_v16, %v409_v15  ;;  %v410_v28 = vld [vmem:[#allocation3 + $0x150] sm:$0xff] }
  0x3a   :  { %3373 = vmatpush1.bf16.msra.mxu0 %v5387_v37  ;;  %3309 = vmatmul.mubr.msk.f32.gmra.mrb[2].mxu1 %vm108_vm1, %v60_v33  ;;  %v412_v19 = vld [vmem:[#allocation3 + $0x160] sm:$0xff]  ;;  %v415_v23 = vld [vmem:[#allocation3 + $0x178] sm:$0xff]  ;;  %v414_v29 = vld [vmem:[#allocation3 + $0x170] sm:$0xff] }
  0x3b   :  { %3403 = vmatprep.subr.bf16.mxu1 %v5391_v40  ;;  %218 = vmatprep.mubr.f32.mxu0 %v6578_v4  ;;  %v64_v25 = vld [vmem:[%s6569_s0 + $0x28] sm:$0xff]  ;;  %v5463_v31 = vpack.c.bf16 %v412_v19, %v408_v18  ;;  %v5467_v35 = vpack.c.bf16 %v415_v23, %v411_v22  ;;  %v5471_v39 = vpack.c.bf16 %v414_v29, %v410_v28  ;;  %v419_v41 = vld [vmem:[#allocation3 + $0x198] sm:$0xff]  ;;  %v65_v44 = vld [vmem:[%s6569_s0 + $0x30] sm:$0xff] }
  0x3c   :  { %3405 = vmatpush1.bf16.msra.mxu1 %v5395_v43  ;;  %3375 = vmatprep.subr.bf16.mxu0 %v5402_v47  ;;  %v417_v32 = vld [vmem:[#allocation3 + $0x188] sm:$0xff]  ;;  %v416_v36 = vld [vmem:[#allocation3 + $0x180] sm:$0xff]  ;;  %v423_v42 = vld [vmem:[#allocation3 + $0x1b8] sm:$0xff] }
  0x3d   :  { %3300 = vmatmul.mubr.msk.f32.gmra.mrb[4].mxu0 %vm108_vm1, %v61_v46  ;;  %331 = vmatprep.mubr.f32.mxu1 %v6578_v4  ;;  %v421_v33 = vld [vmem:[#allocation3 + $0x1a8] sm:$0xff]  ;;  %v420_v38 = vld [vmem:[#allocation3 + $0x1a0] sm:$0xff]  ;;  %v422_v48 = vld [vmem:[#allocation3 + $0x1b0] sm:$0xff]  ;;  %v5486_v54 = vpack.c.bf16 %v423_v42, %v419_v41 }
  0x3e   :  { %3377 = vmatpush1.bf16.msra.mxu0 %v5406_v50  ;;  %3310 = vmatmul.mubr.msk.f32.gmra.mrb[4].mxu1 %vm108_vm1, %v61_v46  ;;  %v5478_v45 = vpack.c.bf16 %v421_v33, %v417_v32  ;;  %v418_v46 = vld [vmem:[#allocation3 + $0x190] sm:$0xff]  ;;  %v5482_v49 = vpack.c.bf16 %v420_v38, %v416_v36  ;;  %v425_v51 = vld [vmem:[#allocation3 + $0x1c8] sm:$0xff]  ;;  %v424_v55 = vld [vmem:[#allocation3 + $0x1c0] sm:$0xff] }
  0x3f   :  { %3407 = vmatprep.subr.bf16.mxu1 %v5410_v53  ;;  %224 = vmatprep.mubr.f32.mxu0 %v6578_v4  ;;  %v429_v52 = vld [vmem:[#allocation3 + $0x1e8] sm:$0xff]  ;;  %v428_v57 = vld [vmem:[#allocation3 + $0x1e0] sm:$0xff]  ;;  %v5490_v58 = vpack.c.bf16 %v422_v48, %v418_v46  ;;  %v431_v61 = vld [vmem:[#allocation3 + $0x1f8] sm:$0xff] }
  0x40   :  { %3409 = vmatpush1.bf16.msra.mxu1 %v5414_v56  ;;  %3379 = vmatprep.subr.bf16.mxu0 %v5421_v60  ;;  %v66_v62 = vld [vmem:[%s6569_s0 + $0x38] sm:$0xff]  ;;  %v5497_v0 = vpack.c.bf16 %v429_v52, %v425_v51  ;;  %v5501_v6 = vpack.c.bf16 %v428_v57, %v424_v55  ;;  %v433_v8 = vld [vmem:[#allocation5 + $0x8] sm:$0xff]  ;;  %v432_v15 = vld [vmem:[#allocation5] sm:$0xff] }
  0x41   :  { %3301 = vmatmul.mubr.msk.f32.gmra.mrb[6].mxu0 %vm108_vm1, %v62_v59  ;;  %337 = vmatprep.mubr.f32.mxu1 %v6578_v4  ;;  %v426_v1 = vld [vmem:[#allocation3 + $0x1d0] sm:$0xff]  ;;  %v437_v9 = vld [vmem:[#allocation5 + $0x28] sm:$0xff]  ;;  %v439_v13 = vld [vmem:[#allocation5 + $0x38] sm:$0xff] }
  0x42   :  { %3381 = vmatpush1.bf16.msra.mxu0 %v5425_v63  ;;  %3311 = vmatmul.mubr.msk.f32.gmra.mrb[6].mxu1 %vm108_vm1, %v62_v59  ;;  %v427_v59 = vld [vmem:[#allocation3 + $0x1d8] sm:$0xff]  ;;  %v430_v3 = vld [vmem:[#allocation3 + $0x1f0] sm:$0xff]  ;;  %v436_v16 = vld [vmem:[#allocation5 + $0x20] sm:$0xff]  ;;  %v5513_v23 = vpack.c.bf16 %v437_v9, %v433_v8 }
  0x43   :  { %3411 = vmatprep.subr.bf16.mxu1 %v5429_v2  ;;  %230 = vmatprep.mubr.f32.mxu0 %v6578_v4  ;;  %v5505_v12 = vpack.c.bf16 %v431_v61, %v427_v59  ;;  %v5509_v18 = vpack.c.bf16 %v430_v3, %v426_v1  ;;  %v441_v19 = vld [vmem:[#allocation5 + $0x48] sm:$0xff]  ;;  %v438_v28 = vld [vmem:[#allocation5 + $0x30] sm:$0xff]  ;;  %v5519_v32 = vpack.c.bf16 %v436_v16, %v432_v15  ;;  %v443_v33 = vld [vmem:[#allocation5 + $0x58] sm:$0xff] }
  0x44   :  { %3413 = vmatpush1.bf16.msra.mxu1 %v5433_v7  ;;  %3383 = vmatprep.subr.bf16.mxu0 %v5440_v11  ;;  %v445_v22 = vld [vmem:[#allocation5 + $0x68] sm:$0xff]  ;;  %v447_v36 = vld [vmem:[#allocation5 + $0x78] sm:$0xff]  ;;  %v440_v41 = vld [vmem:[#allocation5 + $0x40] sm:$0xff] }
  0x45   :  { %3302 = vmatmul.mubr.msk.f32.gmra.mrb[8].mxu0 %vm108_vm1, %v63_v10  ;;  %343 = vmatprep.mubr.f32.mxu1 %v6578_v4  ;;  %v5523_v38 = vpack.c.bf16 %v445_v22, %v441_v19  ;;  %v444_v42 = vld [vmem:[#allocation5 + $0x60] sm:$0xff]  ;;  %v449_v46 = vld [vmem:[#allocation5 + $0x88] sm:$0xff]  ;;  %v5531_v51 = vpack.c.bf16 %v447_v36, %v443_v33  ;;  %v442_v52 = vld [vmem:[#allocation5 + $0x50] sm:$0xff] }
  0x46   :  { %3385 = vmatpush1.bf16.msra.mxu0 %v5444_v14  ;;  %3312 = vmatmul.mubr.msk.f32.gmra.mrb[8].mxu1 %vm108_vm1, %v63_v10  ;;  %v435_v10 = vld [vmem:[#allocation5 + $0x18] sm:$0xff]  ;;  %v453_v48 = vld [vmem:[#allocation5 + $0xa8] sm:$0xff]  ;;  %v446_v55 = vld [vmem:[#allocation5 + $0x70] sm:$0xff]  ;;  %v5535_v57 = vpack.c.bf16 %v444_v42, %v440_v41 }
  0x47   :  { %3415 = vmatprep.subr.bf16.mxu1 %v5448_v17  ;;  %236 = vmatprep.mubr.f32.mxu0 %v6578_v4  ;;  %v5517_v29 = vpack.c.bf16 %v439_v13, %v435_v10  ;;  %v451_v59 = vld [vmem:[#allocation5 + $0x98] sm:$0xff]  ;;  %v448_v1 = vld [vmem:[#allocation5 + $0x80] sm:$0xff]  ;;  %v5542_v8 = vpack.c.bf16 %v446_v55, %v442_v52  ;;  %v457_v9 = vld [vmem:[#allocation5 + $0xc8] sm:$0xff] }
  0x48   :  { %3417 = vmatpush1.bf16.msra.mxu1 %v5452_v21  ;;  %3387 = vmatprep.subr.bf16.mxu0 %v5459_v26  ;;  %v455_v61 = vld [vmem:[#allocation5 + $0xb8] sm:$0xff]  ;;  %v452_v3 = vld [vmem:[#allocation5 + $0xa0] sm:$0xff]  ;;  %v461_v10 = vld [vmem:[#allocation5 + $0xe8] sm:$0xff] }
  0x49   :  { %3303 = vmatmul.mubr.msk.f32.gmra.mrb[10].mxu0 %vm108_vm1, %v64_v25  ;;  %349 = vmatprep.mubr.f32.mxu1 %v6578_v4  ;;  %v5546_v13 = vpack.c.bf16 %v455_v61, %v451_v59  ;;  %v450_v15 = vld [vmem:[#allocation5 + $0x90] sm:$0xff]  ;;  %v5550_v19 = vpack.c.bf16 %v452_v3, %v448_v1  ;;  %v459_v22 = vld [vmem:[#allocation5 + $0xd8] sm:$0xff]  ;;  %v456_v33 = vld [vmem:[#allocation5 + $0xc0] sm:$0xff] }
  0x4a   :  { %3389 = vmatpush1.bf16.msra.mxu0 %v5463_v31  ;;  %3313 = vmatmul.mubr.msk.f32.gmra.mrb[10].mxu1 %vm108_vm1, %v64_v25  ;;  %v434_v25 = vld [vmem:[#allocation5 + $0x10] sm:$0xff]  ;;  %v460_v36 = vld [vmem:[#allocation5 + $0xe0] sm:$0xff]  ;;  %v465_v42 = vld [vmem:[#allocation5 + $0x108] sm:$0xff] }
  0x4b   :  { %3419 = vmatprep.subr.bf16.mxu1 %v5467_v35  ;;  %242 = vmatprep.mubr.f32.mxu0 %v6578_v4  ;;  %6717 = vst [vmem:[#allocation12_spill] sm:$0xff] %v5546_v13  ;;  %v454_v16 = vld [vmem:[#allocation5 + $0xb0] sm:$0xff]  ;;  %6718 = vst [vmem:[#allocation13_spill] sm:$0xff] %v5550_v19  ;;  %v5562_v59 = vpack.c.bf16 %v460_v36, %v456_v33  ;;  %v467_v61 = vld [vmem:[#allocation5 + $0x118] sm:$0xff] }
  0x4c   :  { %3421 = vmatpush1.bf16.msra.mxu1 %v5471_v39  ;;  %3391 = vmatprep.subr.bf16.mxu0 %v5478_v45  ;;  %v5556_v41 = vpack.c.bf16 %v454_v16, %v450_v15  ;;  %v458_v52 = vld [vmem:[#allocation5 + $0xd0] sm:$0xff]  ;;  %v471_v1 = vld [vmem:[#allocation5 + $0x138] sm:$0xff] }
  0x4d   :  { %3304 = vmatmul.mubr.msk.f32.gmra.mrb[12].mxu0 %vm108_vm1, %v65_v44  ;;  %355 = vmatprep.mubr.f32.mxu1 %v6578_v4  ;;  %v462_v55 = vld [vmem:[#allocation5 + $0xf0] sm:$0xff]  ;;  %6722 = vst [vmem:[#allocation17_spill] sm:$0xff] %v5562_v59  ;;  %v5571_v16 = vpack.c.bf16 %v471_v1, %v467_v61  ;;  %v479_v61 = vld [vmem:[#allocation5 + $0x178] sm:$0xff] }
  0x4e   :  { %3393 = vmatpush1.bf16.msra.mxu0 %v5482_v49  ;;  %3314 = vmatmul.mubr.msk.f32.gmra.mrb[12].mxu1 %vm108_vm1, %v65_v44  ;;  %v5527_v44 = vpack.c.bf16 %v438_v28, %v434_v25  ;;  %v463_v25 = vld [vmem:[#allocation5 + $0xf8] sm:$0xff]  ;;  %v5553_v28 = vpack.c.bf16 %v461_v10, %v457_v9  ;;  %6720 = vst [vmem:[#allocation15_spill] sm:$0xff] %v5556_v41  ;;  %v464_v9 = vld [vmem:[#allocation5 + $0x100] sm:$0xff] }
  0x4f   :  { %3423 = vmatprep.subr.bf16.mxu1 %v5486_v54  ;;  %248 = vmatprep.mubr.f32.mxu0 %v6578_v4  ;;  %v468_v10 = vld [vmem:[#allocation5 + $0x120] sm:$0xff]  ;;  %v5568_v15 = vpack.c.bf16 %v462_v55, %v458_v52  ;;  %6725 = vst [vmem:[#allocation20_spill] sm:$0xff] %v5571_v16  ;;  %v475_v52 = vld [vmem:[#allocation5 + $0x158] sm:$0xff] }
  0x50   :  { %3425 = vmatpush1.bf16.msra.mxu1 %v5490_v58  ;;  %3395 = vmatprep.subr.bf16.mxu0 %v5497_v0  ;;  %6719 = vst [vmem:[#allocation14_spill] sm:$0xff] %v5553_v28  ;;  %v5574_v33 = vpack.c.bf16 %v468_v10, %v464_v9  ;;  %v5585_v1 = vpack.c.bf16 %v479_v61, %v475_v52  ;;  %v472_v9 = vld [vmem:[#allocation5 + $0x140] sm:$0xff]  ;;  %v487_v61 = vld [vmem:[#allocation5 + $0x1b8] sm:$0xff] }
  0x51   :  { %3305 = vmatmul.mubr.msk.f32.gmra.mrb[14].mxu0 %vm108_vm1, %v66_v62  ;;  %361 = vmatprep.mubr.f32.mxu1 %v6578_v4  ;;  %6724 = vst [vmem:[#allocation19_spill] sm:$0xff] %v5568_v15  ;;  %v476_v10 = vld [vmem:[#allocation5 + $0x160] sm:$0xff] }
  0x52   :  { %3397 = vmatpush1.bf16.msra.mxu0 %v5501_v6  ;;  %3315 = vmatmul.mubr.msk.f32.gmra.mrb[14].mxu1 %vm108_vm1, %v66_v62  ;;  %v5539_v62 = vpack.c.bf16 %v453_v48, %v449_v46  ;;  %v469_v46 = vld [vmem:[#allocation5 + $0x128] sm:$0xff]  ;;  %v5559_v48 = vpack.c.bf16 %v463_v25, %v459_v22  ;;  %v466_v22 = vld [vmem:[#allocation5 + $0x110] sm:$0xff]  ;;  %6726 = vst [vmem:[#allocation21_spill] sm:$0xff] %v5574_v33  ;;  %6729 = vst [vmem:[#allocation24_spill] sm:$0xff] %v5585_v1 }
  0x53   :  { %3427 = vmatprep.subr.bf16.mxu1 %v5505_v12  ;;  %625 = vmatprep.mubr.f32.mxu0 %v6578_v4  ;;  %v5565_v3 = vpack.c.bf16 %v469_v46, %v465_v42  ;;  %v470_v25 = vld [vmem:[#allocation5 + $0x130] sm:$0xff]  ;;  %v473_v42 = vld [vmem:[#allocation5 + $0x148] sm:$0xff] }
  0x54   :  { %3429 = vmatpush1.bf16.msra.mxu1 %v5509_v18  ;;  %696 = vmatprep.mubr.f32.mxu1 %v6578_v4  ;;  %6721 = vst [vmem:[#allocation16_spill] sm:$0xff] %v5559_v48  ;;  %v5578_v36 = vpack.c.bf16 %v470_v25, %v466_v22  ;;  %v477_v46 = vld [vmem:[#allocation5 + $0x168] sm:$0xff]  ;;  %v474_v22 = vld [vmem:[#allocation5 + $0x150] sm:$0xff]  ;;  %v5589_v25 = vpack.c.bf16 %v476_v10, %v472_v9 }
  0x55   :  { %626 = vmatmul.mubr.f32.vlgmr.msra.gmra.mrb[0].mxu0 %v6578_v4  ;;  %3431 = vmatprep.subr.bf16.mxu0 %v5513_v23  ;;  %6723 = vst [vmem:[#allocation18_spill] sm:$0xff] %v5565_v3  ;;  %v5583_v55 = vpack.c.bf16 %v477_v46, %v473_v42  ;;  %v485_v42 = vld [vmem:[#allocation5 + $0x1a8] sm:$0xff]  ;;  %v483_v46 = vld [vmem:[#allocation5 + $0x198] sm:$0xff]  ;;  %v482_v9 = vld [vmem:[#allocation5 + $0x190] sm:$0xff] }
  0x56   :  { %3495 = vmatprep.subr.bf16.mxu1 %v5517_v29  ;;  %3433 = vmatpush1.bf16.msra.mxu0 %v5519_v32  ;;  %6727 = vst [vmem:[#allocation22_spill] sm:$0xff] %v5578_v36  ;;  %6730 = vst [vmem:[#allocation25_spill] sm:$0xff] %v5589_v25  ;;  %v486_v10 = vld [vmem:[#allocation5 + $0x1b0] sm:$0xff] }
  0x57   :  { %697 = vmatmul.mubr.f32.vlgmr.msra.gmra.mrb[0].mxu1 %v6578_v4  ;;  %3435 = vmatprep.subr.bf16.mxu0 %v5523_v38  ;;  %6728 = vst [vmem:[#allocation23_spill] sm:$0xff] %v5583_v55 }
  0x58   :  { %3497 = vmatpush1.bf16.msra.mxu1 %v5527_v44  ;;  %816 = vmatprep.mubr.f32.mxu0 %v6578_v4 }
  0x59   :  { %3499 = vmatprep.subr.bf16.mxu1 %v5531_v51  ;;  %887 = vmatprep.mubr.f32.mxu1 %v6578_v4  ;;  %v478_v4 = vld [vmem:[#allocation5 + $0x170] sm:$0xff] }
  0x5a   :  { %3437 = vmatpush1.bf16.msra.mxu0 %v5535_v57 }
  0x5b   :  { %3439 = vmatprep.subr.bf16.mxu0 %v5539_v62 }
  0x5c   :  { %3501 = vmatpush1.bf16.msra.mxu1 %v5542_v8 }
  0x5d   :  { %3503 = vmatprep.subr.bf16.mxu1 %v5546_v13 }
  0x5e   :  { %3441 = vmatpush1.bf16.msra.mxu0 %v5550_v19 }
  0x5f   :  { %3443 = vmatprep.subr.bf16.mxu0 %v5553_v28 }
  0x60   :  { %3505 = vmatpush1.bf16.msra.mxu1 %v5556_v41 }
  0x61   :  { %3507 = vmatprep.subr.bf16.mxu1 %v5559_v48 }
  0x62   :  { %3445 = vmatpush1.bf16.msra.mxu0 %v5562_v59  ;;  %v551_v59 = vld [vmem:[#allocation5 + $0x3b8] sm:$0xff] }
  0x63   :  { %3447 = vmatprep.subr.bf16.mxu0 %v5565_v3  ;;  %v5597_v3 = vpack.c.bf16 %v487_v61, %v483_v46  ;;  %v495_v46 = vld [vmem:[#allocation5 + $0x1f8] sm:$0xff] }
  0x64   :  { %3509 = vmatpush1.bf16.msra.mxu1 %v5568_v15  ;;  %v547_v15 = vld [vmem:[#allocation5 + $0x398] sm:$0xff] }
  0x65   :  { %3511 = vmatprep.subr.bf16.mxu1 %v5571_v16  ;;  %v484_v16 = vld [vmem:[#allocation5 + $0x1a0] sm:$0xff]  ;;  %6733 = vst [vmem:[#allocation28_spill] sm:$0xff] %v5597_v3 }
  0x66   :  { %3449 = vmatpush1.bf16.msra.mxu0 %v5574_v33  ;;  %v5591_v33 = vpack.c.bf16 %v478_v4, %v474_v22  ;;  %v5602_v4 = vpack.c.bf16 %v486_v10, %v482_v9  ;;  %v489_v22 = vld [vmem:[#allocation5 + $0x1c8] sm:$0xff]  ;;  %v490_v9 = vld [vmem:[#allocation5 + $0x1d0] sm:$0xff] }
  0x67   :  { %3451 = vmatprep.subr.bf16.mxu0 %v5583_v55  ;;  %v480_v55 = vld [vmem:[#allocation5 + $0x180] sm:$0xff]  ;;  %v494_v10 = vld [vmem:[#allocation5 + $0x1f0] sm:$0xff] }
  0x68   :  { %3513 = vmatpush1.bf16.msra.mxu1 %v5578_v36  ;;  %6731 = vst [vmem:[#allocation26_spill] sm:$0xff] %v5591_v33  ;;  %v481_v36 = vld [vmem:[#allocation5 + $0x188] sm:$0xff]  ;;  %6735 = vst [vmem:[#allocation30_spill] sm:$0xff] %v5602_v4 }
  0x69   :  { %3515 = vmatprep.subr.bf16.mxu1 %v5585_v1  ;;  %v5595_v52 = vpack.c.bf16 %v485_v42, %v481_v36  ;;  %v5599_v1 = vpack.c.bf16 %v484_v16, %v480_v55  ;;  %v493_v36 = vld [vmem:[#allocation5 + $0x1e8] sm:$0xff]  ;;  %v491_v42 = vld [vmem:[#allocation5 + $0x1d8] sm:$0xff]  ;;  %v488_v16 = vld [vmem:[#allocation5 + $0x1c0] sm:$0xff] }
  0x6a   :  { %3453 = vmatpush1.bf16.msra.mxu0 %v5589_v25  ;;  %v492_v55 = vld [vmem:[#allocation5 + $0x1e0] sm:$0xff]  ;;  %v5609_v61 = vpack.c.bf16 %v495_v46, %v491_v42  ;;  %v503_v42 = vld [vmem:[#allocation5 + $0x238] sm:$0xff] }
  0x6b   :  { %6732 = vst [vmem:[#allocation27_spill] sm:$0xff] %v5595_v52  ;;  %6734 = vst [vmem:[#allocation29_spill] sm:$0xff] %v5599_v1  ;;  %3455 = vmatprep.subr.bf16.mxu0 %v5595_v52  ;;  %v5611_v25 = vpack.c.bf16 %v492_v55, %v488_v16  ;;  %v496_v46 = vld [vmem:[#allocation5 + $0x200] sm:$0xff] }
  0x6c   :  { %3517 = vmatpush1.bf16.msra.mxu1 %v5591_v33  ;;  %v5607_v33 = vpack.c.bf16 %v493_v36, %v489_v22  ;;  %6737 = vst [vmem:[#allocation32_spill] sm:$0xff] %v5609_v61  ;;  %v501_v22 = vld [vmem:[#allocation5 + $0x228] sm:$0xff]  ;;  %v499_v36 = vld [vmem:[#allocation5 + $0x218] sm:$0xff]  ;;  %v500_v16 = vld [vmem:[#allocation5 + $0x220] sm:$0xff] }
  0x6d   :  { %3519 = vmatprep.subr.bf16.mxu1 %v5597_v3  ;;  %6738 = vst [vmem:[#allocation33_spill] sm:$0xff] %v5611_v25  ;;  %v5614_v3 = vpack.c.bf16 %v494_v10, %v490_v9  ;;  %v5621_v55 = vpack.c.bf16 %v503_v42, %v499_v36  ;;  %v5623_v52 = vpack.c.bf16 %v500_v16, %v496_v46  ;;  %v498_v9 = vld [vmem:[#allocation5 + $0x210] sm:$0xff]  ;;  %v511_v36 = vld [vmem:[#allocation5 + $0x278] sm:$0xff]  ;;  %v504_v42 = vld [vmem:[#allocation5 + $0x240] sm:$0xff] }
  0x6e   :  { %3457 = vmatpush1.bf16.msra.mxu0 %v5599_v1  ;;  %6736 = vst [vmem:[#allocation31_spill] sm:$0xff] %v5607_v33  ;;  %v502_v10 = vld [vmem:[#allocation5 + $0x230] sm:$0xff]  ;;  %v508_v46 = vld [vmem:[#allocation5 + $0x260] sm:$0xff] }
  0x6f   :  { %3459 = vmatprep.subr.bf16.mxu0 %v5607_v33  ;;  %6739 = vst [vmem:[#allocation34_spill] sm:$0xff] %v5614_v3  ;;  %6741 = vst [vmem:[#allocation36_spill] sm:$0xff] %v5621_v55  ;;  %v5635_v33 = vpack.c.bf16 %v508_v46, %v504_v42  ;;  %v516_v42 = vld [vmem:[#allocation5 + $0x2a0] sm:$0xff] }
  0x70   :  { %3521 = vmatpush1.bf16.msra.mxu1 %v5602_v4  ;;  %v497_v4 = vld [vmem:[#allocation5 + $0x208] sm:$0xff]  ;;  %6742 = vst [vmem:[#allocation37_spill] sm:$0xff] %v5623_v52 }
  0x71   :  { %3523 = vmatprep.subr.bf16.mxu1 %v5609_v61  ;;  %v5619_v1 = vpack.c.bf16 %v501_v22, %v497_v4  ;;  %v5626_v61 = vpack.c.bf16 %v502_v10, %v498_v9  ;;  %v509_v4 = vld [vmem:[#allocation5 + $0x268] sm:$0xff]  ;;  %v507_v22 = vld [vmem:[#allocation5 + $0x258] sm:$0xff]  ;;  %6746 = vst [vmem:[#allocation41_spill] sm:$0xff] %v5635_v33  ;;  %v506_v9 = vld [vmem:[#allocation5 + $0x250] sm:$0xff] }
  0x72   :  { %3461 = vmatpush1.bf16.msra.mxu0 %v5611_v25  ;;  %v5633_v16 = vpack.c.bf16 %v511_v36, %v507_v22  ;;  %v510_v10 = vld [vmem:[#allocation5 + $0x270] sm:$0xff]  ;;  %v519_v22 = vld [vmem:[#allocation5 + $0x2b8] sm:$0xff]  ;;  %v512_v36 = vld [vmem:[#allocation5 + $0x280] sm:$0xff] }
  0x73   :  { %6740 = vst [vmem:[#allocation35_spill] sm:$0xff] %v5619_v1  ;;  %3463 = vmatprep.subr.bf16.mxu0 %v5619_v1  ;;  %6743 = vst [vmem:[#allocation38_spill] sm:$0xff] %v5626_v61  ;;  %v5647_v1 = vpack.c.bf16 %v516_v42, %v512_v36  ;;  %v524_v36 = vld [vmem:[#allocation5 + $0x2e0] sm:$0xff] }
  0x74   :  { %3525 = vmatpush1.bf16.msra.mxu1 %v5614_v3  ;;  %v505_v3 = vld [vmem:[#allocation5 + $0x248] sm:$0xff]  ;;  %6745 = vst [vmem:[#allocation40_spill] sm:$0xff] %v5633_v16 }
  0x75   :  { %3527 = vmatprep.subr.bf16.mxu1 %v5621_v55  ;;  %v5631_v25 = vpack.c.bf16 %v509_v4, %v505_v3  ;;  %v5638_v55 = vpack.c.bf16 %v510_v10, %v506_v9  ;;  %v517_v3 = vld [vmem:[#allocation5 + $0x2a8] sm:$0xff]  ;;  %v515_v4 = vld [vmem:[#allocation5 + $0x298] sm:$0xff]  ;;  %6750 = vst [vmem:[#allocation45_spill] sm:$0xff] %v5647_v1  ;;  %v514_v9 = vld [vmem:[#allocation5 + $0x290] sm:$0xff] }
  0x76   :  { %3465 = vmatpush1.bf16.msra.mxu0 %v5623_v52  ;;  %v5645_v46 = vpack.c.bf16 %v519_v22, %v515_v4  ;;  %v518_v10 = vld [vmem:[#allocation5 + $0x2b0] sm:$0xff]  ;;  %v527_v4 = vld [vmem:[#allocation5 + $0x2f8] sm:$0xff]  ;;  %v520_v22 = vld [vmem:[#allocation5 + $0x2c0] sm:$0xff] }
  0x77   :  { %6744 = vst [vmem:[#allocation39_spill] sm:$0xff] %v5631_v25  ;;  %3467 = vmatprep.subr.bf16.mxu0 %v5631_v25  ;;  %6747 = vst [vmem:[#allocation42_spill] sm:$0xff] %v5638_v55  ;;  %v5659_v25 = vpack.c.bf16 %v524_v36, %v520_v22  ;;  %v532_v22 = vld [vmem:[#allocation5 + $0x320] sm:$0xff] }
  0x78   :  { %3529 = vmatpush1.bf16.msra.mxu1 %v5626_v61  ;;  %v513_v61 = vld [vmem:[#allocation5 + $0x288] sm:$0xff]  ;;  %6749 = vst [vmem:[#allocation44_spill] sm:$0xff] %v5645_v46 }
  0x79   :  { %3531 = vmatprep.subr.bf16.mxu1 %v5633_v16  ;;  %v5643_v52 = vpack.c.bf16 %v517_v3, %v513_v61  ;;  %v5650_v16 = vpack.c.bf16 %v518_v10, %v514_v9  ;;  %v525_v61 = vld [vmem:[#allocation5 + $0x2e8] sm:$0xff]  ;;  %v523_v3 = vld [vmem:[#allocation5 + $0x2d8] sm:$0xff]  ;;  %6754 = vst [vmem:[#allocation49_spill] sm:$0xff] %v5659_v25  ;;  %v522_v9 = vld [vmem:[#allocation5 + $0x2d0] sm:$0xff] }
  0x7a   :  { %3469 = vmatpush1.bf16.msra.mxu0 %v5635_v33  ;;  %v5657_v42 = vpack.c.bf16 %v527_v4, %v523_v3  ;;  %v526_v10 = vld [vmem:[#allocation5 + $0x2f0] sm:$0xff]  ;;  %v535_v3 = vld [vmem:[#allocation5 + $0x338] sm:$0xff]  ;;  %v528_v4 = vld [vmem:[#allocation5 + $0x300] sm:$0xff] }
  0x7b   :  { %6748 = vst [vmem:[#allocation43_spill] sm:$0xff] %v5643_v52  ;;  %3471 = vmatprep.subr.bf16.mxu0 %v5643_v52  ;;  %6751 = vst [vmem:[#allocation46_spill] sm:$0xff] %v5650_v16  ;;  %v5671_v52 = vpack.c.bf16 %v532_v22, %v528_v4  ;;  %v540_v4 = vld [vmem:[#allocation5 + $0x360] sm:$0xff] }
  0x7c   :  { %3533 = vmatpush1.bf16.msra.mxu1 %v5638_v55  ;;  %v521_v55 = vld [vmem:[#allocation5 + $0x2c8] sm:$0xff]  ;;  %6753 = vst [vmem:[#allocation48_spill] sm:$0xff] %v5657_v42 }
  0x7d   :  { %3535 = vmatprep.subr.bf16.mxu1 %v5645_v46  ;;  %v5655_v33 = vpack.c.bf16 %v525_v61, %v521_v55  ;;  %v5662_v46 = vpack.c.bf16 %v526_v10, %v522_v9  ;;  %v533_v55 = vld [vmem:[#allocation5 + $0x328] sm:$0xff]  ;;  %v531_v61 = vld [vmem:[#allocation5 + $0x318] sm:$0xff]  ;;  %6758 = vst [vmem:[#allocation53_spill] sm:$0xff] %v5671_v52  ;;  %v530_v9 = vld [vmem:[#allocation5 + $0x310] sm:$0xff] }
  0x7e   :  { %3473 = vmatpush1.bf16.msra.mxu0 %v5647_v1  ;;  %v5669_v36 = vpack.c.bf16 %v535_v3, %v531_v61  ;;  %v534_v10 = vld [vmem:[#allocation5 + $0x330] sm:$0xff]  ;;  %v543_v61 = vld [vmem:[#allocation5 + $0x378] sm:$0xff]  ;;  %v536_v3 = vld [vmem:[#allocation5 + $0x340] sm:$0xff] }
  0x7f   :  { %6752 = vst [vmem:[#allocation47_spill] sm:$0xff] %v5655_v33  ;;  %3475 = vmatprep.subr.bf16.mxu0 %v5655_v33  ;;  %6755 = vst [vmem:[#allocation50_spill] sm:$0xff] %v5662_v46  ;;  %v5683_v33 = vpack.c.bf16 %v540_v4, %v536_v3  ;;  %v546_v3 = vld [vmem:[#allocation5 + $0x390] sm:$0xff] }
  0x80   :  { %3537 = vmatpush1.bf16.msra.mxu1 %v5650_v16  ;;  %v529_v16 = vld [vmem:[#allocation5 + $0x308] sm:$0xff]  ;;  %6757 = vst [vmem:[#allocation52_spill] sm:$0xff] %v5669_v36 }
  0x81   :  { %3539 = vmatprep.subr.bf16.mxu1 %v5657_v42  ;;  %v5667_v1 = vpack.c.bf16 %v533_v55, %v529_v16  ;;  %v5674_v42 = vpack.c.bf16 %v534_v10, %v530_v9  ;;  %v541_v16 = vld [vmem:[#allocation5 + $0x368] sm:$0xff]  ;;  %v539_v55 = vld [vmem:[#allocation5 + $0x358] sm:$0xff]  ;;  %6762 = vst [vmem:[#allocation57_spill] sm:$0xff] %v5683_v33  ;;  %v538_v9 = vld [vmem:[#allocation5 + $0x350] sm:$0xff] }
  0x82   :  { %3477 = vmatpush1.bf16.msra.mxu0 %v5659_v25  ;;  %v5681_v22 = vpack.c.bf16 %v543_v61, %v539_v55  ;;  %v542_v10 = vld [vmem:[#allocation5 + $0x370] sm:$0xff]  ;;  %v544_v55 = vld [vmem:[#allocation5 + $0x380] sm:$0xff] }
  0x83   :  { %6756 = vst [vmem:[#allocation51_spill] sm:$0xff] %v5667_v1  ;;  %3479 = vmatprep.subr.bf16.mxu0 %v5667_v1  ;;  %6759 = vst [vmem:[#allocation54_spill] sm:$0xff] %v5674_v42  ;;  %v545_v1 = vld [vmem:[#allocation5 + $0x388] sm:$0xff]  ;;  %v548_v61 = vld [vmem:[#allocation5 + $0x3a0] sm:$0xff] }
  0x84   :  { %3541 = vmatpush1.bf16.msra.mxu1 %v5662_v46  ;;  %v537_v46 = vld [vmem:[#allocation5 + $0x348] sm:$0xff]  ;;  %6761 = vst [vmem:[#allocation56_spill] sm:$0xff] %v5681_v22  ;;  %v5695_v4 = vpack.c.bf16 %v548_v61, %v544_v55  ;;  %v558_v55 = vld [vmem:[#allocation5 + $0x3f0] sm:$0xff] }
  0x85   :  { %3543 = vmatprep.subr.bf16.mxu1 %v5669_v36  ;;  %v5679_v25 = vpack.c.bf16 %v541_v16, %v537_v46  ;;  %v549_v36 = vld [vmem:[#allocation5 + $0x3a8] sm:$0xff]  ;;  %v5692_v16 = vpack.c.bf16 %v551_v59, %v547_v15  ;;  %v555_v59 = vld [vmem:[#allocation5 + $0x3d8] sm:$0xff] }
  0x86   :  { %3481 = vmatpush1.bf16.msra.mxu0 %v5671_v52  ;;  %v5686_v52 = vpack.c.bf16 %v542_v10, %v538_v9  ;;  %v5690_v46 = vpack.c.bf16 %v549_v36, %v545_v1  ;;  %6766 = vst [vmem:[#allocation61_spill] sm:$0xff] %v5695_v4  ;;  %v550_v9 = vld [vmem:[#allocation5 + $0x3b0] sm:$0xff]  ;;  %v553_v10 = vld [vmem:[#allocation5 + $0x3c8] sm:$0xff]  ;;  %v559_v15 = vld [vmem:[#allocation5 + $0x3f8] sm:$0xff] }
  0x87   :  { %6760 = vst [vmem:[#allocation55_spill] sm:$0xff] %v5679_v25  ;;  %3483 = vmatprep.subr.bf16.mxu0 %v5679_v25  ;;  %6765 = vst [vmem:[#allocation60_spill] sm:$0xff] %v5692_v16  ;;  %v557_v25 = vld [vmem:[#allocation5 + $0x3e8] sm:$0xff]  ;;  %v552_v36 = vld [vmem:[#allocation5 + $0x3c0] sm:$0xff] }
  0x88   :  { %3545 = vmatpush1.bf16.msra.mxu1 %v5674_v42  ;;  %6763 = vst [vmem:[#allocation58_spill] sm:$0xff] %v5686_v52  ;;  %6764 = vst [vmem:[#allocation59_spill] sm:$0xff] %v5690_v46  ;;  %v5701_v1 = vpack.c.bf16 %v557_v25, %v553_v10  ;;  %v556_v42 = vld [vmem:[#allocation5 + $0x3e0] sm:$0xff]  ;;  %v6674_v25 = vsub.s32 0, %v5357_v5 }
  0x89   :  { %3547 = vmatprep.subr.bf16.mxu1 %v5681_v22  ;;  %v5699_v22 = vpack.c.bf16 %v550_v9, %v546_v3  ;;  %v5706_v61 = vpack.c.bf16 %v556_v42, %v552_v36  ;;  %v6677_v42 = vsub.s32 1, %v5357_v5  ;;  %v68_v9 = vld [vmem:[%s6572_s3] sm:$0xf] }
  0x8a   :  { %3485 = vmatpush1.bf16.msra.mxu0 %v5683_v33  ;;  %6768 = vst [vmem:[#allocation63_spill] sm:$0xff] %v5701_v1  ;;  %v5703_v33 = vpack.c.bf16 %v559_v15, %v555_v59  ;;  %v6684_v59 = vsub.s32 2, %v5357_v5 }
  0x8b   :  { %3487 = vmatprep.subr.bf16.mxu0 %v5690_v46  ;;  %6767 = vst [vmem:[#allocation62_spill] sm:$0xff] %v5699_v22  ;;  %6770 = vst [vmem:[#allocation65_spill] sm:$0xff] %v5706_v61  ;;  %v5728_v10 = vrot.slane %v68_v9, %v6677_v42 }
  0x8c   :  { %3549 = vmatpush1.bf16.msra.mxu1 %v5686_v52  ;;  %6769 = vst [vmem:[#allocation64_spill] sm:$0xff] %v5703_v33  ;;  %v554_v52 = vld [vmem:[#allocation5 + $0x3d0] sm:$0xff] }
  0x8d   :  { %3551 = vmatprep.subr.bf16.mxu1 %v5692_v16  ;;  %v5710_v3 = vpack.c.bf16 %v558_v55, %v554_v52  ;;  %v5724_v52 = vrot.slane %v68_v9, %v6674_v25  ;;  %6773 = vst [vmem:[#allocation68_spill] sm:$0xff] %v5728_v10  ;;  %v5735_v25 = vrot.slane %v68_v9, %v6684_v59 }
  0x8e   :  { %3489 = vmatpush1.bf16.msra.mxu0 %v5695_v4 }
  0x8f   :  { %3491 = vmatprep.subr.bf16.mxu0 %v5701_v1  ;;  %6771 = vst [vmem:[#allocation66_spill] sm:$0xff] %v5710_v3  ;;  %6772 = vst [vmem:[#allocation67_spill] sm:$0xff] %v5724_v52  ;;  %v6691_v1 = vsub.s32 3, %v5357_v5 }
  0x90   :  { %3553 = vmatpush1.bf16.msra.mxu1 %v5699_v22  ;;  %6774 = vst [vmem:[#allocation69_spill] sm:$0xff] %v5735_v25 }
  0x91   :  { %3555 = vmatprep.subr.bf16.mxu1 %v5703_v33 }
  0x92   :  { %3493 = vmatpush1.bf16.msra.mxu0 %v5706_v61 }
  0x93   :  { %3559 = vmatprep.subr.bf16.mxu0 %v5366_v20 }
  0x94   :  { %3557 = vmatpush1.bf16.msra.mxu1 %v5710_v3 }
  0x95   :  { %3591 = vmatprep.subr.bf16.mxu1 %v5372_v27 }
 0x128   :  { %v627_v15 = vpop.f32.mrb[0].mxu0 }
 0x129   :  { %v4902_v36 = vadd.f32 %v627_v15, %v5724_v52  ;;  %v629_v55 = vpop.f32.mrb[1].mxu0  ;;  %v5741_v15 = vrot.slane %v68_v9, %v6691_v1  ;;  %v6790_v1 = vld [vmem:[#allocation31_spill] sm:$0xff] }
 0x12a   :  { %v4903_v27 = vadd.f32 %v629_v55, %v5728_v10  ;;  %v698_v20 = vpop.f32.mrb[0].mxu1 }
 0x12b   :  { %v3316_v3 = vmul.f32 -1.442695, %v4902_v36  ;;  %v700_v61 = vpop.f32.mrb[1].mxu1  ;;  %v4918_v42 = vadd.f32 %v698_v20, %v5735_v25 }
 0x12c   :  { %v3317_v33 = vmul.f32 -1.442695, %v4903_v27  ;;  %v4919_v55 = vadd.f32 %v700_v61, %v5741_v15 }
 0x12d   :  { %4973 = vpow2.f32 %v3316_v3  ;;  %v3318_v52 = vmul.f32 -1.442695, %v4918_v42 }
 0x12e   :  { %4975 = vpow2.f32 %v3317_v33 }
 0x12f   :  { %4977 = vpow2.f32 %v3318_v52  ;;  %v6779_v52 = vld [vmem:[#allocation20_spill] sm:$0xff] }
 0x130   :  { %4979 = vtanh.f32 %v4919_v55  ;;  %v6782_v55 = vld [vmem:[#allocation23_spill] sm:$0xff] }
 0x137   :  { %v4974_v36 = vpop.eup %4973 }
 0x138   :  { %v4976_v10 = vpop.eup %4975  ;;  %v716_v27 = vadd.f32 1.0, %v4974_v36 }
 0x139   :  { %v717_v22 = vadd.f32 1.0, %v4976_v10  ;;  %v4978_v59 = vpop.eup %4977  ;;  %v6780_v10 = vld [vmem:[#allocation21_spill] sm:$0xff] }
 0x13a   :  { %4981 = vrcp.f32 %v716_v27  ;;  %v4980_v3 = vpop.eup %4979  ;;  %v718_v20 = vadd.f32 1.0, %v4978_v59  ;;  %v6781_v59 = vld [vmem:[#allocation22_spill] sm:$0xff]  ;;  %v6783_v27 = vld [vmem:[#allocation24_spill] sm:$0xff] }
 0x13b   :  { %4983 = vrcp.f32 %v717_v22  ;;  %v6775_v22 = vmov 0.0  }
 0x13c   :  { %4985 = vrcp.f32 %v718_v20  ;;  %v6786_v20 = vld [vmem:[#allocation27_spill] sm:$0xff] }
 0x144   :  { %v4982_v33 = vpop.eup %4981 }
 0x145   :  { %v4984_v4 = vpop.eup %4983  ;;  %v727_v25 = vmul.f32 %v4982_v33, %v4980_v3  ;;  %v6784_v3 = vld [vmem:[#allocation25_spill] sm:$0xff]  ;;  %v6785_v33 = vld [vmem:[#allocation26_spill] sm:$0xff] }
 0x146   :  { %v726_v5 = vmul.f32 0.0, %v4984_v4  ;;  %v4986_v61 = vpop.eup %4985  ;;  %v6777_v4 = vld [vmem:[#allocation19_spill] sm:$0xff] }
 0x148   :  { %v5744_v9 = vadd.f32 %v727_v25, %v726_v5  ;;  %v6776_v5 = vld [vmem:[#allocation17_spill] sm:$0xff]  ;;  %v6778_v25 = vld [vmem:[#allocation18_spill] sm:$0xff] }
 0x14a   :  { %4987 = vtanh.f32 %v5744_v9 }
 0x154   :  { %v4988_v42 = vpop.eup %4987 }
 0x155   :  { %v730_v36 = vmul.f32 %v4988_v42, %v4986_v61  ;;  %v6787_v61 = vld [vmem:[#allocation28_spill] sm:$0xff]  ;;  %v6788_v42 = vld [vmem:[#allocation29_spill] sm:$0xff] }
 0x157   :  { %817 = vmatmul.mubr.f32.vlgmr.msra.gmra.mrb[16].mxu0 %v730_v36  ;;  %888 = vmatmul.mubr.f32.vlgmr.msra.gmra.mrb[16].mxu1 %v730_v36 }
 0x158   :  { %3561 = vmatpush1.bf16.msra.mxu0 %v5369_v24  ;;  %3593 = vmatpush1.bf16.msra.mxu1 %v5376_v30 }
 0x159   :  { %3563 = vmatprep.subr.bf16.mxu0 %v5383_v34  ;;  %3595 = vmatprep.subr.bf16.mxu1 %v5391_v40 }
 0x15a   :  { %982 = vmatprep.mubr.f32.mxu0 %v6775_v22  ;;  %1053 = vmatprep.mubr.f32.mxu1 %v6775_v22 }
 0x15c   :  { %3565 = vmatpush1.bf16.msra.mxu0 %v5387_v37  ;;  %3597 = vmatpush1.bf16.msra.mxu1 %v5395_v43 }
 0x15d   :  { %3567 = vmatprep.subr.bf16.mxu0 %v5402_v47  ;;  %3599 = vmatprep.subr.bf16.mxu1 %v5410_v53 }
 0x160   :  { %3569 = vmatpush1.bf16.msra.mxu0 %v5406_v50  ;;  %3601 = vmatpush1.bf16.msra.mxu1 %v5414_v56 }
 0x161   :  { %3571 = vmatprep.subr.bf16.mxu0 %v5421_v60  ;;  %3603 = vmatprep.subr.bf16.mxu1 %v5429_v2 }
 0x164   :  { %3573 = vmatpush1.bf16.msra.mxu0 %v5425_v63  ;;  %3605 = vmatpush1.bf16.msra.mxu1 %v5433_v7 }
 0x165   :  { %3575 = vmatprep.subr.bf16.mxu0 %v5440_v11  ;;  %3607 = vmatprep.subr.bf16.mxu1 %v5448_v17 }
 0x168   :  { %3577 = vmatpush1.bf16.msra.mxu0 %v5444_v14  ;;  %3609 = vmatpush1.bf16.msra.mxu1 %v5452_v21 }
 0x169   :  { %3579 = vmatprep.subr.bf16.mxu0 %v5459_v26  ;;  %3611 = vmatprep.subr.bf16.mxu1 %v5467_v35 }
 0x16c   :  { %3581 = vmatpush1.bf16.msra.mxu0 %v5463_v31  ;;  %3613 = vmatpush1.bf16.msra.mxu1 %v5471_v39 }
 0x16d   :  { %3583 = vmatprep.subr.bf16.mxu0 %v5478_v45  ;;  %3615 = vmatprep.subr.bf16.mxu1 %v5486_v54 }
 0x170   :  { %3585 = vmatpush1.bf16.msra.mxu0 %v5482_v49  ;;  %3617 = vmatpush1.bf16.msra.mxu1 %v5490_v58 }
 0x171   :  { %3587 = vmatprep.subr.bf16.mxu0 %v5497_v0  ;;  %3619 = vmatprep.subr.bf16.mxu1 %v5505_v12 }
 0x174   :  { %3589 = vmatpush1.bf16.msra.mxu0 %v5501_v6  ;;  %3621 = vmatpush1.bf16.msra.mxu1 %v5509_v18 }
 0x175   :  { %3623 = vmatprep.subr.bf16.mxu0 %v5513_v23  ;;  %3687 = vmatprep.subr.bf16.mxu1 %v5517_v29 }
 0x177   :  { %983 = vmatmul.mubr.f32.vlgmr.msra.gmra.mrb[2].mxu0 %v730_v36  ;;  %1054 = vmatmul.mubr.f32.vlgmr.msra.gmra.mrb[2].mxu1 %v730_v36  ;;  %v6789_v36 = vld [vmem:[#allocation30_spill] sm:$0xff] }
 0x178   :  { %3625 = vmatpush1.bf16.msra.mxu0 %v5519_v32  ;;  %3689 = vmatpush1.bf16.msra.mxu1 %v5527_v44 }
 0x179   :  { %3627 = vmatprep.subr.bf16.mxu0 %v5523_v38  ;;  %3691 = vmatprep.subr.bf16.mxu1 %v5531_v51 }
 0x17c   :  { %3629 = vmatpush1.bf16.msra.mxu0 %v5535_v57  ;;  %3693 = vmatpush1.bf16.msra.mxu1 %v5542_v8 }
 0x17d   :  { %3631 = vmatprep.subr.bf16.mxu0 %v5539_v62  ;;  %3695 = vmatprep.subr.bf16.mxu1 %v5546_v13 }
 0x180   :  { %3633 = vmatpush1.bf16.msra.mxu0 %v5550_v19  ;;  %3697 = vmatpush1.bf16.msra.mxu1 %v5556_v41 }
 0x181   :  { %3635 = vmatprep.subr.bf16.mxu0 %v5553_v28  ;;  %3699 = vmatprep.subr.bf16.mxu1 %v5559_v48 }
 0x184   :  { %3637 = vmatpush1.bf16.msra.mxu0 %v6776_v5  ;;  %3701 = vmatpush1.bf16.msra.mxu1 %v6777_v4 }
 0x185   :  { %3639 = vmatprep.subr.bf16.mxu0 %v6778_v25  ;;  %3703 = vmatprep.subr.bf16.mxu1 %v6779_v52 }
 0x188   :  { %3641 = vmatpush1.bf16.msra.mxu0 %v6780_v10  ;;  %3705 = vmatpush1.bf16.msra.mxu1 %v6781_v59  ;;  %v6791_v10 = vld [vmem:[#allocation32_spill] sm:$0xff]  ;;  %v6792_v59 = vld [vmem:[#allocation33_spill] sm:$0xff] }
 0x189   :  { %3643 = vmatprep.subr.bf16.mxu0 %v6782_v55  ;;  %3707 = vmatprep.subr.bf16.mxu1 %v6783_v27  ;;  %v6793_v55 = vld [vmem:[#allocation34_spill] sm:$0xff]  ;;  %v6794_v27 = vld [vmem:[#allocation35_spill] sm:$0xff] }
 0x18c   :  { %3645 = vmatpush1.bf16.msra.mxu0 %v6784_v3  ;;  %3709 = vmatpush1.bf16.msra.mxu1 %v6785_v33  ;;  %v6795_v3 = vld [vmem:[#allocation36_spill] sm:$0xff]  ;;  %v6796_v33 = vld [vmem:[#allocation37_spill] sm:$0xff] }
 0x18d   :  { %3647 = vmatprep.subr.bf16.mxu0 %v6786_v20  ;;  %3711 = vmatprep.subr.bf16.mxu1 %v6787_v61  ;;  %v6797_v20 = vld [vmem:[#allocation38_spill] sm:$0xff]  ;;  %v6798_v61 = vld [vmem:[#allocation39_spill] sm:$0xff] }
 0x190   :  { %3649 = vmatpush1.bf16.msra.mxu0 %v6788_v42  ;;  %3713 = vmatpush1.bf16.msra.mxu1 %v6789_v36  ;;  %v6799_v42 = vld [vmem:[#allocation40_spill] sm:$0xff]  ;;  %v6800_v36 = vld [vmem:[#allocation41_spill] sm:$0xff] }
 0x191   :  { %3651 = vmatprep.subr.bf16.mxu0 %v6790_v1  ;;  %3715 = vmatprep.subr.bf16.mxu1 %v6791_v10  ;;  %v6801_v1 = vld [vmem:[#allocation42_spill] sm:$0xff]  ;;  %v6802_v10 = vld [vmem:[#allocation43_spill] sm:$0xff] }
 0x194   :  { %3653 = vmatpush1.bf16.msra.mxu0 %v6792_v59  ;;  %3717 = vmatpush1.bf16.msra.mxu1 %v6793_v55  ;;  %v6803_v59 = vld [vmem:[#allocation44_spill] sm:$0xff]  ;;  %v6804_v55 = vld [vmem:[#allocation45_spill] sm:$0xff] }
 0x195   :  { %3655 = vmatprep.subr.bf16.mxu0 %v6794_v27  ;;  %3719 = vmatprep.subr.bf16.mxu1 %v6795_v3  ;;  %v6805_v27 = vld [vmem:[#allocation46_spill] sm:$0xff]  ;;  %v6806_v3 = vld [vmem:[#allocation47_spill] sm:$0xff] }
 0x198   :  { %3657 = vmatpush1.bf16.msra.mxu0 %v6796_v33  ;;  %3721 = vmatpush1.bf16.msra.mxu1 %v6797_v20  ;;  %v6807_v33 = vld [vmem:[#allocation48_spill] sm:$0xff]  ;;  %v6808_v20 = vld [vmem:[#allocation49_spill] sm:$0xff] }
 0x199   :  { %3659 = vmatprep.subr.bf16.mxu0 %v6798_v61  ;;  %3723 = vmatprep.subr.bf16.mxu1 %v6799_v42  ;;  %v6809_v61 = vld [vmem:[#allocation50_spill] sm:$0xff]  ;;  %v6810_v42 = vld [vmem:[#allocation51_spill] sm:$0xff] }
 0x19c   :  { %3661 = vmatpush1.bf16.msra.mxu0 %v6800_v36  ;;  %3725 = vmatpush1.bf16.msra.mxu1 %v6801_v1  ;;  %v6811_v36 = vld [vmem:[#allocation52_spill] sm:$0xff]  ;;  %v6812_v1 = vld [vmem:[#allocation53_spill] sm:$0xff] }
 0x19d   :  { %3663 = vmatprep.subr.bf16.mxu0 %v6802_v10  ;;  %3727 = vmatprep.subr.bf16.mxu1 %v6803_v59  ;;  %v6813_v10 = vld [vmem:[#allocation54_spill] sm:$0xff]  ;;  %v6814_v59 = vld [vmem:[#allocation55_spill] sm:$0xff] }
 0x1a0   :  { %3665 = vmatpush1.bf16.msra.mxu0 %v6804_v55  ;;  %3729 = vmatpush1.bf16.msra.mxu1 %v6805_v27  ;;  %v6815_v55 = vld [vmem:[#allocation56_spill] sm:$0xff]  ;;  %v6816_v27 = vld [vmem:[#allocation57_spill] sm:$0xff] }
 0x1a1   :  { %3667 = vmatprep.subr.bf16.mxu0 %v6806_v3  ;;  %3731 = vmatprep.subr.bf16.mxu1 %v6807_v33  ;;  %v6817_v3 = vld [vmem:[#allocation58_spill] sm:$0xff] }
 0x1a4   :  { %3669 = vmatpush1.bf16.msra.mxu0 %v6808_v20  ;;  %3733 = vmatpush1.bf16.msra.mxu1 %v6809_v61  ;;  %v6818_v61 = vld [vmem:[#allocation61_spill] sm:$0xff] }
 0x1a5   :  { %3671 = vmatprep.subr.bf16.mxu0 %v6810_v42  ;;  %3735 = vmatprep.subr.bf16.mxu1 %v6811_v36  ;;  %v6819_v42 = vld [vmem:[#allocation62_spill] sm:$0xff]  ;;  %v6820_v36 = vld [vmem:[#allocation63_spill] sm:$0xff] }
 0x1a8   :  { %3673 = vmatpush1.bf16.msra.mxu0 %v6812_v1  ;;  %3737 = vmatpush1.bf16.msra.mxu1 %v6813_v10  ;;  %v6821_v1 = vld [vmem:[#allocation64_spill] sm:$0xff]  ;;  %v6822_v10 = vld [vmem:[#allocation65_spill] sm:$0xff] }
 0x1a9   :  { %3675 = vmatprep.subr.bf16.mxu0 %v6814_v59  ;;  %3739 = vmatprep.subr.bf16.mxu1 %v6815_v55  ;;  %v6823_v59 = vld [vmem:[#allocation66_spill] sm:$0xff] }
 0x1aa   :  { %v6824_v55 = vld [vmem:[#allocation10_spill] sm:$0xff] }
 0x1ac   :  { %3677 = vmatpush1.bf16.msra.mxu0 %v6816_v27  ;;  %3741 = vmatpush1.bf16.msra.mxu1 %v6817_v3  ;;  %v6825_v27 = vld [vmem:[#allocation11_spill] sm:$0xff] }
 0x1ad   :  { %3679 = vmatprep.subr.bf16.mxu0 %v5690_v46  ;;  %3743 = vmatprep.subr.bf16.mxu1 %v5692_v16  ;;  %v560_v16 = vld [vmem:[%s6574_s5] sm:$0xf] }
 0x1ae   :  { %v6826_v46 = vld [vmem:[#allocation9_spill] sm:$0xff] }
 0x1af   :  { %v6831_v25 = vsub.s32 2, %v6826_v46 }
 0x1b0   :  { %3681 = vmatpush1.bf16.msra.mxu0 %v6818_v61  ;;  %3745 = vmatpush1.bf16.msra.mxu1 %v6819_v42  ;;  %v6827_v61 = vsub.s32 0, %v6826_v46 }
 0x1b1   :  { %3683 = vmatprep.subr.bf16.mxu0 %v6820_v36  ;;  %3747 = vmatprep.subr.bf16.mxu1 %v6821_v1  ;;  %v6829_v36 = vsub.s32 1, %v6826_v46  ;;  %v5860_v4 = vrot.slane %v560_v16, %v6831_v25 }
 0x1b2   :  { %v5850_v3 = vrot.slane %v560_v16, %v6827_v61  ;;  %v6833_v61 = vsub.s32 3, %v6826_v46 }
 0x1b3   :  { %v5854_v42 = vrot.slane %v560_v16, %v6829_v36  ;;  %6832 = vst [vmem:[#allocation71_spill] sm:$0xff] %v5860_v4 }
 0x1b4   :  { %3685 = vmatpush1.bf16.msra.mxu0 %v6822_v10  ;;  %3749 = vmatpush1.bf16.msra.mxu1 %v6823_v59  ;;  %6828 = vst [vmem:[#allocation9_spill] sm:$0xff] %v5850_v3  ;;  %v5864_v36 = vrot.slane %v560_v16, %v6833_v61 }
 0x1b5   :  { %3751 = vmatprep.subr.bf16.mxu0 %v6824_v55  ;;  %3783 = vmatprep.subr.bf16.mxu1 %v6825_v27  ;;  %6830 = vst [vmem:[#allocation70_spill] sm:$0xff] %v5854_v42 }
 0x1b6   :  { %6834 = vst [vmem:[#allocation72_spill] sm:$0xff] %v5864_v36 }
 0x22a   :  { %v818_v1 = vpop.f32.mrb[16].mxu0  ;;  %v889_v10 = vpop.f32.mrb[16].mxu1 }
 0x22b   :  { %v819_v59 = vadd.f32 %v818_v1, %v5850_v3  ;;  %v820_v20 = vpop.f32.mrb[17].mxu0  ;;  %v891_v55 = vpop.f32.mrb[17].mxu1  ;;  %v890_v5 = vadd.f32 %v889_v10, %v5860_v4 }
 0x22c   :  { %v821_v27 = vadd.f32 %v820_v20, %v5854_v42  ;;  %v892_v1 = vadd.f32 %v891_v55, %v5864_v36 }
 0x22d   :  { %v3319_v33 = vmul.f32 -1.442695, %v819_v59  ;;  %v3321_v3 = vmul.f32 -1.442695, %v890_v5  ;;  %v6835_v5 = vld [vmem:[#allocation67_spill] sm:$0xff] }
 0x22e   :  { %v3320_v52 = vmul.f32 -1.442695, %v821_v27 }
 0x22f   :  { %4989 = vpow2.f32 %v3319_v33 }
 0x230   :  { %4991 = vpow2.f32 %v3320_v52 }
 0x231   :  { %4993 = vtanh.f32 %v892_v1 }
 0x232   :  { %4995 = vpow2.f32 %v3321_v3  ;;  %v6836_v3 = vld [vmem:[#allocation68_spill] sm:$0xff] }
 0x239   :  { %v4990_v48 = vpop.eup %4989 }
 0x23a   :  { %v903_v28 = vadd.f32 1.0, %v4990_v48  ;;  %v4992_v59 = vpop.eup %4991 }
 0x23b   :  { %v904_v27 = vadd.f32 1.0, %v4992_v59  ;;  %v4994_v25 = vpop.eup %4993 }
 0x23c   :  { %4997 = vrcp.f32 %v903_v28  ;;  %v4996_v33 = vpop.eup %4995 }
 0x23d   :  { %4999 = vrcp.f32 %v904_v27  ;;  %v905_v16 = vadd.f32 1.0, %v4996_v33 }
 0x23f   :  { %5001 = vrcp.f32 %v905_v16 }
 0x246   :  { %v4998_v52 = vpop.eup %4997 }
 0x247   :  { %v914_v20 = vmul.f32 %v4998_v52, %v4994_v25  ;;  %v5000_v46 = vpop.eup %4999  ;;  %v6837_v25 = vld [vmem:[#allocation69_spill] sm:$0xff] }
 0x248   :  { %v913_v61 = vmul.f32 0.0, %v5000_v46 }
 0x249   :  { %v5002_v52 = vpop.eup %5001 }
 0x24a   :  { %v984_v42 = vpop.f32.mrb[2].mxu0  ;;  %v1055_v10 = vpop.f32.mrb[2].mxu1  ;;  %v5868_v4 = vadd.f32 %v914_v20, %v913_v61 }
 0x24b   :  { %v4904_v55 = vadd.f32 %v984_v42, %v6835_v5  ;;  %v986_v48 = vpop.f32.mrb[3].mxu0  ;;  %v1057_v1 = vpop.f32.mrb[3].mxu1  ;;  %v4920_v33 = vadd.f32 %v1055_v10, %v6837_v25 }
 0x24c   :  { %v4905_v28 = vadd.f32 %v986_v48, %v6836_v3  ;;  %5003 = vtanh.f32 %v5868_v4  ;;  %v4921_v46 = vadd.f32 %v1057_v1, %v5741_v15 }
 0x24d   :  { %v3322_v59 = vmul.f32 -1.442695, %v4904_v55  ;;  %v3324_v61 = vmul.f32 -1.442695, %v4920_v33 }
 0x24e   :  { %v3323_v27 = vmul.f32 -1.442695, %v4905_v28 }
 0x24f   :  { %5005 = vpow2.f32 %v3322_v59 }
 0x250   :  { %5007 = vpow2.f32 %v3323_v27 }
 0x251   :  { %5009 = vtanh.f32 %v4921_v46 }
 0x252   :  { %5011 = vpow2.f32 %v3324_v61  ;;  %v6842_v61 = vld [vmem:[#allocation18_spill] sm:$0xff] }
 0x256   :  { %v5004_v20 = vpop.eup %5003 }
 0x257   :  { %v917_v36 = vmul.f32 %v5004_v20, %v5002_v52  ;;  %v6841_v20 = vld [vmem:[#allocation19_spill] sm:$0xff] }
 0x259   :  { %v5006_v42 = vpop.eup %5005  ;;  %1152 = vmatprep.mubr.f32.mxu0 %v917_v36  ;;  %1223 = vmatprep.mubr.f32.mxu1 %v917_v36 }
 0x25a   :  { %v1073_v5 = vadd.f32 1.0, %v5006_v42  ;;  %v5008_v16 = vpop.eup %5007  ;;  %v6843_v42 = vld [vmem:[#allocation20_spill] sm:$0xff] }
 0x25b   :  { %v1074_v55 = vadd.f32 1.0, %v5008_v16  ;;  %v5010_v48 = vpop.eup %5009  ;;  %v6844_v16 = vld [vmem:[#allocation21_spill] sm:$0xff] }
 0x25c   :  { %5013 = vrcp.f32 %v1073_v5  ;;  %v5012_v28 = vpop.eup %5011  ;;  %v6839_v5 = vld [vmem:[#allocation16_spill] sm:$0xff] }
 0x25d   :  { %5015 = vrcp.f32 %v1074_v55  ;;  %v1075_v25 = vadd.f32 1.0, %v5012_v28  ;;  %v6845_v55 = vld [vmem:[#allocation22_spill] sm:$0xff]  ;;  %v6847_v28 = vld [vmem:[#allocation24_spill] sm:$0xff] }
 0x25f   :  { %5017 = vrcp.f32 %v1075_v25  ;;  %v6840_v25 = vld [vmem:[#allocation17_spill] sm:$0xff] }
 0x266   :  { %v5014_v59 = vpop.eup %5013 }
 0x267   :  { %v1084_v10 = vmul.f32 %v5014_v59, %v5010_v48  ;;  %v5016_v27 = vpop.eup %5015  ;;  %v6846_v48 = vld [vmem:[#allocation23_spill] sm:$0xff]  ;;  %v6848_v59 = vld [vmem:[#allocation25_spill] sm:$0xff] }
 0x268   :  { %v1083_v1 = vmul.f32 %v5016_v27, %v5744_v9  ;;  %v6838_v9 = vld [vmem:[#allocation14_spill] sm:$0xff]  ;;  %v6850_v27 = vld [vmem:[#allocation27_spill] sm:$0xff] }
 0x269   :  { %v5018_v52 = vpop.eup %5017 }
 0x26a   :  { %v5876_v33 = vadd.f32 %v1084_v10, %v1083_v1  ;;  %v6849_v10 = vld [vmem:[#allocation26_spill] sm:$0xff]  ;;  %v6851_v1 = vld [vmem:[#allocation28_spill] sm:$0xff] }
 0x26c   :  { %5019 = vtanh.f32 %v5876_v33 }
 0x276   :  { %v5020_v36 = vpop.eup %5019 }
 0x277   :  { %v1087_v46 = vmul.f32 %v5020_v36, %v5018_v52  ;;  %v6852_v52 = vld [vmem:[#allocation29_spill] sm:$0xff]  ;;  %v6853_v36 = vld [vmem:[#allocation30_spill] sm:$0xff] }
 0x279   :  { %1153 = vmatmul.mubr.f32.vlgmr.msra.gmra.mrb[18].mxu0 %v1087_v46  ;;  %1224 = vmatmul.mubr.f32.vlgmr.msra.gmra.mrb[18].mxu1 %v1087_v46 }
 0x27a   :  { %3753 = vmatpush1.bf16.msra.mxu0 %v5369_v24  ;;  %3785 = vmatpush1.bf16.msra.mxu1 %v5376_v30 }
 0x27b   :  { %3755 = vmatprep.subr.bf16.mxu0 %v5383_v34  ;;  %3787 = vmatprep.subr.bf16.mxu1 %v5391_v40 }
 0x27c   :  { %1318 = vmatprep.mubr.f32.mxu0 %v6775_v22  ;;  %1389 = vmatprep.mubr.f32.mxu1 %v6775_v22 }
 0x27e   :  { %3757 = vmatpush1.bf16.msra.mxu0 %v5387_v37  ;;  %3789 = vmatpush1.bf16.msra.mxu1 %v5395_v43 }
 0x27f   :  { %3759 = vmatprep.subr.bf16.mxu0 %v5402_v47  ;;  %3791 = vmatprep.subr.bf16.mxu1 %v5410_v53 }
 0x282   :  { %3761 = vmatpush1.bf16.msra.mxu0 %v5406_v50  ;;  %3793 = vmatpush1.bf16.msra.mxu1 %v5414_v56 }
 0x283   :  { %3763 = vmatprep.subr.bf16.mxu0 %v5421_v60  ;;  %3795 = vmatprep.subr.bf16.mxu1 %v5429_v2 }
 0x286   :  { %3765 = vmatpush1.bf16.msra.mxu0 %v5425_v63  ;;  %3797 = vmatpush1.bf16.msra.mxu1 %v5433_v7 }
 0x287   :  { %3767 = vmatprep.subr.bf16.mxu0 %v5440_v11  ;;  %3799 = vmatprep.subr.bf16.mxu1 %v5448_v17 }
 0x28a   :  { %3769 = vmatpush1.bf16.msra.mxu0 %v5444_v14  ;;  %3801 = vmatpush1.bf16.msra.mxu1 %v5452_v21 }
 0x28b   :  { %3771 = vmatprep.subr.bf16.mxu0 %v5459_v26  ;;  %3803 = vmatprep.subr.bf16.mxu1 %v5467_v35 }
 0x28e   :  { %3773 = vmatpush1.bf16.msra.mxu0 %v5463_v31  ;;  %3805 = vmatpush1.bf16.msra.mxu1 %v5471_v39 }
 0x28f   :  { %3775 = vmatprep.subr.bf16.mxu0 %v5478_v45  ;;  %3807 = vmatprep.subr.bf16.mxu1 %v5486_v54 }
 0x292   :  { %3777 = vmatpush1.bf16.msra.mxu0 %v5482_v49  ;;  %3809 = vmatpush1.bf16.msra.mxu1 %v5490_v58 }
 0x293   :  { %3779 = vmatprep.subr.bf16.mxu0 %v5497_v0  ;;  %3811 = vmatprep.subr.bf16.mxu1 %v5505_v12 }
 0x296   :  { %3781 = vmatpush1.bf16.msra.mxu0 %v5501_v6  ;;  %3813 = vmatpush1.bf16.msra.mxu1 %v5509_v18 }
 0x297   :  { %3815 = vmatprep.subr.bf16.mxu0 %v5513_v23  ;;  %3879 = vmatprep.subr.bf16.mxu1 %v5517_v29 }
 0x299   :  { %1319 = vmatmul.mubr.f32.vlgmr.msra.gmra.mrb[4].mxu0 %v1087_v46  ;;  %1390 = vmatmul.mubr.f32.vlgmr.msra.gmra.mrb[4].mxu1 %v1087_v46  ;;  %v6854_v46 = vld [vmem:[#allocation31_spill] sm:$0xff] }
 0x29a   :  { %3817 = vmatpush1.bf16.msra.mxu0 %v5519_v32  ;;  %3881 = vmatpush1.bf16.msra.mxu1 %v5527_v44 }
 0x29b   :  { %3819 = vmatprep.subr.bf16.mxu0 %v5523_v38  ;;  %3883 = vmatprep.subr.bf16.mxu1 %v5531_v51 }
 0x29e   :  { %3821 = vmatpush1.bf16.msra.mxu0 %v5535_v57  ;;  %3885 = vmatpush1.bf16.msra.mxu1 %v5542_v8 }
 0x29f   :  { %3823 = vmatprep.subr.bf16.mxu0 %v5539_v62  ;;  %3887 = vmatprep.subr.bf16.mxu1 %v5546_v13 }
 0x2a2   :  { %3825 = vmatpush1.bf16.msra.mxu0 %v5550_v19  ;;  %3889 = vmatpush1.bf16.msra.mxu1 %v5556_v41 }
 0x2a3   :  { %3827 = vmatprep.subr.bf16.mxu0 %v6838_v9  ;;  %3891 = vmatprep.subr.bf16.mxu1 %v6839_v5  ;;  %v6895_v5 = vld [vmem:[#allocation72_spill] sm:$0xff] }
 0x2a6   :  { %3829 = vmatpush1.bf16.msra.mxu0 %v6840_v25  ;;  %3893 = vmatpush1.bf16.msra.mxu1 %v6841_v20  ;;  %v6893_v20 = vld [vmem:[#allocation70_spill] sm:$0xff] }
 0x2a7   :  { %3831 = vmatprep.subr.bf16.mxu0 %v6842_v61  ;;  %3895 = vmatprep.subr.bf16.mxu1 %v6843_v42  ;;  %v6892_v42 = vld [vmem:[#allocation9_spill] sm:$0xff] }
 0x2aa   :  { %3833 = vmatpush1.bf16.msra.mxu0 %v6844_v16  ;;  %3897 = vmatpush1.bf16.msra.mxu1 %v6845_v55  ;;  %v6855_v16 = vld [vmem:[#allocation32_spill] sm:$0xff]  ;;  %v6856_v55 = vld [vmem:[#allocation33_spill] sm:$0xff] }
 0x2ab   :  { %3835 = vmatprep.subr.bf16.mxu0 %v6846_v48  ;;  %3899 = vmatprep.subr.bf16.mxu1 %v6847_v28  ;;  %v6857_v48 = vld [vmem:[#allocation34_spill] sm:$0xff]  ;;  %v6858_v28 = vld [vmem:[#allocation35_spill] sm:$0xff] }
 0x2ae   :  { %3837 = vmatpush1.bf16.msra.mxu0 %v6848_v59  ;;  %3901 = vmatpush1.bf16.msra.mxu1 %v6849_v10  ;;  %v6859_v59 = vld [vmem:[#allocation36_spill] sm:$0xff]  ;;  %v6860_v10 = vld [vmem:[#allocation37_spill] sm:$0xff] }
 0x2af   :  { %3839 = vmatprep.subr.bf16.mxu0 %v6850_v27  ;;  %3903 = vmatprep.subr.bf16.mxu1 %v6851_v1  ;;  %v6861_v27 = vld [vmem:[#allocation38_spill] sm:$0xff]  ;;  %v6862_v1 = vld [vmem:[#allocation39_spill] sm:$0xff] }
 0x2b2   :  { %3841 = vmatpush1.bf16.msra.mxu0 %v6852_v52  ;;  %3905 = vmatpush1.bf16.msra.mxu1 %v6853_v36  ;;  %v6863_v52 = vld [vmem:[#allocation40_spill] sm:$0xff]  ;;  %v6864_v36 = vld [vmem:[#allocation41_spill] sm:$0xff] }
 0x2b3   :  { %3843 = vmatprep.subr.bf16.mxu0 %v6854_v46  ;;  %3907 = vmatprep.subr.bf16.mxu1 %v6855_v16  ;;  %v6865_v46 = vld [vmem:[#allocation42_spill] sm:$0xff]  ;;  %v6866_v16 = vld [vmem:[#allocation43_spill] sm:$0xff] }
 0x2b6   :  { %3845 = vmatpush1.bf16.msra.mxu0 %v6856_v55  ;;  %3909 = vmatpush1.bf16.msra.mxu1 %v6857_v48  ;;  %v6867_v55 = vld [vmem:[#allocation44_spill] sm:$0xff]  ;;  %v6868_v48 = vld [vmem:[#allocation45_spill] sm:$0xff] }
 0x2b7   :  { %3847 = vmatprep.subr.bf16.mxu0 %v6858_v28  ;;  %3911 = vmatprep.subr.bf16.mxu1 %v6859_v59  ;;  %v6869_v28 = vld [vmem:[#allocation46_spill] sm:$0xff]  ;;  %v6870_v59 = vld [vmem:[#allocation47_spill] sm:$0xff] }
 0x2ba   :  { %3849 = vmatpush1.bf16.msra.mxu0 %v6860_v10  ;;  %3913 = vmatpush1.bf16.msra.mxu1 %v6861_v27  ;;  %v6871_v10 = vld [vmem:[#allocation48_spill] sm:$0xff]  ;;  %v6872_v27 = vld [vmem:[#allocation49_spill] sm:$0xff] }
 0x2bb   :  { %3851 = vmatprep.subr.bf16.mxu0 %v6862_v1  ;;  %3915 = vmatprep.subr.bf16.mxu1 %v6863_v52  ;;  %v6873_v1 = vld [vmem:[#allocation50_spill] sm:$0xff]  ;;  %v6874_v52 = vld [vmem:[#allocation51_spill] sm:$0xff] }
 0x2be   :  { %3853 = vmatpush1.bf16.msra.mxu0 %v6864_v36  ;;  %3917 = vmatpush1.bf16.msra.mxu1 %v6865_v46  ;;  %v6875_v36 = vld [vmem:[#allocation52_spill] sm:$0xff]  ;;  %v6876_v46 = vld [vmem:[#allocation53_spill] sm:$0xff] }
 0x2bf   :  { %3855 = vmatprep.subr.bf16.mxu0 %v6866_v16  ;;  %3919 = vmatprep.subr.bf16.mxu1 %v6867_v55  ;;  %v6877_v16 = vld [vmem:[#allocation54_spill] sm:$0xff]  ;;  %v6878_v55 = vld [vmem:[#allocation55_spill] sm:$0xff] }
 0x2c2   :  { %3857 = vmatpush1.bf16.msra.mxu0 %v6868_v48  ;;  %3921 = vmatpush1.bf16.msra.mxu1 %v6869_v28  ;;  %v6879_v48 = vld [vmem:[#allocation56_spill] sm:$0xff]  ;;  %v6880_v28 = vld [vmem:[#allocation57_spill] sm:$0xff] }
 0x2c3   :  { %3859 = vmatprep.subr.bf16.mxu0 %v6870_v59  ;;  %3923 = vmatprep.subr.bf16.mxu1 %v6871_v10  ;;  %v6881_v59 = vld [vmem:[#allocation58_spill] sm:$0xff]  ;;  %v6882_v10 = vld [vmem:[#allocation59_spill] sm:$0xff] }
 0x2c6   :  { %3861 = vmatpush1.bf16.msra.mxu0 %v6872_v27  ;;  %3925 = vmatpush1.bf16.msra.mxu1 %v6873_v1  ;;  %v6883_v27 = vld [vmem:[#allocation60_spill] sm:$0xff]  ;;  %v6884_v1 = vld [vmem:[#allocation61_spill] sm:$0xff] }
 0x2c7   :  { %3863 = vmatprep.subr.bf16.mxu0 %v6874_v52  ;;  %3927 = vmatprep.subr.bf16.mxu1 %v6875_v36  ;;  %v6885_v52 = vld [vmem:[#allocation62_spill] sm:$0xff]  ;;  %v6886_v36 = vld [vmem:[#allocation63_spill] sm:$0xff] }
 0x2ca   :  { %3865 = vmatpush1.bf16.msra.mxu0 %v6876_v46  ;;  %3929 = vmatpush1.bf16.msra.mxu1 %v6877_v16  ;;  %v6887_v46 = vld [vmem:[#allocation64_spill] sm:$0xff]  ;;  %v6888_v16 = vld [vmem:[#allocation65_spill] sm:$0xff] }
 0x2cb   :  { %3867 = vmatprep.subr.bf16.mxu0 %v6878_v55  ;;  %3931 = vmatprep.subr.bf16.mxu1 %v6879_v48  ;;  %v6889_v55 = vld [vmem:[#allocation66_spill] sm:$0xff] }
 0x2cc   :  { %v6890_v48 = vld [vmem:[#allocation10_spill] sm:$0xff] }
 0x2ce   :  { %3869 = vmatpush1.bf16.msra.mxu0 %v6880_v28  ;;  %3933 = vmatpush1.bf16.msra.mxu1 %v6881_v59  ;;  %v6891_v28 = vld [vmem:[#allocation11_spill] sm:$0xff] }
 0x2cf   :  { %3871 = vmatprep.subr.bf16.mxu0 %v6882_v10  ;;  %3935 = vmatprep.subr.bf16.mxu1 %v6883_v27 }
 0x2d2   :  { %3873 = vmatpush1.bf16.msra.mxu0 %v6884_v1  ;;  %3937 = vmatpush1.bf16.msra.mxu1 %v6885_v52 }
 0x2d3   :  { %3875 = vmatprep.subr.bf16.mxu0 %v6886_v36  ;;  %3939 = vmatprep.subr.bf16.mxu1 %v6887_v46  ;;  %v6894_v46 = vld [vmem:[#allocation71_spill] sm:$0xff] }
 0x2d6   :  { %3877 = vmatpush1.bf16.msra.mxu0 %v6888_v16  ;;  %3941 = vmatpush1.bf16.msra.mxu1 %v6889_v55 }
 0x2d7   :  { %3943 = vmatprep.subr.bf16.mxu0 %v6890_v48  ;;  %3975 = vmatprep.subr.bf16.mxu1 %v6891_v28 }
 0x34c   :  { %v1154_v59 = vpop.f32.mrb[18].mxu0  ;;  %v1225_v10 = vpop.f32.mrb[18].mxu1 }
 0x34d   :  { %v1155_v27 = vadd.f32 %v1154_v59, %v6892_v42  ;;  %v1156_v61 = vpop.f32.mrb[19].mxu0  ;;  %v1227_v1 = vpop.f32.mrb[19].mxu1  ;;  %v1226_v16 = vadd.f32 %v1225_v10, %v6894_v46 }
 0x34e   :  { %v1157_v52 = vadd.f32 %v1156_v61, %v6893_v20  ;;  %v1228_v55 = vadd.f32 %v1227_v1, %v6895_v5 }
 0x34f   :  { %v3325_v25 = vmul.f32 -1.442695, %v1155_v27  ;;  %v3327_v9 = vmul.f32 -1.442695, %v1226_v16  ;;  %v6896_v16 = vld [vmem:[#allocation67_spill] sm:$0xff] }
 0x350   :  { %v3326_v36 = vmul.f32 -1.442695, %v1157_v52 }
 0x351   :  { %5021 = vpow2.f32 %v3325_v25 }
 0x352   :  { %5023 = vpow2.f32 %v3326_v36 }
 0x353   :  { %5025 = vtanh.f32 %v1228_v55 }
 0x354   :  { %5027 = vpow2.f32 %v3327_v9 }
 0x35b   :  { %v5022_v48 = vpop.eup %5021 }
 0x35c   :  { %v1239_v41 = vadd.f32 1.0, %v5022_v48  ;;  %v5024_v28 = vpop.eup %5023 }
 0x35d   :  { %v1240_v59 = vadd.f32 1.0, %v5024_v28  ;;  %v5026_v42 = vpop.eup %5025 }
 0x35e   :  { %5029 = vrcp.f32 %v1239_v41  ;;  %v5028_v19 = vpop.eup %5027 }
 0x35f   :  { %5031 = vrcp.f32 %v1240_v59  ;;  %v1241_v25 = vadd.f32 1.0, %v5028_v19  ;;  %v6897_v19 = vld [vmem:[#allocation69_spill] sm:$0xff] }
 0x361   :  { %5033 = vrcp.f32 %v1241_v25 }
 0x368   :  { %v5030_v61 = vpop.eup %5029 }
 0x369   :  { %v1250_v27 = vmul.f32 %v5030_v61, %v5026_v42  ;;  %v5032_v52 = vpop.eup %5031 }
 0x36a   :  { %v1249_v36 = vmul.f32 %v5032_v52, %v5868_v4 }
 0x36b   :  { %v5034_v4 = vpop.eup %5033 }
 0x36c   :  { %v1320_v10 = vpop.f32.mrb[4].mxu0  ;;  %v1391_v46 = vpop.f32.mrb[4].mxu1  ;;  %v5982_v1 = vadd.f32 %v1250_v27, %v1249_v36 }
 0x36d   :  { %v4906_v48 = vadd.f32 %v1320_v10, %v6896_v16  ;;  %v1322_v55 = vpop.f32.mrb[5].mxu0  ;;  %v1393_v5 = vpop.f32.mrb[5].mxu1  ;;  %v4922_v42 = vadd.f32 %v1391_v46, %v6897_v19 }
 0x36e   :  { %v4907_v41 = vadd.f32 %v1322_v55, %v6836_v3  ;;  %5035 = vtanh.f32 %v5982_v1  ;;  %v4923_v59 = vadd.f32 %v1393_v5, %v5741_v15 }
 0x36f   :  { %v3328_v9 = vmul.f32 -1.442695, %v4906_v48  ;;  %v3330_v27 = vmul.f32 -1.442695, %v4922_v42 }
 0x370   :  { %v3329_v28 = vmul.f32 -1.442695, %v4907_v41 }
 0x371   :  { %5037 = vpow2.f32 %v3328_v9 }
 0x372   :  { %5039 = vpow2.f32 %v3329_v28 }
 0x373   :  { %5041 = vtanh.f32 %v4923_v59 }
 0x374   :  { %5043 = vpow2.f32 %v3330_v27  ;;  %v6900_v27 = vld [vmem:[#allocation14_spill] sm:$0xff] }
 0x378   :  { %v5036_v61 = vpop.eup %5035 }
 0x379   :  { %v1253_v52 = vmul.f32 %v5036_v61, %v5034_v4 }
 0x37b   :  { %v5038_v36 = vpop.eup %5037  ;;  %1488 = vmatprep.mubr.f32.mxu0 %v1253_v52  ;;  %1559 = vmatprep.mubr.f32.mxu1 %v1253_v52  ;;  %v6901_v52 = vld [vmem:[#allocation16_spill] sm:$0xff] }
 0x37c   :  { %v1409_v10 = vadd.f32 1.0, %v5038_v36  ;;  %v5040_v25 = vpop.eup %5039  ;;  %v6902_v36 = vld [vmem:[#allocation17_spill] sm:$0xff] }
 0x37d   :  { %v1410_v48 = vadd.f32 1.0, %v5040_v25  ;;  %v5042_v55 = vpop.eup %5041  ;;  %v6904_v25 = vld [vmem:[#allocation18_spill] sm:$0xff] }
 0x37e   :  { %5045 = vrcp.f32 %v1409_v10  ;;  %v5044_v41 = vpop.eup %5043  ;;  %v6903_v10 = vld [vmem:[#allocation19_spill] sm:$0xff] }
 0x37f   :  { %5047 = vrcp.f32 %v1410_v48  ;;  %v1411_v19 = vadd.f32 1.0, %v5044_v41  ;;  %v6905_v48 = vld [vmem:[#allocation20_spill] sm:$0xff]  ;;  %v6907_v41 = vld [vmem:[#allocation22_spill] sm:$0xff] }
 0x381   :  { %5049 = vrcp.f32 %v1411_v19  ;;  %v6899_v19 = vld [vmem:[#allocation15_spill] sm:$0xff] }
 0x388   :  { %v5046_v9 = vpop.eup %5045 }
 0x389   :  { %v1420_v46 = vmul.f32 %v5046_v9, %v5042_v55  ;;  %v5048_v28 = vpop.eup %5047  ;;  %v6906_v55 = vld [vmem:[#allocation21_spill] sm:$0xff]  ;;  %v6908_v9 = vld [vmem:[#allocation23_spill] sm:$0xff] }
 0x38a   :  { %v1419_v5 = vmul.f32 %v5048_v28, %v5876_v33  ;;  %v6898_v33 = vld [vmem:[#allocation13_spill] sm:$0xff] }
 0x38b   :  { %v5050_v4 = vpop.eup %5049  ;;  %v6910_v28 = vld [vmem:[#allocation25_spill] sm:$0xff] }
 0x38c   :  { %v5990_v42 = vadd.f32 %v1420_v46, %v1419_v5  ;;  %v6909_v46 = vld [vmem:[#allocation24_spill] sm:$0xff]  ;;  %v6911_v5 = vld [vmem:[#allocation26_spill] sm:$0xff] }
 0x38e   :  { %5051 = vtanh.f32 %v5990_v42 }
 0x398   :  { %v5052_v59 = vpop.eup %5051 }
 0x399   :  { %v1423_v61 = vmul.f32 %v5052_v59, %v5050_v4  ;;  %v6912_v4 = vld [vmem:[#allocation27_spill] sm:$0xff]  ;;  %v6913_v59 = vld [vmem:[#allocation28_spill] sm:$0xff] }
 0x39b   :  { %1489 = vmatmul.mubr.f32.vlgmr.msra.gmra.mrb[20].mxu0 %v1423_v61  ;;  %1560 = vmatmul.mubr.f32.vlgmr.msra.gmra.mrb[20].mxu1 %v1423_v61 }
 0x39c   :  { %3945 = vmatpush1.bf16.msra.mxu0 %v5369_v24  ;;  %3977 = vmatpush1.bf16.msra.mxu1 %v5376_v30 }
 0x39d   :  { %3947 = vmatprep.subr.bf16.mxu0 %v5383_v34  ;;  %3979 = vmatprep.subr.bf16.mxu1 %v5391_v40 }
 0x39e   :  { %1654 = vmatprep.mubr.f32.mxu0 %v6775_v22  ;;  %1725 = vmatprep.mubr.f32.mxu1 %v6775_v22 }
 0x3a0   :  { %3949 = vmatpush1.bf16.msra.mxu0 %v5387_v37  ;;  %3981 = vmatpush1.bf16.msra.mxu1 %v5395_v43 }
 0x3a1   :  { %3951 = vmatprep.subr.bf16.mxu0 %v5402_v47  ;;  %3983 = vmatprep.subr.bf16.mxu1 %v5410_v53 }
 0x3a4   :  { %3953 = vmatpush1.bf16.msra.mxu0 %v5406_v50  ;;  %3985 = vmatpush1.bf16.msra.mxu1 %v5414_v56 }
 0x3a5   :  { %3955 = vmatprep.subr.bf16.mxu0 %v5421_v60  ;;  %3987 = vmatprep.subr.bf16.mxu1 %v5429_v2 }
 0x3a8   :  { %3957 = vmatpush1.bf16.msra.mxu0 %v5425_v63  ;;  %3989 = vmatpush1.bf16.msra.mxu1 %v5433_v7 }
 0x3a9   :  { %3959 = vmatprep.subr.bf16.mxu0 %v5440_v11  ;;  %3991 = vmatprep.subr.bf16.mxu1 %v5448_v17 }
 0x3ac   :  { %3961 = vmatpush1.bf16.msra.mxu0 %v5444_v14  ;;  %3993 = vmatpush1.bf16.msra.mxu1 %v5452_v21 }
 0x3ad   :  { %3963 = vmatprep.subr.bf16.mxu0 %v5459_v26  ;;  %3995 = vmatprep.subr.bf16.mxu1 %v5467_v35 }
 0x3b0   :  { %3965 = vmatpush1.bf16.msra.mxu0 %v5463_v31  ;;  %3997 = vmatpush1.bf16.msra.mxu1 %v5471_v39 }
 0x3b1   :  { %3967 = vmatprep.subr.bf16.mxu0 %v5478_v45  ;;  %3999 = vmatprep.subr.bf16.mxu1 %v5486_v54 }
 0x3b4   :  { %3969 = vmatpush1.bf16.msra.mxu0 %v5482_v49  ;;  %4001 = vmatpush1.bf16.msra.mxu1 %v5490_v58 }
 0x3b5   :  { %3971 = vmatprep.subr.bf16.mxu0 %v5497_v0  ;;  %4003 = vmatprep.subr.bf16.mxu1 %v5505_v12 }
 0x3b8   :  { %3973 = vmatpush1.bf16.msra.mxu0 %v5501_v6  ;;  %4005 = vmatpush1.bf16.msra.mxu1 %v5509_v18 }
 0x3b9   :  { %4007 = vmatprep.subr.bf16.mxu0 %v5513_v23  ;;  %4071 = vmatprep.subr.bf16.mxu1 %v5517_v29 }
 0x3bb   :  { %1655 = vmatmul.mubr.f32.vlgmr.msra.gmra.mrb[6].mxu0 %v1423_v61  ;;  %1726 = vmatmul.mubr.f32.vlgmr.msra.gmra.mrb[6].mxu1 %v1423_v61  ;;  %v6914_v61 = vld [vmem:[#allocation29_spill] sm:$0xff] }
 0x3bc   :  { %4009 = vmatpush1.bf16.msra.mxu0 %v5519_v32  ;;  %4073 = vmatpush1.bf16.msra.mxu1 %v5527_v44 }
 0x3bd   :  { %4011 = vmatprep.subr.bf16.mxu0 %v5523_v38  ;;  %4075 = vmatprep.subr.bf16.mxu1 %v5531_v51 }
 0x3c0   :  { %4013 = vmatpush1.bf16.msra.mxu0 %v5535_v57  ;;  %4077 = vmatpush1.bf16.msra.mxu1 %v5542_v8 }
 0x3c1   :  { %4015 = vmatprep.subr.bf16.mxu0 %v5539_v62  ;;  %4079 = vmatprep.subr.bf16.mxu1 %v5546_v13 }
 0x3c4   :  { %4017 = vmatpush1.bf16.msra.mxu0 %v6898_v33  ;;  %4081 = vmatpush1.bf16.msra.mxu1 %v6899_v19 }
 0x3c5   :  { %4019 = vmatprep.subr.bf16.mxu0 %v6900_v27  ;;  %4083 = vmatprep.subr.bf16.mxu1 %v6901_v52  ;;  %v6956_v27 = vld [vmem:[#allocation72_spill] sm:$0xff] }
 0x3c8   :  { %4021 = vmatpush1.bf16.msra.mxu0 %v6902_v36  ;;  %4085 = vmatpush1.bf16.msra.mxu1 %v6903_v10  ;;  %v6954_v10 = vld [vmem:[#allocation9_spill] sm:$0xff] }
 0x3c9   :  { %4023 = vmatprep.subr.bf16.mxu0 %v6904_v25  ;;  %4087 = vmatprep.subr.bf16.mxu1 %v6905_v48  ;;  %v6915_v25 = vld [vmem:[#allocation30_spill] sm:$0xff]  ;;  %v6916_v48 = vld [vmem:[#allocation31_spill] sm:$0xff] }
 0x3cc   :  { %4025 = vmatpush1.bf16.msra.mxu0 %v6906_v55  ;;  %4089 = vmatpush1.bf16.msra.mxu1 %v6907_v41  ;;  %v6917_v55 = vld [vmem:[#allocation32_spill] sm:$0xff]  ;;  %v6918_v41 = vld [vmem:[#allocation33_spill] sm:$0xff] }
 0x3cd   :  { %4027 = vmatprep.subr.bf16.mxu0 %v6908_v9  ;;  %4091 = vmatprep.subr.bf16.mxu1 %v6909_v46  ;;  %v6919_v9 = vld [vmem:[#allocation34_spill] sm:$0xff]  ;;  %v6920_v46 = vld [vmem:[#allocation35_spill] sm:$0xff] }
 0x3d0   :  { %4029 = vmatpush1.bf16.msra.mxu0 %v6910_v28  ;;  %4093 = vmatpush1.bf16.msra.mxu1 %v6911_v5  ;;  %v6921_v28 = vld [vmem:[#allocation36_spill] sm:$0xff]  ;;  %v6922_v5 = vld [vmem:[#allocation37_spill] sm:$0xff] }
 0x3d1   :  { %4031 = vmatprep.subr.bf16.mxu0 %v6912_v4  ;;  %4095 = vmatprep.subr.bf16.mxu1 %v6913_v59  ;;  %v6923_v4 = vld [vmem:[#allocation38_spill] sm:$0xff]  ;;  %v6924_v59 = vld [vmem:[#allocation39_spill] sm:$0xff] }
 0x3d4   :  { %4033 = vmatpush1.bf16.msra.mxu0 %v6914_v61  ;;  %4097 = vmatpush1.bf16.msra.mxu1 %v6915_v25  ;;  %v6925_v61 = vld [vmem:[#allocation40_spill] sm:$0xff]  ;;  %v6926_v25 = vld [vmem:[#allocation41_spill] sm:$0xff] }
 0x3d5   :  { %4035 = vmatprep.subr.bf16.mxu0 %v6916_v48  ;;  %4099 = vmatprep.subr.bf16.mxu1 %v6917_v55  ;;  %v6927_v48 = vld [vmem:[#allocation42_spill] sm:$0xff]  ;;  %v6928_v55 = vld [vmem:[#allocation43_spill] sm:$0xff] }
 0x3d8   :  { %4037 = vmatpush1.bf16.msra.mxu0 %v6918_v41  ;;  %4101 = vmatpush1.bf16.msra.mxu1 %v6919_v9  ;;  %v6929_v41 = vld [vmem:[#allocation44_spill] sm:$0xff]  ;;  %v6930_v9 = vld [vmem:[#allocation45_spill] sm:$0xff] }
 0x3d9   :  { %4039 = vmatprep.subr.bf16.mxu0 %v6920_v46  ;;  %4103 = vmatprep.subr.bf16.mxu1 %v6921_v28  ;;  %v6931_v46 = vld [vmem:[#allocation46_spill] sm:$0xff]  ;;  %v6932_v28 = vld [vmem:[#allocation47_spill] sm:$0xff] }
 0x3dc   :  { %4041 = vmatpush1.bf16.msra.mxu0 %v6922_v5  ;;  %4105 = vmatpush1.bf16.msra.mxu1 %v6923_v4  ;;  %v6933_v5 = vld [vmem:[#allocation48_spill] sm:$0xff]  ;;  %v6934_v4 = vld [vmem:[#allocation49_spill] sm:$0xff] }
 0x3dd   :  { %4043 = vmatprep.subr.bf16.mxu0 %v6924_v59  ;;  %4107 = vmatprep.subr.bf16.mxu1 %v6925_v61  ;;  %v6935_v59 = vld [vmem:[#allocation50_spill] sm:$0xff]  ;;  %v6936_v61 = vld [vmem:[#allocation51_spill] sm:$0xff] }
 0x3e0   :  { %4045 = vmatpush1.bf16.msra.mxu0 %v6926_v25  ;;  %4109 = vmatpush1.bf16.msra.mxu1 %v6927_v48  ;;  %v6937_v25 = vld [vmem:[#allocation52_spill] sm:$0xff]  ;;  %v6938_v48 = vld [vmem:[#allocation53_spill] sm:$0xff] }
 0x3e1   :  { %4047 = vmatprep.subr.bf16.mxu0 %v6928_v55  ;;  %4111 = vmatprep.subr.bf16.mxu1 %v6929_v41  ;;  %v6939_v55 = vld [vmem:[#allocation54_spill] sm:$0xff]  ;;  %v6940_v41 = vld [vmem:[#allocation55_spill] sm:$0xff] }
 0x3e4   :  { %4049 = vmatpush1.bf16.msra.mxu0 %v6930_v9  ;;  %4113 = vmatpush1.bf16.msra.mxu1 %v6931_v46  ;;  %v6941_v9 = vld [vmem:[#allocation56_spill] sm:$0xff]  ;;  %v6942_v46 = vld [vmem:[#allocation57_spill] sm:$0xff] }
 0x3e5   :  { %4051 = vmatprep.subr.bf16.mxu0 %v6932_v28  ;;  %4115 = vmatprep.subr.bf16.mxu1 %v6933_v5  ;;  %v6943_v28 = vld [vmem:[#allocation58_spill] sm:$0xff]  ;;  %v6944_v5 = vld [vmem:[#allocation59_spill] sm:$0xff] }
 0x3e8   :  { %4053 = vmatpush1.bf16.msra.mxu0 %v6934_v4  ;;  %4117 = vmatpush1.bf16.msra.mxu1 %v6935_v59  ;;  %v6945_v4 = vld [vmem:[#allocation60_spill] sm:$0xff]  ;;  %v6946_v59 = vld [vmem:[#allocation61_spill] sm:$0xff] }
 0x3e9   :  { %4055 = vmatprep.subr.bf16.mxu0 %v6936_v61  ;;  %4119 = vmatprep.subr.bf16.mxu1 %v6937_v25  ;;  %v6947_v61 = vld [vmem:[#allocation62_spill] sm:$0xff]  ;;  %v6948_v25 = vld [vmem:[#allocation63_spill] sm:$0xff] }
 0x3ec   :  { %4057 = vmatpush1.bf16.msra.mxu0 %v6938_v48  ;;  %4121 = vmatpush1.bf16.msra.mxu1 %v6939_v55  ;;  %v6949_v48 = vld [vmem:[#allocation64_spill] sm:$0xff]  ;;  %v6950_v55 = vld [vmem:[#allocation65_spill] sm:$0xff] }
 0x3ed   :  { %4059 = vmatprep.subr.bf16.mxu0 %v6940_v41  ;;  %4123 = vmatprep.subr.bf16.mxu1 %v6941_v9  ;;  %v6951_v41 = vld [vmem:[#allocation66_spill] sm:$0xff] }
 0x3ee   :  { %v6952_v9 = vld [vmem:[#allocation10_spill] sm:$0xff] }
 0x3f0   :  { %4061 = vmatpush1.bf16.msra.mxu0 %v6942_v46  ;;  %4125 = vmatpush1.bf16.msra.mxu1 %v6943_v28  ;;  %v6953_v46 = vld [vmem:[#allocation11_spill] sm:$0xff] }
 0x3f1   :  { %4063 = vmatprep.subr.bf16.mxu0 %v6944_v5  ;;  %4127 = vmatprep.subr.bf16.mxu1 %v6945_v4 }
 0x3f4   :  { %4065 = vmatpush1.bf16.msra.mxu0 %v6946_v59  ;;  %4129 = vmatpush1.bf16.msra.mxu1 %v6947_v61 }
 0x3f5   :  { %4067 = vmatprep.subr.bf16.mxu0 %v6948_v25  ;;  %4131 = vmatprep.subr.bf16.mxu1 %v6949_v48  ;;  %v6955_v48 = vld [vmem:[#allocation71_spill] sm:$0xff] }
 0x3f8   :  { %4069 = vmatpush1.bf16.msra.mxu0 %v6950_v55  ;;  %4133 = vmatpush1.bf16.msra.mxu1 %v6951_v41 }
 0x3f9   :  { %4135 = vmatprep.subr.bf16.mxu0 %v6952_v9  ;;  %4167 = vmatprep.subr.bf16.mxu1 %v6953_v46 }
 0x46e   :  { %v1490_v28 = vpop.f32.mrb[20].mxu0  ;;  %v1561_v5 = vpop.f32.mrb[20].mxu1 }
 0x46f   :  { %v1491_v4 = vadd.f32 %v1490_v28, %v6954_v10  ;;  %v1492_v36 = vpop.f32.mrb[21].mxu0  ;;  %v1563_v59 = vpop.f32.mrb[21].mxu1  ;;  %v1562_v55 = vadd.f32 %v1561_v5, %v6955_v48 }
 0x470   :  { %v1493_v61 = vadd.f32 %v1492_v36, %v6893_v20  ;;  %v1564_v41 = vadd.f32 %v1563_v59, %v6956_v27 }
 0x471   :  { %v3331_v52 = vmul.f32 -1.442695, %v1491_v4  ;;  %v3333_v19 = vmul.f32 -1.442695, %v1562_v55 }
 0x472   :  { %v3332_v25 = vmul.f32 -1.442695, %v1493_v61 }
 0x473   :  { %5053 = vpow2.f32 %v3331_v52 }
 0x474   :  { %5055 = vpow2.f32 %v3332_v25 }
 0x475   :  { %5057 = vtanh.f32 %v1564_v41 }
 0x476   :  { %5059 = vpow2.f32 %v3333_v19 }
 0x47d   :  { %v5054_v9 = vpop.eup %5053 }
 0x47e   :  { %v1575_v33 = vadd.f32 1.0, %v5054_v9  ;;  %v5056_v46 = vpop.eup %5055 }
 0x47f   :  { %v1576_v28 = vadd.f32 1.0, %v5056_v46  ;;  %v5058_v10 = vpop.eup %5057 }
 0x480   :  { %5061 = vrcp.f32 %v1575_v33  ;;  %v5060_v13 = vpop.eup %5059 }
 0x481   :  { %5063 = vrcp.f32 %v1576_v28  ;;  %v1577_v52 = vadd.f32 1.0, %v5060_v13  ;;  %v6957_v13 = vld [vmem:[#allocation69_spill] sm:$0xff] }
 0x483   :  { %5065 = vrcp.f32 %v1577_v52 }
 0x48a   :  { %v5062_v36 = vpop.eup %5061 }
 0x48b   :  { %v1586_v4 = vmul.f32 %v5062_v36, %v5058_v10  ;;  %v5064_v61 = vpop.eup %5063 }
 0x48c   :  { %v1585_v25 = vmul.f32 %v5064_v61, %v5982_v1 }
 0x48d   :  { %v5066_v1 = vpop.eup %5065 }
 0x48e   :  { %v1656_v5 = vpop.f32.mrb[6].mxu0  ;;  %v1727_v48 = vpop.f32.mrb[6].mxu1  ;;  %v6096_v59 = vadd.f32 %v1586_v4, %v1585_v25 }
 0x48f   :  { %v4908_v55 = vadd.f32 %v1656_v5, %v6896_v16  ;;  %v1658_v41 = vpop.f32.mrb[7].mxu0  ;;  %v1729_v9 = vpop.f32.mrb[7].mxu1  ;;  %v4924_v10 = vadd.f32 %v1727_v48, %v6957_v13 }
 0x490   :  { %v4909_v33 = vadd.f32 %v1658_v41, %v6836_v3  ;;  %5067 = vtanh.f32 %v6096_v59  ;;  %v4925_v28 = vadd.f32 %v1729_v9, %v5741_v15 }
 0x491   :  { %v3334_v19 = vmul.f32 -1.442695, %v4908_v55  ;;  %v3336_v4 = vmul.f32 -1.442695, %v4924_v10 }
 0x492   :  { %v3335_v46 = vmul.f32 -1.442695, %v4909_v33 }
 0x493   :  { %5069 = vpow2.f32 %v3334_v19 }
 0x494   :  { %5071 = vpow2.f32 %v3335_v46 }
 0x495   :  { %5073 = vtanh.f32 %v4925_v28 }
 0x496   :  { %5075 = vpow2.f32 %v3336_v4  ;;  %v6960_v4 = vld [vmem:[#allocation15_spill] sm:$0xff] }
 0x49a   :  { %v5068_v36 = vpop.eup %5067 }
 0x49b   :  { %v1589_v61 = vmul.f32 %v5068_v36, %v5066_v1 }
 0x49d   :  { %v5070_v25 = vpop.eup %5069  ;;  %1824 = vmatprep.mubr.f32.mxu0 %v1589_v61  ;;  %1895 = vmatprep.mubr.f32.mxu1 %v1589_v61  ;;  %v6961_v61 = vld [vmem:[#allocation14_spill] sm:$0xff] }
 0x49e   :  { %v1745_v5 = vadd.f32 1.0, %v5070_v25  ;;  %v5072_v52 = vpop.eup %5071  ;;  %v6962_v25 = vld [vmem:[#allocation16_spill] sm:$0xff] }
 0x49f   :  { %v1746_v55 = vadd.f32 1.0, %v5072_v52  ;;  %v5074_v41 = vpop.eup %5073  ;;  %v6964_v52 = vld [vmem:[#allocation19_spill] sm:$0xff] }
 0x4a0   :  { %5077 = vrcp.f32 %v1745_v5  ;;  %v5076_v33 = vpop.eup %5075  ;;  %v6963_v5 = vld [vmem:[#allocation17_spill] sm:$0xff] }
 0x4a1   :  { %5079 = vrcp.f32 %v1746_v55  ;;  %v1747_v13 = vadd.f32 1.0, %v5076_v33  ;;  %v6965_v55 = vld [vmem:[#allocation18_spill] sm:$0xff]  ;;  %v6967_v33 = vld [vmem:[#allocation21_spill] sm:$0xff] }
 0x4a3   :  { %5081 = vrcp.f32 %v1747_v13  ;;  %v6959_v13 = vld [vmem:[#allocation13_spill] sm:$0xff] }
 0x4aa   :  { %v5078_v19 = vpop.eup %5077 }
 0x4ab   :  { %v1756_v48 = vmul.f32 %v5078_v19, %v5074_v41  ;;  %v5080_v46 = vpop.eup %5079  ;;  %v6966_v41 = vld [vmem:[#allocation20_spill] sm:$0xff]  ;;  %v6968_v19 = vld [vmem:[#allocation22_spill] sm:$0xff] }
 0x4ac   :  { %v1755_v9 = vmul.f32 %v5080_v46, %v5990_v42  ;;  %v6958_v42 = vld [vmem:[#allocation12_spill] sm:$0xff] }
 0x4ad   :  { %v5082_v1 = vpop.eup %5081  ;;  %v6970_v46 = vld [vmem:[#allocation24_spill] sm:$0xff] }
 0x4ae   :  { %v6104_v10 = vadd.f32 %v1756_v48, %v1755_v9  ;;  %v6969_v48 = vld [vmem:[#allocation23_spill] sm:$0xff]  ;;  %v6971_v9 = vld [vmem:[#allocation25_spill] sm:$0xff] }
 0x4b0   :  { %5083 = vtanh.f32 %v6104_v10 }
 0x4ba   :  { %v5084_v28 = vpop.eup %5083 }
 0x4bb   :  { %v1759_v36 = vmul.f32 %v5084_v28, %v5082_v1  ;;  %v6972_v1 = vld [vmem:[#allocation26_spill] sm:$0xff]  ;;  %v6973_v28 = vld [vmem:[#allocation27_spill] sm:$0xff] }
 0x4bd   :  { %1825 = vmatmul.mubr.f32.vlgmr.msra.gmra.mrb[22].mxu0 %v1759_v36  ;;  %1896 = vmatmul.mubr.f32.vlgmr.msra.gmra.mrb[22].mxu1 %v1759_v36 }
 0x4be   :  { %4137 = vmatpush1.bf16.msra.mxu0 %v5369_v24  ;;  %4169 = vmatpush1.bf16.msra.mxu1 %v5376_v30 }
 0x4bf   :  { %4139 = vmatprep.subr.bf16.mxu0 %v5383_v34  ;;  %4171 = vmatprep.subr.bf16.mxu1 %v5391_v40 }
 0x4c0   :  { %1990 = vmatprep.mubr.f32.mxu0 %v6775_v22  ;;  %2061 = vmatprep.mubr.f32.mxu1 %v6775_v22 }
 0x4c2   :  { %4141 = vmatpush1.bf16.msra.mxu0 %v5387_v37  ;;  %4173 = vmatpush1.bf16.msra.mxu1 %v5395_v43 }
 0x4c3   :  { %4143 = vmatprep.subr.bf16.mxu0 %v5402_v47  ;;  %4175 = vmatprep.subr.bf16.mxu1 %v5410_v53 }
 0x4c6   :  { %4145 = vmatpush1.bf16.msra.mxu0 %v5406_v50  ;;  %4177 = vmatpush1.bf16.msra.mxu1 %v5414_v56 }
 0x4c7   :  { %4147 = vmatprep.subr.bf16.mxu0 %v5421_v60  ;;  %4179 = vmatprep.subr.bf16.mxu1 %v5429_v2 }
 0x4ca   :  { %4149 = vmatpush1.bf16.msra.mxu0 %v5425_v63  ;;  %4181 = vmatpush1.bf16.msra.mxu1 %v5433_v7 }
 0x4cb   :  { %4151 = vmatprep.subr.bf16.mxu0 %v5440_v11  ;;  %4183 = vmatprep.subr.bf16.mxu1 %v5448_v17 }
 0x4ce   :  { %4153 = vmatpush1.bf16.msra.mxu0 %v5444_v14  ;;  %4185 = vmatpush1.bf16.msra.mxu1 %v5452_v21 }
 0x4cf   :  { %4155 = vmatprep.subr.bf16.mxu0 %v5459_v26  ;;  %4187 = vmatprep.subr.bf16.mxu1 %v5467_v35 }
 0x4d2   :  { %4157 = vmatpush1.bf16.msra.mxu0 %v5463_v31  ;;  %4189 = vmatpush1.bf16.msra.mxu1 %v5471_v39 }
 0x4d3   :  { %4159 = vmatprep.subr.bf16.mxu0 %v5478_v45  ;;  %4191 = vmatprep.subr.bf16.mxu1 %v5486_v54 }
 0x4d6   :  { %4161 = vmatpush1.bf16.msra.mxu0 %v5482_v49  ;;  %4193 = vmatpush1.bf16.msra.mxu1 %v5490_v58 }
 0x4d7   :  { %4163 = vmatprep.subr.bf16.mxu0 %v5497_v0  ;;  %4195 = vmatprep.subr.bf16.mxu1 %v5505_v12 }
 0x4da   :  { %4165 = vmatpush1.bf16.msra.mxu0 %v5501_v6  ;;  %4197 = vmatpush1.bf16.msra.mxu1 %v5509_v18 }
 0x4db   :  { %4199 = vmatprep.subr.bf16.mxu0 %v5513_v23  ;;  %4263 = vmatprep.subr.bf16.mxu1 %v5517_v29 }
 0x4dd   :  { %1991 = vmatmul.mubr.f32.vlgmr.msra.gmra.mrb[8].mxu0 %v1759_v36  ;;  %2062 = vmatmul.mubr.f32.vlgmr.msra.gmra.mrb[8].mxu1 %v1759_v36  ;;  %v6974_v36 = vld [vmem:[#allocation28_spill] sm:$0xff] }
 0x4de   :  { %4201 = vmatpush1.bf16.msra.mxu0 %v5519_v32  ;;  %4265 = vmatpush1.bf16.msra.mxu1 %v5527_v44 }
 0x4df   :  { %4203 = vmatprep.subr.bf16.mxu0 %v5523_v38  ;;  %4267 = vmatprep.subr.bf16.mxu1 %v5531_v51 }
 0x4e2   :  { %4205 = vmatpush1.bf16.msra.mxu0 %v5535_v57  ;;  %4269 = vmatpush1.bf16.msra.mxu1 %v5542_v8 }
 0x4e3   :  { %4207 = vmatprep.subr.bf16.mxu0 %v5539_v62  ;;  %4271 = vmatprep.subr.bf16.mxu1 %v6958_v42 }
 0x4e6   :  { %4209 = vmatpush1.bf16.msra.mxu0 %v6959_v13  ;;  %4273 = vmatpush1.bf16.msra.mxu1 %v6960_v4 }
 0x4e7   :  { %4211 = vmatprep.subr.bf16.mxu0 %v6961_v61  ;;  %4275 = vmatprep.subr.bf16.mxu1 %v6962_v25 }
 0x4ea   :  { %4213 = vmatpush1.bf16.msra.mxu0 %v6963_v5  ;;  %4277 = vmatpush1.bf16.msra.mxu1 %v6964_v52  ;;  %v6975_v52 = vld [vmem:[#allocation29_spill] sm:$0xff] }
 0x4eb   :  { %4215 = vmatprep.subr.bf16.mxu0 %v6965_v55  ;;  %4279 = vmatprep.subr.bf16.mxu1 %v6966_v41  ;;  %v6976_v55 = vld [vmem:[#allocation30_spill] sm:$0xff]  ;;  %v6977_v41 = vld [vmem:[#allocation31_spill] sm:$0xff]  ;;  %v7015_v5 = vld [vmem:[#allocation9_spill] sm:$0xff] }
 0x4ee   :  { %4217 = vmatpush1.bf16.msra.mxu0 %v6967_v33  ;;  %4281 = vmatpush1.bf16.msra.mxu1 %v6968_v19  ;;  %v6978_v33 = vld [vmem:[#allocation32_spill] sm:$0xff]  ;;  %v6979_v19 = vld [vmem:[#allocation33_spill] sm:$0xff] }
 0x4ef   :  { %4219 = vmatprep.subr.bf16.mxu0 %v6969_v48  ;;  %4283 = vmatprep.subr.bf16.mxu1 %v6970_v46  ;;  %v6980_v48 = vld [vmem:[#allocation34_spill] sm:$0xff]  ;;  %v6981_v46 = vld [vmem:[#allocation35_spill] sm:$0xff] }
 0x4f2   :  { %4221 = vmatpush1.bf16.msra.mxu0 %v6971_v9  ;;  %4285 = vmatpush1.bf16.msra.mxu1 %v6972_v1  ;;  %v6982_v9 = vld [vmem:[#allocation36_spill] sm:$0xff]  ;;  %v6983_v1 = vld [vmem:[#allocation37_spill] sm:$0xff] }
 0x4f3   :  { %4223 = vmatprep.subr.bf16.mxu0 %v6973_v28  ;;  %4287 = vmatprep.subr.bf16.mxu1 %v6974_v36  ;;  %v6984_v28 = vld [vmem:[#allocation38_spill] sm:$0xff]  ;;  %v6985_v36 = vld [vmem:[#allocation39_spill] sm:$0xff] }
 0x4f6   :  { %4225 = vmatpush1.bf16.msra.mxu0 %v6975_v52  ;;  %4289 = vmatpush1.bf16.msra.mxu1 %v6976_v55  ;;  %v6986_v52 = vld [vmem:[#allocation40_spill] sm:$0xff]  ;;  %v6987_v55 = vld [vmem:[#allocation41_spill] sm:$0xff] }
 0x4f7   :  { %4227 = vmatprep.subr.bf16.mxu0 %v6977_v41  ;;  %4291 = vmatprep.subr.bf16.mxu1 %v6978_v33  ;;  %v6988_v41 = vld [vmem:[#allocation42_spill] sm:$0xff]  ;;  %v6989_v33 = vld [vmem:[#allocation43_spill] sm:$0xff] }
 0x4fa   :  { %4229 = vmatpush1.bf16.msra.mxu0 %v6979_v19  ;;  %4293 = vmatpush1.bf16.msra.mxu1 %v6980_v48  ;;  %v6990_v19 = vld [vmem:[#allocation44_spill] sm:$0xff]  ;;  %v6991_v48 = vld [vmem:[#allocation45_spill] sm:$0xff] }
 0x4fb   :  { %4231 = vmatprep.subr.bf16.mxu0 %v6981_v46  ;;  %4295 = vmatprep.subr.bf16.mxu1 %v6982_v9  ;;  %v6992_v46 = vld [vmem:[#allocation46_spill] sm:$0xff]  ;;  %v6993_v9 = vld [vmem:[#allocation47_spill] sm:$0xff] }
 0x4fe   :  { %4233 = vmatpush1.bf16.msra.mxu0 %v6983_v1  ;;  %4297 = vmatpush1.bf16.msra.mxu1 %v6984_v28  ;;  %v6994_v1 = vld [vmem:[#allocation48_spill] sm:$0xff]  ;;  %v6995_v28 = vld [vmem:[#allocation49_spill] sm:$0xff] }
 0x4ff   :  { %4235 = vmatprep.subr.bf16.mxu0 %v6985_v36  ;;  %4299 = vmatprep.subr.bf16.mxu1 %v6986_v52  ;;  %v6996_v36 = vld [vmem:[#allocation50_spill] sm:$0xff]  ;;  %v6997_v52 = vld [vmem:[#allocation51_spill] sm:$0xff] }
 0x502   :  { %4237 = vmatpush1.bf16.msra.mxu0 %v6987_v55  ;;  %4301 = vmatpush1.bf16.msra.mxu1 %v6988_v41  ;;  %v6998_v55 = vld [vmem:[#allocation52_spill] sm:$0xff]  ;;  %v6999_v41 = vld [vmem:[#allocation53_spill] sm:$0xff] }
 0x503   :  { %4239 = vmatprep.subr.bf16.mxu0 %v6989_v33  ;;  %4303 = vmatprep.subr.bf16.mxu1 %v6990_v19  ;;  %v7000_v33 = vld [vmem:[#allocation54_spill] sm:$0xff]  ;;  %v7001_v19 = vld [vmem:[#allocation55_spill] sm:$0xff] }
 0x506   :  { %4241 = vmatpush1.bf16.msra.mxu0 %v6991_v48  ;;  %4305 = vmatpush1.bf16.msra.mxu1 %v6992_v46  ;;  %v7002_v48 = vld [vmem:[#allocation56_spill] sm:$0xff]  ;;  %v7003_v46 = vld [vmem:[#allocation57_spill] sm:$0xff] }
 0x507   :  { %4243 = vmatprep.subr.bf16.mxu0 %v6993_v9  ;;  %4307 = vmatprep.subr.bf16.mxu1 %v6994_v1  ;;  %v7004_v9 = vld [vmem:[#allocation58_spill] sm:$0xff]  ;;  %v7005_v1 = vld [vmem:[#allocation59_spill] sm:$0xff] }
 0x50a   :  { %4245 = vmatpush1.bf16.msra.mxu0 %v6995_v28  ;;  %4309 = vmatpush1.bf16.msra.mxu1 %v6996_v36  ;;  %v7006_v28 = vld [vmem:[#allocation60_spill] sm:$0xff]  ;;  %v7007_v36 = vld [vmem:[#allocation61_spill] sm:$0xff] }
 0x50b   :  { %4247 = vmatprep.subr.bf16.mxu0 %v6997_v52  ;;  %4311 = vmatprep.subr.bf16.mxu1 %v6998_v55  ;;  %v7008_v52 = vld [vmem:[#allocation62_spill] sm:$0xff]  ;;  %v7009_v55 = vld [vmem:[#allocation63_spill] sm:$0xff] }
 0x50e   :  { %4249 = vmatpush1.bf16.msra.mxu0 %v6999_v41  ;;  %4313 = vmatpush1.bf16.msra.mxu1 %v7000_v33  ;;  %v7010_v41 = vld [vmem:[#allocation64_spill] sm:$0xff]  ;;  %v7011_v33 = vld [vmem:[#allocation65_spill] sm:$0xff] }
 0x50f   :  { %4251 = vmatprep.subr.bf16.mxu0 %v7001_v19  ;;  %4315 = vmatprep.subr.bf16.mxu1 %v7002_v48  ;;  %v7012_v19 = vld [vmem:[#allocation66_spill] sm:$0xff] }
 0x510   :  { %v7013_v48 = vld [vmem:[#allocation10_spill] sm:$0xff] }
 0x512   :  { %4253 = vmatpush1.bf16.msra.mxu0 %v7003_v46  ;;  %4317 = vmatpush1.bf16.msra.mxu1 %v7004_v9  ;;  %v7014_v46 = vld [vmem:[#allocation11_spill] sm:$0xff] }
 0x513   :  { %4255 = vmatprep.subr.bf16.mxu0 %v7005_v1  ;;  %4319 = vmatprep.subr.bf16.mxu1 %v7006_v28 }
 0x516   :  { %4257 = vmatpush1.bf16.msra.mxu0 %v7007_v36  ;;  %4321 = vmatpush1.bf16.msra.mxu1 %v7008_v52 }
 0x517   :  { %4259 = vmatprep.subr.bf16.mxu0 %v7009_v55  ;;  %4323 = vmatprep.subr.bf16.mxu1 %v7010_v41  ;;  %v7016_v41 = vld [vmem:[#allocation71_spill] sm:$0xff] }
 0x51a   :  { %4261 = vmatpush1.bf16.msra.mxu0 %v7011_v33  ;;  %4325 = vmatpush1.bf16.msra.mxu1 %v7012_v19 }
 0x51b   :  { %4327 = vmatprep.subr.bf16.mxu0 %v7013_v48  ;;  %4359 = vmatprep.subr.bf16.mxu1 %v7014_v46 }
 0x590   :  { %v1826_v9 = vpop.f32.mrb[22].mxu0  ;;  %v1897_v1 = vpop.f32.mrb[22].mxu1 }
 0x591   :  { %v1827_v28 = vadd.f32 %v1826_v9, %v7015_v5  ;;  %v1828_v25 = vpop.f32.mrb[23].mxu0  ;;  %v1899_v36 = vpop.f32.mrb[23].mxu1  ;;  %v1898_v33 = vadd.f32 %v1897_v1, %v7016_v41 }
 0x592   :  { %v1829_v52 = vadd.f32 %v1828_v25, %v6893_v20  ;;  %v1900_v19 = vadd.f32 %v1899_v36, %v6956_v27 }
 0x593   :  { %v3337_v61 = vmul.f32 -1.442695, %v1827_v28  ;;  %v3339_v4 = vmul.f32 -1.442695, %v1898_v33 }
 0x594   :  { %v3338_v55 = vmul.f32 -1.442695, %v1829_v52 }
 0x595   :  { %5085 = vpow2.f32 %v3337_v61 }
 0x596   :  { %5087 = vpow2.f32 %v3338_v55 }
 0x597   :  { %5089 = vtanh.f32 %v1900_v19 }
 0x598   :  { %5091 = vpow2.f32 %v3339_v4 }
 0x59f   :  { %v5086_v48 = vpop.eup %5085 }
 0x5a0   :  { %v1911_v13 = vadd.f32 1.0, %v5086_v48  ;;  %v5088_v46 = vpop.eup %5087 }
 0x5a1   :  { %v1912_v9 = vadd.f32 1.0, %v5088_v46  ;;  %v5090_v5 = vpop.eup %5089 }
 0x5a2   :  { %5093 = vrcp.f32 %v1911_v13  ;;  %v5092_v42 = vpop.eup %5091 }
 0x5a3   :  { %5095 = vrcp.f32 %v1912_v9  ;;  %v1913_v61 = vadd.f32 1.0, %v5092_v42  ;;  %v7017_v42 = vld [vmem:[#allocation69_spill] sm:$0xff] }
 0x5a5   :  { %5097 = vrcp.f32 %v1913_v61 }
 0x5ac   :  { %v5094_v25 = vpop.eup %5093 }
 0x5ad   :  { %v1922_v28 = vmul.f32 %v5094_v25, %v5090_v5  ;;  %v5096_v52 = vpop.eup %5095 }
 0x5ae   :  { %v1921_v55 = vmul.f32 %v5096_v52, %v6096_v59 }
 0x5af   :  { %v5098_v59 = vpop.eup %5097 }
 0x5b0   :  { %v1992_v1 = vpop.f32.mrb[8].mxu0  ;;  %v2063_v41 = vpop.f32.mrb[8].mxu1  ;;  %v6210_v36 = vadd.f32 %v1922_v28, %v1921_v55 }
 0x5b1   :  { %v4910_v33 = vadd.f32 %v1992_v1, %v6896_v16  ;;  %v1994_v19 = vpop.f32.mrb[9].mxu0  ;;  %v2065_v48 = vpop.f32.mrb[9].mxu1  ;;  %v4926_v5 = vadd.f32 %v2063_v41, %v7017_v42 }
 0x5b2   :  { %v4911_v13 = vadd.f32 %v1994_v19, %v6836_v3  ;;  %5099 = vtanh.f32 %v6210_v36  ;;  %v4927_v9 = vadd.f32 %v2065_v48, %v5741_v15 }
 0x5b3   :  { %v3340_v4 = vmul.f32 -1.442695, %v4910_v33  ;;  %v3342_v28 = vmul.f32 -1.442695, %v4926_v5 }
 0x5b4   :  { %v3341_v46 = vmul.f32 -1.442695, %v4911_v13 }
 0x5b5   :  { %5101 = vpow2.f32 %v3340_v4 }
 0x5b6   :  { %5103 = vpow2.f32 %v3341_v46 }
 0x5b7   :  { %5105 = vtanh.f32 %v4927_v9 }
 0x5b8   :  { %5107 = vpow2.f32 %v3342_v28  ;;  %v7020_v28 = vld [vmem:[#allocation15_spill] sm:$0xff] }
 0x5bc   :  { %v5100_v25 = vpop.eup %5099 }
 0x5bd   :  { %v1925_v52 = vmul.f32 %v5100_v25, %v5098_v59 }
 0x5bf   :  { %v5102_v55 = vpop.eup %5101  ;;  %2160 = vmatprep.mubr.f32.mxu0 %v1925_v52  ;;  %2231 = vmatprep.mubr.f32.mxu1 %v1925_v52  ;;  %v7021_v52 = vld [vmem:[#allocation14_spill] sm:$0xff] }
 0x5c0   :  { %v2081_v1 = vadd.f32 1.0, %v5102_v55  ;;  %v5104_v61 = vpop.eup %5103  ;;  %v7022_v55 = vld [vmem:[#allocation16_spill] sm:$0xff] }
 0x5c1   :  { %v2082_v33 = vadd.f32 1.0, %v5104_v61  ;;  %v5106_v19 = vpop.eup %5105  ;;  %v7024_v61 = vld [vmem:[#allocation19_spill] sm:$0xff] }
 0x5c2   :  { %5109 = vrcp.f32 %v2081_v1  ;;  %v5108_v13 = vpop.eup %5107  ;;  %v7023_v1 = vld [vmem:[#allocation17_spill] sm:$0xff] }
 0x5c3   :  { %5111 = vrcp.f32 %v2082_v33  ;;  %v2083_v42 = vadd.f32 1.0, %v5108_v13  ;;  %v7025_v33 = vld [vmem:[#allocation18_spill] sm:$0xff]  ;;  %v7027_v13 = vld [vmem:[#allocation21_spill] sm:$0xff] }
 0x5c5   :  { %5113 = vrcp.f32 %v2083_v42  ;;  %v7019_v42 = vld [vmem:[#allocation13_spill] sm:$0xff] }
 0x5cc   :  { %v5110_v4 = vpop.eup %5109 }
 0x5cd   :  { %v2092_v41 = vmul.f32 %v5110_v4, %v5106_v19  ;;  %v5112_v46 = vpop.eup %5111  ;;  %v7026_v19 = vld [vmem:[#allocation20_spill] sm:$0xff]  ;;  %v7028_v4 = vld [vmem:[#allocation22_spill] sm:$0xff] }
 0x5ce   :  { %v2091_v48 = vmul.f32 %v5112_v46, %v6104_v10  ;;  %v7018_v10 = vld [vmem:[#allocation12_spill] sm:$0xff] }
 0x5cf   :  { %v5114_v59 = vpop.eup %5113  ;;  %v7030_v46 = vld [vmem:[#allocation24_spill] sm:$0xff] }
 0x5d0   :  { %v6218_v5 = vadd.f32 %v2092_v41, %v2091_v48  ;;  %v7029_v41 = vld [vmem:[#allocation23_spill] sm:$0xff]  ;;  %v7031_v48 = vld [vmem:[#allocation25_spill] sm:$0xff] }
 0x5d2   :  { %5115 = vtanh.f32 %v6218_v5 }
 0x5dc   :  { %v5116_v9 = vpop.eup %5115 }
 0x5dd   :  { %v2095_v25 = vmul.f32 %v5116_v9, %v5114_v59  ;;  %v7032_v59 = vld [vmem:[#allocation26_spill] sm:$0xff]  ;;  %v7033_v9 = vld [vmem:[#allocation27_spill] sm:$0xff] }
 0x5df   :  { %2161 = vmatmul.mubr.f32.vlgmr.msra.gmra.mrb[24].mxu0 %v2095_v25  ;;  %2232 = vmatmul.mubr.f32.vlgmr.msra.gmra.mrb[24].mxu1 %v2095_v25 }
 0x5e0   :  { %4329 = vmatpush1.bf16.msra.mxu0 %v5369_v24  ;;  %4361 = vmatpush1.bf16.msra.mxu1 %v5376_v30 }
 0x5e1   :  { %4331 = vmatprep.subr.bf16.mxu0 %v5383_v34  ;;  %4363 = vmatprep.subr.bf16.mxu1 %v5391_v40 }
 0x5e2   :  { %2326 = vmatprep.mubr.f32.mxu0 %v6775_v22  ;;  %2397 = vmatprep.mubr.f32.mxu1 %v6775_v22 }
 0x5e4   :  { %4333 = vmatpush1.bf16.msra.mxu0 %v5387_v37  ;;  %4365 = vmatpush1.bf16.msra.mxu1 %v5395_v43 }
 0x5e5   :  { %4335 = vmatprep.subr.bf16.mxu0 %v5402_v47  ;;  %4367 = vmatprep.subr.bf16.mxu1 %v5410_v53 }
 0x5e8   :  { %4337 = vmatpush1.bf16.msra.mxu0 %v5406_v50  ;;  %4369 = vmatpush1.bf16.msra.mxu1 %v5414_v56 }
 0x5e9   :  { %4339 = vmatprep.subr.bf16.mxu0 %v5421_v60  ;;  %4371 = vmatprep.subr.bf16.mxu1 %v5429_v2 }
 0x5ec   :  { %4341 = vmatpush1.bf16.msra.mxu0 %v5425_v63  ;;  %4373 = vmatpush1.bf16.msra.mxu1 %v5433_v7 }
 0x5ed   :  { %4343 = vmatprep.subr.bf16.mxu0 %v5440_v11  ;;  %4375 = vmatprep.subr.bf16.mxu1 %v5448_v17 }
 0x5f0   :  { %4345 = vmatpush1.bf16.msra.mxu0 %v5444_v14  ;;  %4377 = vmatpush1.bf16.msra.mxu1 %v5452_v21 }
 0x5f1   :  { %4347 = vmatprep.subr.bf16.mxu0 %v5459_v26  ;;  %4379 = vmatprep.subr.bf16.mxu1 %v5467_v35 }
 0x5f4   :  { %4349 = vmatpush1.bf16.msra.mxu0 %v5463_v31  ;;  %4381 = vmatpush1.bf16.msra.mxu1 %v5471_v39 }
 0x5f5   :  { %4351 = vmatprep.subr.bf16.mxu0 %v5478_v45  ;;  %4383 = vmatprep.subr.bf16.mxu1 %v5486_v54 }
 0x5f8   :  { %4353 = vmatpush1.bf16.msra.mxu0 %v5482_v49  ;;  %4385 = vmatpush1.bf16.msra.mxu1 %v5490_v58 }
 0x5f9   :  { %4355 = vmatprep.subr.bf16.mxu0 %v5497_v0  ;;  %4387 = vmatprep.subr.bf16.mxu1 %v5505_v12 }
 0x5fc   :  { %4357 = vmatpush1.bf16.msra.mxu0 %v5501_v6  ;;  %4389 = vmatpush1.bf16.msra.mxu1 %v5509_v18 }
 0x5fd   :  { %4391 = vmatprep.subr.bf16.mxu0 %v5513_v23  ;;  %4455 = vmatprep.subr.bf16.mxu1 %v5517_v29 }
 0x5ff   :  { %2327 = vmatmul.mubr.f32.vlgmr.msra.gmra.mrb[10].mxu0 %v2095_v25  ;;  %2398 = vmatmul.mubr.f32.vlgmr.msra.gmra.mrb[10].mxu1 %v2095_v25  ;;  %v7034_v25 = vld [vmem:[#allocation28_spill] sm:$0xff] }
 0x600   :  { %4393 = vmatpush1.bf16.msra.mxu0 %v5519_v32  ;;  %4457 = vmatpush1.bf16.msra.mxu1 %v5527_v44 }
 0x601   :  { %4395 = vmatprep.subr.bf16.mxu0 %v5523_v38  ;;  %4459 = vmatprep.subr.bf16.mxu1 %v5531_v51 }
 0x604   :  { %4397 = vmatpush1.bf16.msra.mxu0 %v5535_v57  ;;  %4461 = vmatpush1.bf16.msra.mxu1 %v5542_v8 }
 0x605   :  { %4399 = vmatprep.subr.bf16.mxu0 %v5539_v62  ;;  %4463 = vmatprep.subr.bf16.mxu1 %v7018_v10 }
 0x608   :  { %4401 = vmatpush1.bf16.msra.mxu0 %v7019_v42  ;;  %4465 = vmatpush1.bf16.msra.mxu1 %v7020_v28 }
 0x609   :  { %4403 = vmatprep.subr.bf16.mxu0 %v7021_v52  ;;  %4467 = vmatprep.subr.bf16.mxu1 %v7022_v55 }
 0x60c   :  { %4405 = vmatpush1.bf16.msra.mxu0 %v7023_v1  ;;  %4469 = vmatpush1.bf16.msra.mxu1 %v7024_v61  ;;  %v7035_v61 = vld [vmem:[#allocation29_spill] sm:$0xff] }
 0x60d   :  { %4407 = vmatprep.subr.bf16.mxu0 %v7025_v33  ;;  %4471 = vmatprep.subr.bf16.mxu1 %v7026_v19  ;;  %v7036_v33 = vld [vmem:[#allocation30_spill] sm:$0xff]  ;;  %v7037_v19 = vld [vmem:[#allocation31_spill] sm:$0xff]  ;;  %v7075_v1 = vld [vmem:[#allocation9_spill] sm:$0xff] }
 0x610   :  { %4409 = vmatpush1.bf16.msra.mxu0 %v7027_v13  ;;  %4473 = vmatpush1.bf16.msra.mxu1 %v7028_v4  ;;  %v7038_v13 = vld [vmem:[#allocation32_spill] sm:$0xff]  ;;  %v7039_v4 = vld [vmem:[#allocation33_spill] sm:$0xff] }
 0x611   :  { %4411 = vmatprep.subr.bf16.mxu0 %v7029_v41  ;;  %4475 = vmatprep.subr.bf16.mxu1 %v7030_v46  ;;  %v7040_v41 = vld [vmem:[#allocation34_spill] sm:$0xff]  ;;  %v7041_v46 = vld [vmem:[#allocation35_spill] sm:$0xff] }
 0x614   :  { %4413 = vmatpush1.bf16.msra.mxu0 %v7031_v48  ;;  %4477 = vmatpush1.bf16.msra.mxu1 %v7032_v59  ;;  %v7042_v48 = vld [vmem:[#allocation36_spill] sm:$0xff]  ;;  %v7043_v59 = vld [vmem:[#allocation37_spill] sm:$0xff] }
 0x615   :  { %4415 = vmatprep.subr.bf16.mxu0 %v7033_v9  ;;  %4479 = vmatprep.subr.bf16.mxu1 %v7034_v25  ;;  %v7044_v9 = vld [vmem:[#allocation38_spill] sm:$0xff]  ;;  %v7045_v25 = vld [vmem:[#allocation39_spill] sm:$0xff] }
 0x618   :  { %4417 = vmatpush1.bf16.msra.mxu0 %v7035_v61  ;;  %4481 = vmatpush1.bf16.msra.mxu1 %v7036_v33  ;;  %v7046_v61 = vld [vmem:[#allocation40_spill] sm:$0xff]  ;;  %v7047_v33 = vld [vmem:[#allocation41_spill] sm:$0xff] }
 0x619   :  { %4419 = vmatprep.subr.bf16.mxu0 %v7037_v19  ;;  %4483 = vmatprep.subr.bf16.mxu1 %v7038_v13  ;;  %v7048_v19 = vld [vmem:[#allocation42_spill] sm:$0xff]  ;;  %v7049_v13 = vld [vmem:[#allocation43_spill] sm:$0xff] }
 0x61c   :  { %4421 = vmatpush1.bf16.msra.mxu0 %v7039_v4  ;;  %4485 = vmatpush1.bf16.msra.mxu1 %v7040_v41  ;;  %v7050_v4 = vld [vmem:[#allocation44_spill] sm:$0xff]  ;;  %v7051_v41 = vld [vmem:[#allocation45_spill] sm:$0xff] }
 0x61d   :  { %4423 = vmatprep.subr.bf16.mxu0 %v7041_v46  ;;  %4487 = vmatprep.subr.bf16.mxu1 %v7042_v48  ;;  %v7052_v46 = vld [vmem:[#allocation46_spill] sm:$0xff]  ;;  %v7053_v48 = vld [vmem:[#allocation47_spill] sm:$0xff] }
 0x620   :  { %4425 = vmatpush1.bf16.msra.mxu0 %v7043_v59  ;;  %4489 = vmatpush1.bf16.msra.mxu1 %v7044_v9  ;;  %v7054_v59 = vld [vmem:[#allocation48_spill] sm:$0xff]  ;;  %v7055_v9 = vld [vmem:[#allocation49_spill] sm:$0xff] }
 0x621   :  { %4427 = vmatprep.subr.bf16.mxu0 %v7045_v25  ;;  %4491 = vmatprep.subr.bf16.mxu1 %v7046_v61  ;;  %v7056_v25 = vld [vmem:[#allocation50_spill] sm:$0xff]  ;;  %v7057_v61 = vld [vmem:[#allocation51_spill] sm:$0xff] }
 0x624   :  { %4429 = vmatpush1.bf16.msra.mxu0 %v7047_v33  ;;  %4493 = vmatpush1.bf16.msra.mxu1 %v7048_v19  ;;  %v7058_v33 = vld [vmem:[#allocation52_spill] sm:$0xff]  ;;  %v7059_v19 = vld [vmem:[#allocation53_spill] sm:$0xff] }
 0x625   :  { %4431 = vmatprep.subr.bf16.mxu0 %v7049_v13  ;;  %4495 = vmatprep.subr.bf16.mxu1 %v7050_v4  ;;  %v7060_v13 = vld [vmem:[#allocation54_spill] sm:$0xff]  ;;  %v7061_v4 = vld [vmem:[#allocation55_spill] sm:$0xff] }
 0x628   :  { %4433 = vmatpush1.bf16.msra.mxu0 %v7051_v41  ;;  %4497 = vmatpush1.bf16.msra.mxu1 %v7052_v46  ;;  %v7062_v41 = vld [vmem:[#allocation56_spill] sm:$0xff]  ;;  %v7063_v46 = vld [vmem:[#allocation57_spill] sm:$0xff] }
 0x629   :  { %4435 = vmatprep.subr.bf16.mxu0 %v7053_v48  ;;  %4499 = vmatprep.subr.bf16.mxu1 %v7054_v59  ;;  %v7064_v48 = vld [vmem:[#allocation58_spill] sm:$0xff]  ;;  %v7065_v59 = vld [vmem:[#allocation59_spill] sm:$0xff] }
 0x62c   :  { %4437 = vmatpush1.bf16.msra.mxu0 %v7055_v9  ;;  %4501 = vmatpush1.bf16.msra.mxu1 %v7056_v25  ;;  %v7066_v9 = vld [vmem:[#allocation60_spill] sm:$0xff]  ;;  %v7067_v25 = vld [vmem:[#allocation61_spill] sm:$0xff] }
 0x62d   :  { %4439 = vmatprep.subr.bf16.mxu0 %v7057_v61  ;;  %4503 = vmatprep.subr.bf16.mxu1 %v7058_v33  ;;  %v7068_v61 = vld [vmem:[#allocation62_spill] sm:$0xff]  ;;  %v7069_v33 = vld [vmem:[#allocation63_spill] sm:$0xff] }
 0x630   :  { %4441 = vmatpush1.bf16.msra.mxu0 %v7059_v19  ;;  %4505 = vmatpush1.bf16.msra.mxu1 %v7060_v13  ;;  %v7070_v19 = vld [vmem:[#allocation64_spill] sm:$0xff]  ;;  %v7071_v13 = vld [vmem:[#allocation65_spill] sm:$0xff] }
 0x631   :  { %4443 = vmatprep.subr.bf16.mxu0 %v7061_v4  ;;  %4507 = vmatprep.subr.bf16.mxu1 %v7062_v41  ;;  %v7072_v4 = vld [vmem:[#allocation66_spill] sm:$0xff] }
 0x632   :  { %v7073_v41 = vld [vmem:[#allocation10_spill] sm:$0xff] }
 0x634   :  { %4445 = vmatpush1.bf16.msra.mxu0 %v7063_v46  ;;  %4509 = vmatpush1.bf16.msra.mxu1 %v7064_v48  ;;  %v7074_v46 = vld [vmem:[#allocation11_spill] sm:$0xff] }
 0x635   :  { %4447 = vmatprep.subr.bf16.mxu0 %v7065_v59  ;;  %4511 = vmatprep.subr.bf16.mxu1 %v7066_v9 }
 0x638   :  { %4449 = vmatpush1.bf16.msra.mxu0 %v7067_v25  ;;  %4513 = vmatpush1.bf16.msra.mxu1 %v7068_v61 }
 0x639   :  { %4451 = vmatprep.subr.bf16.mxu0 %v7069_v33  ;;  %4515 = vmatprep.subr.bf16.mxu1 %v7070_v19  ;;  %v7076_v19 = vld [vmem:[#allocation71_spill] sm:$0xff] }
 0x63c   :  { %4453 = vmatpush1.bf16.msra.mxu0 %v7071_v13  ;;  %4517 = vmatpush1.bf16.msra.mxu1 %v7072_v4 }
 0x63d   :  { %4519 = vmatprep.subr.bf16.mxu0 %v7073_v41  ;;  %4551 = vmatprep.subr.bf16.mxu1 %v7074_v46 }
 0x6b2   :  { %v2162_v48 = vpop.f32.mrb[24].mxu0  ;;  %v2233_v59 = vpop.f32.mrb[24].mxu1 }
 0x6b3   :  { %v2163_v9 = vadd.f32 %v2162_v48, %v7075_v1  ;;  %v2164_v55 = vpop.f32.mrb[25].mxu0  ;;  %v2235_v25 = vpop.f32.mrb[25].mxu1  ;;  %v2234_v13 = vadd.f32 %v2233_v59, %v7076_v19 }
 0x6b4   :  { %v2165_v61 = vadd.f32 %v2164_v55, %v6893_v20  ;;  %v2236_v4 = vadd.f32 %v2235_v25, %v6956_v27 }
 0x6b5   :  { %v3343_v52 = vmul.f32 -1.442695, %v2163_v9  ;;  %v3345_v28 = vmul.f32 -1.442695, %v2234_v13 }
 0x6b6   :  { %v3344_v33 = vmul.f32 -1.442695, %v2165_v61 }
 0x6b7   :  { %5117 = vpow2.f32 %v3343_v52 }
 0x6b8   :  { %5119 = vpow2.f32 %v3344_v33 }
 0x6b9   :  { %5121 = vtanh.f32 %v2236_v4 }
 0x6ba   :  { %5123 = vpow2.f32 %v3345_v28 }
 0x6c1   :  { %v5118_v41 = vpop.eup %5117 }
 0x6c2   :  { %v2247_v42 = vadd.f32 1.0, %v5118_v41  ;;  %v5120_v46 = vpop.eup %5119 }
 0x6c3   :  { %v2248_v48 = vadd.f32 1.0, %v5120_v46  ;;  %v5122_v1 = vpop.eup %5121 }
 0x6c4   :  { %5125 = vrcp.f32 %v2247_v42  ;;  %v5124_v10 = vpop.eup %5123 }
 0x6c5   :  { %5127 = vrcp.f32 %v2248_v48  ;;  %v2249_v52 = vadd.f32 1.0, %v5124_v10  ;;  %v7077_v10 = vld [vmem:[#allocation69_spill] sm:$0xff] }
 0x6c7   :  { %5129 = vrcp.f32 %v2249_v52 }
 0x6ce   :  { %v5126_v55 = vpop.eup %5125 }
 0x6cf   :  { %v2258_v9 = vmul.f32 %v5126_v55, %v5122_v1  ;;  %v5128_v61 = vpop.eup %5127 }
 0x6d0   :  { %v2257_v33 = vmul.f32 %v5128_v61, %v6210_v36 }
 0x6d1   :  { %v5130_v36 = vpop.eup %5129 }
 0x6d2   :  { %v2328_v59 = vpop.f32.mrb[10].mxu0  ;;  %v2399_v19 = vpop.f32.mrb[10].mxu1  ;;  %v6324_v25 = vadd.f32 %v2258_v9, %v2257_v33 }
 0x6d3   :  { %v4912_v13 = vadd.f32 %v2328_v59, %v6896_v16  ;;  %v2330_v4 = vpop.f32.mrb[11].mxu0  ;;  %v2401_v41 = vpop.f32.mrb[11].mxu1  ;;  %v4928_v1 = vadd.f32 %v2399_v19, %v7077_v10 }
 0x6d4   :  { %v4913_v42 = vadd.f32 %v2330_v4, %v6836_v3  ;;  %5131 = vtanh.f32 %v6324_v25  ;;  %v4929_v48 = vadd.f32 %v2401_v41, %v5741_v15 }
 0x6d5   :  { %v3346_v28 = vmul.f32 -1.442695, %v4912_v13  ;;  %v3348_v9 = vmul.f32 -1.442695, %v4928_v1 }
 0x6d6   :  { %v3347_v46 = vmul.f32 -1.442695, %v4913_v42 }
 0x6d7   :  { %5133 = vpow2.f32 %v3346_v28 }
 0x6d8   :  { %5135 = vpow2.f32 %v3347_v46 }
 0x6d9   :  { %5137 = vtanh.f32 %v4929_v48 }
 0x6da   :  { %5139 = vpow2.f32 %v3348_v9  ;;  %v7080_v9 = vld [vmem:[#allocation15_spill] sm:$0xff] }
 0x6de   :  { %v5132_v55 = vpop.eup %5131 }
 0x6df   :  { %v2261_v61 = vmul.f32 %v5132_v55, %v5130_v36 }
 0x6e1   :  { %v5134_v33 = vpop.eup %5133  ;;  %2496 = vmatprep.mubr.f32.mxu0 %v2261_v61  ;;  %2567 = vmatprep.mubr.f32.mxu1 %v2261_v61  ;;  %v7081_v61 = vld [vmem:[#allocation14_spill] sm:$0xff] }
 0x6e2   :  { %v2417_v59 = vadd.f32 1.0, %v5134_v33  ;;  %v5136_v52 = vpop.eup %5135  ;;  %v7082_v33 = vld [vmem:[#allocation16_spill] sm:$0xff] }
 0x6e3   :  { %v2418_v13 = vadd.f32 1.0, %v5136_v52  ;;  %v5138_v4 = vpop.eup %5137  ;;  %v7084_v52 = vld [vmem:[#allocation19_spill] sm:$0xff] }
 0x6e4   :  { %5141 = vrcp.f32 %v2417_v59  ;;  %v5140_v42 = vpop.eup %5139  ;;  %v7083_v59 = vld [vmem:[#allocation17_spill] sm:$0xff] }
 0x6e5   :  { %5143 = vrcp.f32 %v2418_v13  ;;  %v2419_v10 = vadd.f32 1.0, %v5140_v42  ;;  %v7085_v13 = vld [vmem:[#allocation18_spill] sm:$0xff]  ;;  %v7087_v42 = vld [vmem:[#allocation21_spill] sm:$0xff] }
 0x6e7   :  { %5145 = vrcp.f32 %v2419_v10  ;;  %v7079_v10 = vld [vmem:[#allocation13_spill] sm:$0xff] }
 0x6ee   :  { %v5142_v28 = vpop.eup %5141 }
 0x6ef   :  { %v2428_v19 = vmul.f32 %v5142_v28, %v5138_v4  ;;  %v5144_v46 = vpop.eup %5143  ;;  %v7086_v4 = vld [vmem:[#allocation20_spill] sm:$0xff]  ;;  %v7088_v28 = vld [vmem:[#allocation22_spill] sm:$0xff] }
 0x6f0   :  { %v2427_v41 = vmul.f32 %v5144_v46, %v6218_v5  ;;  %v7078_v5 = vld [vmem:[#allocation12_spill] sm:$0xff] }
 0x6f1   :  { %v5146_v36 = vpop.eup %5145  ;;  %v7090_v46 = vld [vmem:[#allocation24_spill] sm:$0xff] }
 0x6f2   :  { %v6332_v1 = vadd.f32 %v2428_v19, %v2427_v41  ;;  %v7089_v19 = vld [vmem:[#allocation23_spill] sm:$0xff]  ;;  %v7091_v41 = vld [vmem:[#allocation25_spill] sm:$0xff] }
 0x6f4   :  { %5147 = vtanh.f32 %v6332_v1 }
 0x6fe   :  { %v5148_v48 = vpop.eup %5147 }
 0x6ff   :  { %v2431_v55 = vmul.f32 %v5148_v48, %v5146_v36  ;;  %v7092_v36 = vld [vmem:[#allocation26_spill] sm:$0xff]  ;;  %v7093_v48 = vld [vmem:[#allocation27_spill] sm:$0xff] }
 0x701   :  { %2497 = vmatmul.mubr.f32.vlgmr.msra.gmra.mrb[26].mxu0 %v2431_v55  ;;  %2568 = vmatmul.mubr.f32.vlgmr.msra.gmra.mrb[26].mxu1 %v2431_v55 }
 0x702   :  { %4521 = vmatpush1.bf16.msra.mxu0 %v5369_v24  ;;  %4553 = vmatpush1.bf16.msra.mxu1 %v5376_v30 }
 0x703   :  { %4523 = vmatprep.subr.bf16.mxu0 %v5383_v34  ;;  %4555 = vmatprep.subr.bf16.mxu1 %v5391_v40 }
 0x704   :  { %2662 = vmatprep.mubr.f32.mxu0 %v6775_v22  ;;  %2733 = vmatprep.mubr.f32.mxu1 %v6775_v22 }
 0x706   :  { %4525 = vmatpush1.bf16.msra.mxu0 %v5387_v37  ;;  %4557 = vmatpush1.bf16.msra.mxu1 %v5395_v43 }
 0x707   :  { %4527 = vmatprep.subr.bf16.mxu0 %v5402_v47  ;;  %4559 = vmatprep.subr.bf16.mxu1 %v5410_v53 }
 0x70a   :  { %4529 = vmatpush1.bf16.msra.mxu0 %v5406_v50  ;;  %4561 = vmatpush1.bf16.msra.mxu1 %v5414_v56 }
 0x70b   :  { %4531 = vmatprep.subr.bf16.mxu0 %v5421_v60  ;;  %4563 = vmatprep.subr.bf16.mxu1 %v5429_v2 }
 0x70e   :  { %4533 = vmatpush1.bf16.msra.mxu0 %v5425_v63  ;;  %4565 = vmatpush1.bf16.msra.mxu1 %v5433_v7 }
 0x70f   :  { %4535 = vmatprep.subr.bf16.mxu0 %v5440_v11  ;;  %4567 = vmatprep.subr.bf16.mxu1 %v5448_v17 }
 0x712   :  { %4537 = vmatpush1.bf16.msra.mxu0 %v5444_v14  ;;  %4569 = vmatpush1.bf16.msra.mxu1 %v5452_v21 }
 0x713   :  { %4539 = vmatprep.subr.bf16.mxu0 %v5459_v26  ;;  %4571 = vmatprep.subr.bf16.mxu1 %v5467_v35 }
 0x716   :  { %4541 = vmatpush1.bf16.msra.mxu0 %v5463_v31  ;;  %4573 = vmatpush1.bf16.msra.mxu1 %v5471_v39 }
 0x717   :  { %4543 = vmatprep.subr.bf16.mxu0 %v5478_v45  ;;  %4575 = vmatprep.subr.bf16.mxu1 %v5486_v54 }
 0x71a   :  { %4545 = vmatpush1.bf16.msra.mxu0 %v5482_v49  ;;  %4577 = vmatpush1.bf16.msra.mxu1 %v5490_v58 }
 0x71b   :  { %4547 = vmatprep.subr.bf16.mxu0 %v5497_v0  ;;  %4579 = vmatprep.subr.bf16.mxu1 %v5505_v12 }
 0x71e   :  { %4549 = vmatpush1.bf16.msra.mxu0 %v5501_v6  ;;  %4581 = vmatpush1.bf16.msra.mxu1 %v5509_v18 }
 0x71f   :  { %4583 = vmatprep.subr.bf16.mxu0 %v5513_v23  ;;  %4647 = vmatprep.subr.bf16.mxu1 %v5517_v29 }
 0x721   :  { %2663 = vmatmul.mubr.f32.vlgmr.msra.gmra.mrb[12].mxu0 %v2431_v55  ;;  %2734 = vmatmul.mubr.f32.vlgmr.msra.gmra.mrb[12].mxu1 %v2431_v55  ;;  %v7094_v55 = vld [vmem:[#allocation28_spill] sm:$0xff] }
 0x722   :  { %4585 = vmatpush1.bf16.msra.mxu0 %v5519_v32  ;;  %4649 = vmatpush1.bf16.msra.mxu1 %v5527_v44 }
 0x723   :  { %4587 = vmatprep.subr.bf16.mxu0 %v5523_v38  ;;  %4651 = vmatprep.subr.bf16.mxu1 %v5531_v51 }
 0x726   :  { %4589 = vmatpush1.bf16.msra.mxu0 %v5535_v57  ;;  %4653 = vmatpush1.bf16.msra.mxu1 %v5542_v8 }
 0x727   :  { %4591 = vmatprep.subr.bf16.mxu0 %v5539_v62  ;;  %4655 = vmatprep.subr.bf16.mxu1 %v7078_v5 }
 0x72a   :  { %4593 = vmatpush1.bf16.msra.mxu0 %v7079_v10  ;;  %4657 = vmatpush1.bf16.msra.mxu1 %v7080_v9 }
 0x72b   :  { %4595 = vmatprep.subr.bf16.mxu0 %v7081_v61  ;;  %4659 = vmatprep.subr.bf16.mxu1 %v7082_v33 }
 0x72e   :  { %4597 = vmatpush1.bf16.msra.mxu0 %v7083_v59  ;;  %4661 = vmatpush1.bf16.msra.mxu1 %v7084_v52  ;;  %v7095_v52 = vld [vmem:[#allocation29_spill] sm:$0xff] }
 0x72f   :  { %4599 = vmatprep.subr.bf16.mxu0 %v7085_v13  ;;  %4663 = vmatprep.subr.bf16.mxu1 %v7086_v4  ;;  %v7096_v13 = vld [vmem:[#allocation30_spill] sm:$0xff]  ;;  %v7097_v4 = vld [vmem:[#allocation31_spill] sm:$0xff]  ;;  %v7135_v59 = vld [vmem:[#allocation9_spill] sm:$0xff] }
 0x732   :  { %4601 = vmatpush1.bf16.msra.mxu0 %v7087_v42  ;;  %4665 = vmatpush1.bf16.msra.mxu1 %v7088_v28  ;;  %v7098_v42 = vld [vmem:[#allocation32_spill] sm:$0xff]  ;;  %v7099_v28 = vld [vmem:[#allocation33_spill] sm:$0xff] }
 0x733   :  { %4603 = vmatprep.subr.bf16.mxu0 %v7089_v19  ;;  %4667 = vmatprep.subr.bf16.mxu1 %v7090_v46  ;;  %v7100_v19 = vld [vmem:[#allocation34_spill] sm:$0xff]  ;;  %v7101_v46 = vld [vmem:[#allocation35_spill] sm:$0xff] }
 0x736   :  { %4605 = vmatpush1.bf16.msra.mxu0 %v7091_v41  ;;  %4669 = vmatpush1.bf16.msra.mxu1 %v7092_v36  ;;  %v7102_v41 = vld [vmem:[#allocation36_spill] sm:$0xff]  ;;  %v7103_v36 = vld [vmem:[#allocation37_spill] sm:$0xff] }
 0x737   :  { %4607 = vmatprep.subr.bf16.mxu0 %v7093_v48  ;;  %4671 = vmatprep.subr.bf16.mxu1 %v7094_v55  ;;  %v7104_v48 = vld [vmem:[#allocation38_spill] sm:$0xff]  ;;  %v7105_v55 = vld [vmem:[#allocation39_spill] sm:$0xff] }
 0x73a   :  { %4609 = vmatpush1.bf16.msra.mxu0 %v7095_v52  ;;  %4673 = vmatpush1.bf16.msra.mxu1 %v7096_v13  ;;  %v7106_v52 = vld [vmem:[#allocation40_spill] sm:$0xff]  ;;  %v7107_v13 = vld [vmem:[#allocation41_spill] sm:$0xff] }
 0x73b   :  { %4611 = vmatprep.subr.bf16.mxu0 %v7097_v4  ;;  %4675 = vmatprep.subr.bf16.mxu1 %v7098_v42  ;;  %v7108_v4 = vld [vmem:[#allocation42_spill] sm:$0xff]  ;;  %v7109_v42 = vld [vmem:[#allocation43_spill] sm:$0xff] }
 0x73e   :  { %4613 = vmatpush1.bf16.msra.mxu0 %v7099_v28  ;;  %4677 = vmatpush1.bf16.msra.mxu1 %v7100_v19  ;;  %v7110_v28 = vld [vmem:[#allocation44_spill] sm:$0xff]  ;;  %v7111_v19 = vld [vmem:[#allocation45_spill] sm:$0xff] }
 0x73f   :  { %4615 = vmatprep.subr.bf16.mxu0 %v7101_v46  ;;  %4679 = vmatprep.subr.bf16.mxu1 %v7102_v41  ;;  %v7112_v46 = vld [vmem:[#allocation46_spill] sm:$0xff]  ;;  %v7113_v41 = vld [vmem:[#allocation47_spill] sm:$0xff] }
 0x742   :  { %4617 = vmatpush1.bf16.msra.mxu0 %v7103_v36  ;;  %4681 = vmatpush1.bf16.msra.mxu1 %v7104_v48  ;;  %v7114_v36 = vld [vmem:[#allocation48_spill] sm:$0xff]  ;;  %v7115_v48 = vld [vmem:[#allocation49_spill] sm:$0xff] }
 0x743   :  { %4619 = vmatprep.subr.bf16.mxu0 %v7105_v55  ;;  %4683 = vmatprep.subr.bf16.mxu1 %v7106_v52  ;;  %v7116_v55 = vld [vmem:[#allocation50_spill] sm:$0xff]  ;;  %v7117_v52 = vld [vmem:[#allocation51_spill] sm:$0xff] }
 0x746   :  { %4621 = vmatpush1.bf16.msra.mxu0 %v7107_v13  ;;  %4685 = vmatpush1.bf16.msra.mxu1 %v7108_v4  ;;  %v7118_v13 = vld [vmem:[#allocation52_spill] sm:$0xff]  ;;  %v7119_v4 = vld [vmem:[#allocation53_spill] sm:$0xff] }
 0x747   :  { %4623 = vmatprep.subr.bf16.mxu0 %v7109_v42  ;;  %4687 = vmatprep.subr.bf16.mxu1 %v7110_v28  ;;  %v7120_v42 = vld [vmem:[#allocation54_spill] sm:$0xff]  ;;  %v7121_v28 = vld [vmem:[#allocation55_spill] sm:$0xff] }
 0x74a   :  { %4625 = vmatpush1.bf16.msra.mxu0 %v7111_v19  ;;  %4689 = vmatpush1.bf16.msra.mxu1 %v7112_v46  ;;  %v7122_v19 = vld [vmem:[#allocation56_spill] sm:$0xff]  ;;  %v7123_v46 = vld [vmem:[#allocation57_spill] sm:$0xff] }
 0x74b   :  { %4627 = vmatprep.subr.bf16.mxu0 %v7113_v41  ;;  %4691 = vmatprep.subr.bf16.mxu1 %v7114_v36  ;;  %v7124_v41 = vld [vmem:[#allocation58_spill] sm:$0xff]  ;;  %v7125_v36 = vld [vmem:[#allocation59_spill] sm:$0xff] }
 0x74e   :  { %4629 = vmatpush1.bf16.msra.mxu0 %v7115_v48  ;;  %4693 = vmatpush1.bf16.msra.mxu1 %v7116_v55  ;;  %v7126_v48 = vld [vmem:[#allocation60_spill] sm:$0xff]  ;;  %v7127_v55 = vld [vmem:[#allocation61_spill] sm:$0xff] }
 0x74f   :  { %4631 = vmatprep.subr.bf16.mxu0 %v7117_v52  ;;  %4695 = vmatprep.subr.bf16.mxu1 %v7118_v13  ;;  %v7128_v52 = vld [vmem:[#allocation62_spill] sm:$0xff]  ;;  %v7129_v13 = vld [vmem:[#allocation63_spill] sm:$0xff] }
 0x752   :  { %4633 = vmatpush1.bf16.msra.mxu0 %v7119_v4  ;;  %4697 = vmatpush1.bf16.msra.mxu1 %v7120_v42  ;;  %v7130_v4 = vld [vmem:[#allocation64_spill] sm:$0xff]  ;;  %v7131_v42 = vld [vmem:[#allocation65_spill] sm:$0xff] }
 0x753   :  { %4635 = vmatprep.subr.bf16.mxu0 %v7121_v28  ;;  %4699 = vmatprep.subr.bf16.mxu1 %v7122_v19  ;;  %v7132_v28 = vld [vmem:[#allocation66_spill] sm:$0xff] }
 0x754   :  { %v7133_v19 = vld [vmem:[#allocation10_spill] sm:$0xff] }
 0x756   :  { %4637 = vmatpush1.bf16.msra.mxu0 %v7123_v46  ;;  %4701 = vmatpush1.bf16.msra.mxu1 %v7124_v41  ;;  %v7134_v46 = vld [vmem:[#allocation11_spill] sm:$0xff] }
 0x757   :  { %4639 = vmatprep.subr.bf16.mxu0 %v7125_v36  ;;  %4703 = vmatprep.subr.bf16.mxu1 %v7126_v48 }
 0x75a   :  { %4641 = vmatpush1.bf16.msra.mxu0 %v7127_v55  ;;  %4705 = vmatpush1.bf16.msra.mxu1 %v7128_v52 }
 0x75b   :  { %4643 = vmatprep.subr.bf16.mxu0 %v7129_v13  ;;  %4707 = vmatprep.subr.bf16.mxu1 %v7130_v4  ;;  %v7136_v4 = vld [vmem:[#allocation71_spill] sm:$0xff] }
 0x75e   :  { %4645 = vmatpush1.bf16.msra.mxu0 %v7131_v42  ;;  %4709 = vmatpush1.bf16.msra.mxu1 %v7132_v28 }
 0x75f   :  { %4711 = vmatprep.subr.bf16.mxu0 %v7133_v19  ;;  %4743 = vmatprep.subr.bf16.mxu1 %v7134_v46 }
 0x7d4   :  { %v2498_v41 = vpop.f32.mrb[26].mxu0  ;;  %v2569_v36 = vpop.f32.mrb[26].mxu1 }
 0x7d5   :  { %v2499_v48 = vadd.f32 %v2498_v41, %v7135_v59  ;;  %v2500_v33 = vpop.f32.mrb[27].mxu0  ;;  %v2571_v55 = vpop.f32.mrb[27].mxu1  ;;  %v2570_v42 = vadd.f32 %v2569_v36, %v7136_v4 }
 0x7d6   :  { %v2501_v52 = vadd.f32 %v2500_v33, %v6893_v20  ;;  %v2572_v28 = vadd.f32 %v2571_v55, %v6956_v27 }
 0x7d7   :  { %v3349_v61 = vmul.f32 -1.442695, %v2499_v48  ;;  %v3351_v9 = vmul.f32 -1.442695, %v2570_v42 }
 0x7d8   :  { %v3350_v13 = vmul.f32 -1.442695, %v2501_v52 }
 0x7d9   :  { %5149 = vpow2.f32 %v3349_v61 }
 0x7da   :  { %5151 = vpow2.f32 %v3350_v13 }
 0x7db   :  { %5153 = vtanh.f32 %v2572_v28 }
 0x7dc   :  { %5155 = vpow2.f32 %v3351_v9 }
 0x7e3   :  { %v5150_v19 = vpop.eup %5149 }
 0x7e4   :  { %v2583_v10 = vadd.f32 1.0, %v5150_v19  ;;  %v5152_v46 = vpop.eup %5151 }
 0x7e5   :  { %v2584_v41 = vadd.f32 1.0, %v5152_v46  ;;  %v5154_v59 = vpop.eup %5153 }
 0x7e6   :  { %5157 = vrcp.f32 %v2583_v10  ;;  %v5156_v5 = vpop.eup %5155 }
 0x7e7   :  { %5159 = vrcp.f32 %v2584_v41  ;;  %v2585_v61 = vadd.f32 1.0, %v5156_v5  ;;  %v7137_v5 = vld [vmem:[#allocation69_spill] sm:$0xff] }
 0x7e9   :  { %5161 = vrcp.f32 %v2585_v61 }
 0x7f0   :  { %v5158_v33 = vpop.eup %5157 }
 0x7f1   :  { %v2594_v48 = vmul.f32 %v5158_v33, %v5154_v59  ;;  %v5160_v52 = vpop.eup %5159 }
 0x7f2   :  { %v2593_v13 = vmul.f32 %v5160_v52, %v6324_v25 }
 0x7f3   :  { %v5162_v25 = vpop.eup %5161 }
 0x7f4   :  { %v2664_v36 = vpop.f32.mrb[12].mxu0  ;;  %v2735_v4 = vpop.f32.mrb[12].mxu1  ;;  %v6438_v55 = vadd.f32 %v2594_v48, %v2593_v13 }
 0x7f5   :  { %v4914_v42 = vadd.f32 %v2664_v36, %v6896_v16  ;;  %v2666_v28 = vpop.f32.mrb[13].mxu0  ;;  %v2737_v19 = vpop.f32.mrb[13].mxu1  ;;  %v4930_v59 = vadd.f32 %v2735_v4, %v7137_v5 }
 0x7f6   :  { %v4915_v10 = vadd.f32 %v2666_v28, %v6836_v3  ;;  %5163 = vtanh.f32 %v6438_v55  ;;  %v4931_v41 = vadd.f32 %v2737_v19, %v5741_v15 }
 0x7f7   :  { %v3352_v9 = vmul.f32 -1.442695, %v4914_v42  ;;  %v3354_v48 = vmul.f32 -1.442695, %v4930_v59 }
 0x7f8   :  { %v3353_v46 = vmul.f32 -1.442695, %v4915_v10 }
 0x7f9   :  { %5165 = vpow2.f32 %v3352_v9 }
 0x7fa   :  { %5167 = vpow2.f32 %v3353_v46 }
 0x7fb   :  { %5169 = vtanh.f32 %v4931_v41 }
 0x7fc   :  { %5171 = vpow2.f32 %v3354_v48  ;;  %v7180_v48 = vld [vmem:[#allocation54_spill] sm:$0xff] }
 0x800   :  { %v5164_v33 = vpop.eup %5163 }
 0x801   :  { %v2597_v52 = vmul.f32 %v5164_v33, %v5162_v25 }
 0x803   :  { %v5166_v13 = vpop.eup %5165  ;;  %2832 = vmatprep.mubr.f32.mxu0 %v2597_v52  ;;  %2903 = vmatprep.mubr.f32.mxu1 %v2597_v52  ;;  %v7181_v52 = vld [vmem:[#allocation55_spill] sm:$0xff] }
 0x804   :  { %v2753_v36 = vadd.f32 1.0, %v5166_v13  ;;  %v5168_v61 = vpop.eup %5167  ;;  %v7182_v13 = vld [vmem:[#allocation56_spill] sm:$0xff] }
 0x805   :  { %v2754_v42 = vadd.f32 1.0, %v5168_v61  ;;  %v5170_v28 = vpop.eup %5169  ;;  %v7184_v61 = vld [vmem:[#allocation58_spill] sm:$0xff] }
 0x806   :  { %5173 = vrcp.f32 %v2753_v36  ;;  %v5172_v10 = vpop.eup %5171  ;;  %v7183_v36 = vld [vmem:[#allocation57_spill] sm:$0xff] }
 0x807   :  { %5175 = vrcp.f32 %v2754_v42  ;;  %v2755_v5 = vadd.f32 1.0, %v5172_v10  ;;  %v7185_v42 = vld [vmem:[#allocation59_spill] sm:$0xff]  ;;  %v7187_v10 = vld [vmem:[#allocation61_spill] sm:$0xff] }
 0x809   :  { %5177 = vrcp.f32 %v2755_v5  ;;  %v7179_v5 = vld [vmem:[#allocation53_spill] sm:$0xff] }
 0x810   :  { %v5174_v9 = vpop.eup %5173 }
 0x811   :  { %v2764_v4 = vmul.f32 %v5174_v9, %v5170_v28  ;;  %v5176_v46 = vpop.eup %5175  ;;  %v7186_v28 = vld [vmem:[#allocation60_spill] sm:$0xff]  ;;  %v7188_v9 = vld [vmem:[#allocation62_spill] sm:$0xff] }
 0x812   :  { %v2763_v19 = vmul.f32 %v5176_v46, %v6332_v1  ;;  %v7178_v1 = vld [vmem:[#allocation52_spill] sm:$0xff] }
 0x813   :  { %v5178_v25 = vpop.eup %5177  ;;  %v7190_v46 = vld [vmem:[#allocation64_spill] sm:$0xff] }
 0x814   :  { %v6446_v59 = vadd.f32 %v2764_v4, %v2763_v19  ;;  %v7189_v4 = vld [vmem:[#allocation63_spill] sm:$0xff]  ;;  %v7191_v19 = vld [vmem:[#allocation65_spill] sm:$0xff] }
 0x816   :  { %5179 = vtanh.f32 %v6446_v59 }
 0x820   :  { %v5180_v41 = vpop.eup %5179 }
 0x821   :  { %v2767_v33 = vmul.f32 %v5180_v41, %v5178_v25  ;;  %v7192_v25 = vld [vmem:[#allocation66_spill] sm:$0xff] }
 0x823   :  { %2833 = vmatmul.mubr.f32.vlgmr.msra.gmra.mrb[28].mxu0 %v2767_v33  ;;  %2904 = vmatmul.mubr.f32.vlgmr.msra.gmra.mrb[28].mxu1 %v2767_v33 }
 0x824   :  { %4713 = vmatpush1.bf16.msra.mxu0 %v5369_v24  ;;  %4745 = vmatpush1.bf16.msra.mxu1 %v5376_v30  ;;  %v7138_v24 = vld [vmem:[#allocation12_spill] sm:$0xff]  ;;  %v7139_v30 = vld [vmem:[#allocation13_spill] sm:$0xff] }
 0x825   :  { %4715 = vmatprep.subr.bf16.mxu0 %v5383_v34  ;;  %4747 = vmatprep.subr.bf16.mxu1 %v5391_v40  ;;  %v7140_v34 = vld [vmem:[#allocation15_spill] sm:$0xff]  ;;  %v7142_v40 = vld [vmem:[#allocation16_spill] sm:$0xff] }
 0x826   :  { %2998 = vmatprep.mubr.f32.mxu0 %v6775_v22  ;;  %3069 = vmatprep.mubr.f32.mxu1 %v6775_v22  ;;  %v7177_v22 = vld [vmem:[#allocation51_spill] sm:$0xff] }
 0x828   :  { %4717 = vmatpush1.bf16.msra.mxu0 %v5387_v37  ;;  %4749 = vmatpush1.bf16.msra.mxu1 %v5395_v43  ;;  %v7141_v37 = vld [vmem:[#allocation14_spill] sm:$0xff]  ;;  %v7143_v43 = vld [vmem:[#allocation17_spill] sm:$0xff] }
 0x829   :  { %4719 = vmatprep.subr.bf16.mxu0 %v5402_v47  ;;  %4751 = vmatprep.subr.bf16.mxu1 %v5410_v53  ;;  %v7144_v47 = vld [vmem:[#allocation19_spill] sm:$0xff]  ;;  %v7146_v53 = vld [vmem:[#allocation20_spill] sm:$0xff] }
 0x82c   :  { %4721 = vmatpush1.bf16.msra.mxu0 %v5406_v50  ;;  %4753 = vmatpush1.bf16.msra.mxu1 %v5414_v56  ;;  %v7145_v50 = vld [vmem:[#allocation18_spill] sm:$0xff]  ;;  %v7147_v56 = vld [vmem:[#allocation21_spill] sm:$0xff] }
 0x82d   :  { %4723 = vmatprep.subr.bf16.mxu0 %v5421_v60  ;;  %4755 = vmatprep.subr.bf16.mxu1 %v5429_v2  ;;  %v7148_v60 = vld [vmem:[#allocation22_spill] sm:$0xff]  ;;  %v7150_v2 = vld [vmem:[#allocation24_spill] sm:$0xff] }
 0x830   :  { %4725 = vmatpush1.bf16.msra.mxu0 %v5425_v63  ;;  %4757 = vmatpush1.bf16.msra.mxu1 %v5433_v7  ;;  %v7149_v63 = vld [vmem:[#allocation23_spill] sm:$0xff]  ;;  %v7151_v7 = vld [vmem:[#allocation25_spill] sm:$0xff] }
 0x831   :  { %4727 = vmatprep.subr.bf16.mxu0 %v5440_v11  ;;  %4759 = vmatprep.subr.bf16.mxu1 %v5448_v17  ;;  %v7152_v11 = vld [vmem:[#allocation26_spill] sm:$0xff]  ;;  %v7154_v17 = vld [vmem:[#allocation28_spill] sm:$0xff] }
 0x834   :  { %4729 = vmatpush1.bf16.msra.mxu0 %v5444_v14  ;;  %4761 = vmatpush1.bf16.msra.mxu1 %v5452_v21  ;;  %v7153_v14 = vld [vmem:[#allocation27_spill] sm:$0xff]  ;;  %v7155_v21 = vld [vmem:[#allocation29_spill] sm:$0xff] }
 0x835   :  { %4731 = vmatprep.subr.bf16.mxu0 %v5459_v26  ;;  %4763 = vmatprep.subr.bf16.mxu1 %v5467_v35  ;;  %v7156_v26 = vld [vmem:[#allocation30_spill] sm:$0xff]  ;;  %v7158_v35 = vld [vmem:[#allocation32_spill] sm:$0xff] }
 0x838   :  { %4733 = vmatpush1.bf16.msra.mxu0 %v5463_v31  ;;  %4765 = vmatpush1.bf16.msra.mxu1 %v5471_v39  ;;  %v7157_v31 = vld [vmem:[#allocation31_spill] sm:$0xff]  ;;  %v7159_v39 = vld [vmem:[#allocation33_spill] sm:$0xff] }
 0x839   :  { %4735 = vmatprep.subr.bf16.mxu0 %v5478_v45  ;;  %4767 = vmatprep.subr.bf16.mxu1 %v5486_v54  ;;  %v7160_v45 = vld [vmem:[#allocation34_spill] sm:$0xff]  ;;  %v7162_v54 = vld [vmem:[#allocation36_spill] sm:$0xff] }
 0x83c   :  { %4737 = vmatpush1.bf16.msra.mxu0 %v5482_v49  ;;  %4769 = vmatpush1.bf16.msra.mxu1 %v5490_v58  ;;  %v7161_v49 = vld [vmem:[#allocation35_spill] sm:$0xff]  ;;  %v7163_v58 = vld [vmem:[#allocation37_spill] sm:$0xff] }
 0x83d   :  { %4739 = vmatprep.subr.bf16.mxu0 %v5497_v0  ;;  %4771 = vmatprep.subr.bf16.mxu1 %v5505_v12  ;;  %v7164_v0 = vld [vmem:[#allocation38_spill] sm:$0xff]  ;;  %v7166_v12 = vld [vmem:[#allocation40_spill] sm:$0xff] }
 0x840   :  { %4741 = vmatpush1.bf16.msra.mxu0 %v5501_v6  ;;  %4773 = vmatpush1.bf16.msra.mxu1 %v5509_v18  ;;  %v7165_v6 = vld [vmem:[#allocation39_spill] sm:$0xff]  ;;  %v7167_v18 = vld [vmem:[#allocation41_spill] sm:$0xff] }
 0x841   :  { %4775 = vmatprep.subr.bf16.mxu0 %v5513_v23  ;;  %4839 = vmatprep.subr.bf16.mxu1 %v5517_v29  ;;  %v7168_v23 = vld [vmem:[#allocation42_spill] sm:$0xff]  ;;  %v7169_v29 = vld [vmem:[#allocation43_spill] sm:$0xff] }
 0x843   :  { %2999 = vmatmul.mubr.f32.vlgmr.msra.gmra.mrb[14].mxu0 %v2767_v33  ;;  %3070 = vmatmul.mubr.f32.vlgmr.msra.gmra.mrb[14].mxu1 %v2767_v33 }
 0x844   :  { %4777 = vmatpush1.bf16.msra.mxu0 %v5519_v32  ;;  %4841 = vmatpush1.bf16.msra.mxu1 %v5527_v44  ;;  %v7170_v32 = vld [vmem:[#allocation44_spill] sm:$0xff]  ;;  %v7172_v44 = vld [vmem:[#allocation46_spill] sm:$0xff] }
 0x845   :  { %4779 = vmatprep.subr.bf16.mxu0 %v5523_v38  ;;  %4843 = vmatprep.subr.bf16.mxu1 %v5531_v51  ;;  %v7171_v38 = vld [vmem:[#allocation45_spill] sm:$0xff]  ;;  %v7173_v51 = vld [vmem:[#allocation47_spill] sm:$0xff] }
 0x848   :  { %4781 = vmatpush1.bf16.msra.mxu0 %v5535_v57  ;;  %4845 = vmatpush1.bf16.msra.mxu1 %v5542_v8  ;;  %v7174_v57 = vld [vmem:[#allocation48_spill] sm:$0xff]  ;;  %v7176_v8 = vld [vmem:[#allocation50_spill] sm:$0xff] }
 0x849   :  { %4783 = vmatprep.subr.bf16.mxu0 %v5539_v62  ;;  %4847 = vmatprep.subr.bf16.mxu1 %v7138_v24  ;;  %v7175_v62 = vld [vmem:[#allocation49_spill] sm:$0xff] }
 0x84a   :  { %v7193_v24 = vld [vmem:[#allocation9_spill] sm:$0xff] }
 0x84c   :  { %4785 = vmatpush1.bf16.msra.mxu0 %v7139_v30  ;;  %4849 = vmatpush1.bf16.msra.mxu1 %v7140_v34 }
 0x84d   :  { %4787 = vmatprep.subr.bf16.mxu0 %v7141_v37  ;;  %4851 = vmatprep.subr.bf16.mxu1 %v7142_v40 }
 0x850   :  { %4789 = vmatpush1.bf16.msra.mxu0 %v7143_v43  ;;  %4853 = vmatpush1.bf16.msra.mxu1 %v7144_v47 }
 0x851   :  { %4791 = vmatprep.subr.bf16.mxu0 %v7145_v50  ;;  %4855 = vmatprep.subr.bf16.mxu1 %v7146_v53  ;;  %v7194_v50 = vld [vmem:[#allocation71_spill] sm:$0xff] }
 0x854   :  { %4793 = vmatpush1.bf16.msra.mxu0 %v7147_v56  ;;  %4857 = vmatpush1.bf16.msra.mxu1 %v7148_v60 }
 0x855   :  { %4795 = vmatprep.subr.bf16.mxu0 %v7149_v63  ;;  %4859 = vmatprep.subr.bf16.mxu1 %v7150_v2 }
 0x858   :  { %4797 = vmatpush1.bf16.msra.mxu0 %v7151_v7  ;;  %4861 = vmatpush1.bf16.msra.mxu1 %v7152_v11 }
 0x859   :  { %4799 = vmatprep.subr.bf16.mxu0 %v7153_v14  ;;  %4863 = vmatprep.subr.bf16.mxu1 %v7154_v17 }
 0x85c   :  { %4801 = vmatpush1.bf16.msra.mxu0 %v7155_v21  ;;  %4865 = vmatpush1.bf16.msra.mxu1 %v7156_v26 }
 0x85d   :  { %4803 = vmatprep.subr.bf16.mxu0 %v7157_v31  ;;  %4867 = vmatprep.subr.bf16.mxu1 %v7158_v35 }
 0x860   :  { %4805 = vmatpush1.bf16.msra.mxu0 %v7159_v39  ;;  %4869 = vmatpush1.bf16.msra.mxu1 %v7160_v45 }
 0x861   :  { %4807 = vmatprep.subr.bf16.mxu0 %v7161_v49  ;;  %4871 = vmatprep.subr.bf16.mxu1 %v7162_v54 }
 0x864   :  { %4809 = vmatpush1.bf16.msra.mxu0 %v7163_v58  ;;  %4873 = vmatpush1.bf16.msra.mxu1 %v7164_v0 }
 0x865   :  { %4811 = vmatprep.subr.bf16.mxu0 %v7165_v6  ;;  %4875 = vmatprep.subr.bf16.mxu1 %v7166_v12 }
 0x868   :  { %4813 = vmatpush1.bf16.msra.mxu0 %v7167_v18  ;;  %4877 = vmatpush1.bf16.msra.mxu1 %v7168_v23 }
 0x869   :  { %4815 = vmatprep.subr.bf16.mxu0 %v7169_v29  ;;  %4879 = vmatprep.subr.bf16.mxu1 %v7170_v32  ;;  %v7195_v29 = vld [vmem:[#allocation69_spill] sm:$0xff] }
 0x86c   :  { %4817 = vmatpush1.bf16.msra.mxu0 %v7171_v38  ;;  %4881 = vmatpush1.bf16.msra.mxu1 %v7172_v44 }
 0x86d   :  { %4819 = vmatprep.subr.bf16.mxu0 %v7173_v51  ;;  %4883 = vmatprep.subr.bf16.mxu1 %v7174_v57 }
 0x870   :  { %4821 = vmatpush1.bf16.msra.mxu0 %v7175_v62  ;;  %4885 = vmatpush1.bf16.msra.mxu1 %v7176_v8 }
 0x871   :  { %4823 = vmatprep.subr.bf16.mxu0 %v7177_v22  ;;  %4887 = vmatprep.subr.bf16.mxu1 %v7178_v1 }
 0x874   :  { %4825 = vmatpush1.bf16.msra.mxu0 %v7179_v5  ;;  %4889 = vmatpush1.bf16.msra.mxu1 %v7180_v48 }
 0x875   :  { %4827 = vmatprep.subr.bf16.mxu0 %v7181_v52  ;;  %4891 = vmatprep.subr.bf16.mxu1 %v7182_v13 }
 0x878   :  { %4829 = vmatpush1.bf16.msra.mxu0 %v7183_v36  ;;  %4893 = vmatpush1.bf16.msra.mxu1 %v7184_v61 }
 0x879   :  { %4831 = vmatprep.subr.bf16.mxu0 %v7185_v42  ;;  %4895 = vmatprep.subr.bf16.mxu1 %v7186_v28 }
 0x87c   :  { %4833 = vmatpush1.bf16.msra.mxu0 %v7187_v10  ;;  %4897 = vmatpush1.bf16.msra.mxu1 %v7188_v9 }
 0x87d   :  { %4835 = vmatprep.subr.bf16.mxu0 %v7189_v4  ;;  %4899 = vmatprep.subr.bf16.mxu1 %v7190_v46 }
 0x880   :  { %4837 = vmatpush1.bf16.msra.mxu0 %v7191_v19  ;;  %4901 = vmatpush1.bf16.msra.mxu1 %v7192_v25 }
 0x8f6   :  { %v2834_v41 = vpop.f32.mrb[28].mxu0  ;;  %v2905_v33 = vpop.f32.mrb[28].mxu1 }
 0x8f7   :  { %v2835_v30 = vadd.f32 %v2834_v41, %v7193_v24  ;;  %v2836_v34 = vpop.f32.mrb[29].mxu0  ;;  %v2907_v37 = vpop.f32.mrb[29].mxu1  ;;  %v2906_v53 = vadd.f32 %v2905_v33, %v7194_v50 }
 0x8f8   :  { %v2837_v40 = vadd.f32 %v2836_v34, %v6893_v20  ;;  %v2908_v56 = vadd.f32 %v2907_v37, %v6956_v27 }
 0x8f9   :  { %v3355_v43 = vmul.f32 -1.442695, %v2835_v30  ;;  %v3357_v60 = vmul.f32 -1.442695, %v2906_v53 }
 0x8fa   :  { %v3356_v47 = vmul.f32 -1.442695, %v2837_v40 }
 0x8fb   :  { %5181 = vpow2.f32 %v3355_v43 }
 0x8fc   :  { %5183 = vpow2.f32 %v3356_v47 }
 0x8fd   :  { %5185 = vtanh.f32 %v2908_v56 }
 0x8fe   :  { %5187 = vpow2.f32 %v3357_v60 }
 0x905   :  { %v5182_v63 = vpop.eup %5181 }
 0x906   :  { %v2919_v2 = vadd.f32 1.0, %v5182_v63  ;;  %v5184_v7 = vpop.eup %5183 }
 0x907   :  { %v2920_v11 = vadd.f32 1.0, %v5184_v7  ;;  %v5186_v14 = vpop.eup %5185 }
 0x908   :  { %5189 = vrcp.f32 %v2919_v2  ;;  %v5188_v17 = vpop.eup %5187 }
 0x909   :  { %5191 = vrcp.f32 %v2920_v11  ;;  %v2921_v35 = vadd.f32 1.0, %v5188_v17  ;;  %v3364_v11 = vld [vmem:[%s6575_s6] ss:$0 sm:$0xff] }
 0x90b   :  { %5193 = vrcp.f32 %v2921_v35 }
 0x912   :  { %v5190_v21 = vpop.eup %5189 }
 0x913   :  { %v2930_v26 = vmul.f32 %v5190_v21, %v5186_v14  ;;  %v5192_v31 = vpop.eup %5191  ;;  %v3365_v21 = vld [vmem:[#allocation2] ss:$0 sm:$0xff] }
 0x914   :  { %v2929_v39 = vmul.f32 %v5192_v31, %v6438_v55 }
 0x915   :  { %v5194_v55 = vpop.eup %5193 }
 0x916   :  { %v3000_v45 = vpop.f32.mrb[14].mxu0  ;;  %v3071_v49 = vpop.f32.mrb[14].mxu1  ;;  %v6550_v54 = vadd.f32 %v2930_v26, %v2929_v39 }
 0x917   :  { %v4916_v58 = vadd.f32 %v3000_v45, %v6896_v16  ;;  %v3002_v0 = vpop.f32.mrb[15].mxu0  ;;  %v3073_v6 = vpop.f32.mrb[15].mxu1  ;;  %v4932_v32 = vadd.f32 %v3071_v49, %v7195_v29 }
 0x918   :  { %v4917_v12 = vadd.f32 %v3002_v0, %v6836_v3  ;;  %5195 = vtanh.f32 %v6550_v54  ;;  %v4933_v38 = vadd.f32 %v3073_v6, %v5741_v15 }
 0x919   :  { %v3358_v18 = vmul.f32 -1.442695, %v4916_v58  ;;  %v3360_v51 = vmul.f32 -1.442695, %v4932_v32 }
 0x91a   :  { %v3359_v23 = vmul.f32 -1.442695, %v4917_v12 }
 0x91b   :  { %5197 = vpow2.f32 %v3358_v18 }
 0x91c   :  { %5199 = vpow2.f32 %v3359_v23 }
 0x91d   :  { %5201 = vtanh.f32 %v4933_v38 }
 0x91e   :  { %5203 = vpow2.f32 %v3360_v51 }
 0x922   :  { %v5196_v44 = vpop.eup %5195 }
 0x923   :  { %v2933_v57 = vmul.f32 %v5196_v44, %v5194_v55 }
 0x925   :  { %v5198_v16 = vpop.eup %5197  ;;  %3168 = vmatprep.mubr.f32.mxu0 %v2933_v57  ;;  %3239 = vmatprep.mubr.f32.mxu1 %v2933_v57 }
 0x926   :  { %v3089_v62 = vadd.f32 1.0, %v5198_v16  ;;  %v5200_v3 = vpop.eup %5199 }
 0x927   :  { %v3090_v8 = vadd.f32 1.0, %v5200_v3  ;;  %v5202_v22 = vpop.eup %5201 }
 0x928   :  { %5205 = vrcp.f32 %v3089_v62  ;;  %v5204_v1 = vpop.eup %5203 }
 0x929   :  { %5207 = vrcp.f32 %v3090_v8  ;;  %v3091_v13 = vadd.f32 1.0, %v5204_v1 }
 0x92b   :  { %5209 = vrcp.f32 %v3091_v13 }
 0x932   :  { %v5206_v5 = vpop.eup %5205 }
 0x933   :  { %v3100_v48 = vmul.f32 %v5206_v5, %v5202_v22  ;;  %v5208_v52 = vpop.eup %5207 }
 0x934   :  { %v3099_v15 = vmul.f32 %v5208_v52, %v6446_v59 }
 0x935   :  { %v5210_v61 = vpop.eup %5209 }
 0x936   :  { %v3101_v36 = vadd.f32 %v3100_v48, %v3099_v15 }
 0x938   :  { %5211 = vtanh.f32 %v3101_v36 }
 0x942   :  { %v5212_v42 = vpop.eup %5211 }
 0x943   :  { %v3103_v28 = vmul.f32 %v5212_v42, %v5210_v61 }
 0x945   :  { %3169 = vmatmul.mubr.f32.vlgmr.msra.gmra.mrb[30].mxu0 %v3103_v28  ;;  %3240 = vmatmul.mubr.f32.vlgmr.msra.gmra.mrb[30].mxu1 %v3103_v28 }
 0xa18   :  { %v3170_v10 = vpop.f32.mrb[30].mxu0  ;;  %v3241_v9 = vpop.f32.mrb[30].mxu1 }
 0xa19   :  { %v3171_v4 = vadd.f32 %v3170_v10, %v7193_v24  ;;  %v3172_v46 = vpop.f32.mrb[31].mxu0  ;;  %v3243_v19 = vpop.f32.mrb[31].mxu1  ;;  %v3242_v59 = vadd.f32 %v3241_v9, %v7194_v50 }
 0xa1a   :  { %v3173_v25 = vadd.f32 %v3172_v46, %v6893_v20  ;;  %v3244_v30 = vadd.f32 %v3243_v19, %v6956_v27 }
 0xa1b   :  { %v3361_v41 = vmul.f32 -1.442695, %v3171_v4  ;;  %v3363_v34 = vmul.f32 -1.442695, %v3242_v59 }
 0xa1c   :  { %v3362_v33 = vmul.f32 -1.442695, %v3173_v25 }
 0xa1d   :  { %5213 = vpow2.f32 %v3361_v41 }
 0xa1e   :  { %5215 = vpow2.f32 %v3362_v33 }
 0xa1f   :  { %5217 = vtanh.f32 %v3244_v30 }
 0xa20   :  { %5219 = vpow2.f32 %v3363_v34 }
 0xa27   :  { %v5214_v37 = vpop.eup %5213 }
 0xa28   :  { %v3255_v40 = vadd.f32 1.0, %v5214_v37  ;;  %v5216_v43 = vpop.eup %5215 }
 0xa29   :  { %v3256_v24 = vadd.f32 1.0, %v5216_v43  ;;  %v5218_v47 = vpop.eup %5217 }
 0xa2a   :  { %5221 = vrcp.f32 %v3255_v40  ;;  %v5220_v53 = vpop.eup %5219 }
 0xa2b   :  { %5223 = vrcp.f32 %v3256_v24  ;;  %v3257_v63 = vadd.f32 1.0, %v5220_v53 }
 0xa2d   :  { %5225 = vrcp.f32 %v3257_v63 }
 0xa34   :  { %v5222_v20 = vpop.eup %5221 }
 0xa35   :  { %v3266_v56 = vmul.f32 %v5222_v20, %v5218_v47  ;;  %v5224_v60 = vpop.eup %5223 }
 0xa36   :  { %v3265_v2 = vmul.f32 %v5224_v60, %v6550_v54 }
 0xa37   :  { %v5226_v27 = vpop.eup %5225 }
 0xa38   :  { %v3267_v50 = vadd.f32 %v3266_v56, %v3265_v2 }
 0xa3a   :  { %5227 = vtanh.f32 %v3267_v50 }
 0xa44   :  { %v5228_v7 = vpop.eup %5227 }
 0xa45   :  { %v3269_v14 = vmul.f32 %v5228_v7, %v5226_v27 }
 0xa47   :  { %v3277_v17 = vmul.f32 %v3364_v11, %v3269_v14 }
 0xa49   :  { %3278 = vadd.xlane.f32.xlu0 %v3277_v17 }
 0xad6   :  { %v3279_v26 = vpop.xlane.xlu0 %3278 }
 0xad7   :  { %v3287_v31 = vadd.f32 %v3365_v21, %v3279_v26 }
 0xad9   :  { %3289 = vst.msk [vmem:[%s6577_s8] sm:$0xff] %vm3288_vm2, %v3287_v31 }
 0xada   :  { %3294 = vsyncpa [#allocation4], 1 }
 0xadb   :  { %3295 = vsyncpa [#allocation6], 1 }

</bundles_post_ra>
